<compile_context>
chip_gen: v7x
topology: tpu7x:2x2x1
jax: 0.10.0
libtpu: 0.0.40
codegen_flags: <defaults>
</compile_context>

<pallas_src>
import functools

import jax
import jax.numpy as jnp
from jax.experimental import pallas as pl
from jax.experimental.pallas import tpu as pltpu


# ---------------------------------------------------------------------------
# Fused MorphBlock kernel (one image per grid step)
# ---------------------------------------------------------------------------
def _stable_sigmoid(v):
    # sigmoid without inf intermediates: only exp of non-positive arguments.
    p = 1.0 / (1.0 + jnp.exp(-jnp.abs(v)))
    return jnp.where(v >= 0, p, 1.0 - p)


def _identity(v):
    return v


def _morph_block_kernel(wcol_ref, x_ref, o_ref,
                        w1_ref, b1_ref, w2_ref, b2_ref, w3_ref, b3_ref,
                        w4_ref, b4_ref, w5_ref, b5_ref,
                        out_ref, *, H, W):
    hw = H * W
    cdt = jnp.bfloat16

    # Column index of every flattened pixel (precomputed in the wrapper).
    wcol = wcol_ref[...]                              # (1, hw) int32

    def col_mask(dx):
        # valid iff the source column w+dx is inside [0, W)
        return jnp.logical_and(wcol + dx >= 0, wcol + dx < W)

    def padded(a, p, fill):
        f = jnp.full((a.shape[0], p), fill, a.dtype)
        return jnp.concatenate([f, a, f], axis=1)

    def conv(act_bf16, w_ref, b_ref, k, pad, act_fn):
        """act: (cin, hw) bf16, w_ref: (k*k, cout, cin) bf16, b_ref: (cout,1) f32."""
        cout = w_ref.shape[1]
        shift_pad = pad * W + pad
        ap = padded(act_bf16, shift_pad, 0) if shift_pad else act_bf16
        acc = jnp.zeros((cout, hw), jnp.float32)
        for t in range(k * k):
            dy = t // k - pad
            dx = t % k - pad
            s = shift_pad + dy * W + dx               # lane-shift of the tap
            sh = ap[:, s:s + hw]                      # sh[p] = act[p + dy*W + dx]
            if dx != 0:                               # zero out cross-row wraps
                sh = jnp.where(col_mask(dx), sh, jnp.zeros_like(sh))
            acc = acc + jnp.dot(w_ref[t], sh,
                                preferred_element_type=jnp.float32)
        return act_fn(acc + b_ref[...])

    x = x_ref[...].astype(jnp.float32)                # (cx, hw)
    o = o_ref[...].astype(jnp.float32)                # (1,  hw)
    ninf = jnp.float32(-jnp.inf)

    # torch_dilation(o, 3): separable 3x3 max-pool, stride 1, -inf padding.
    op = padded(o, 1, ninf)
    row = o
    for dx in (-1, 1):
        sh = op[:, 1 + dx:1 + dx + hw]
        row = jnp.maximum(row, jnp.where(col_mask(dx), sh, jnp.full_like(o, ninf)))
    rp = padded(row, W, ninf)
    dil = row
    for dy in (-1, 1):
        dil = jnp.maximum(dil, rp[:, W + dy * W:W + dy * W + hw])

    # cat([dilate(o), x, o], dim=1)  ->  (cx + 2, hw)
    cat = jnp.concatenate([dil, x, o], axis=0)

    # ch_wv: Conv5x5 -> Conv5x5(+BN folded) -> Conv3x3
    h = conv(cat.astype(cdt), w1_ref, b1_ref, 5, 2, _identity)
    h = conv(h.astype(cdt),   w2_ref, b2_ref, 5, 2, _identity)
    h = conv(h.astype(cdt),   w3_ref, b3_ref, 3, 1, _identity)
    # ch_wq: Conv3x3(+BN folded) -> Conv1x1 -> Sigmoid
    h = conv(h.astype(cdt),   w4_ref, b4_ref, 3, 1, _identity)
    h = conv(h.astype(cdt),   w5_ref, b5_ref, 1, 0, _stable_sigmoid)

    out_ref[...] = h.astype(out_ref.dtype)            # (1, hw)


# ---------------------------------------------------------------------------
# Wrapper: parameter prep (BN fold, tap-major weights, bf16) + pallas_call
# ---------------------------------------------------------------------------
def _fold_bn(w, b, gamma, beta, mean, var, eps=1e-5):
    scale = gamma / jnp.sqrt(var + eps)
    return w * scale[:, None, None, None], b * scale + (beta - mean * scale)


def _to_taps(w):
    # (cout, cin, k, k) -> (k*k, cout, cin), tap t = kh*k + kw
    cout, cin, k, _ = w.shape
    return jnp.transpose(w, (2, 3, 0, 1)).reshape(k * k, cout, cin)


def morph_block_forward(params, x, o):
    """MorphBlock.forward(x, o) -> (N, 1, H, W) float32."""
    n, cx, h, w = x.shape
    assert o.shape == (n, 1, h, w)
    hw = h * w

    # Fold the two eval-mode BatchNorms into the preceding convolutions.
    w2, b2 = _fold_bn(params["w2"], params["b2"], *params["bn1"])
    w4, b4 = _fold_bn(params["w4"], params["b4"], *params["bn2"])

    def prep(wc, bc):
        return (_to_taps(wc).astype(jnp.bfloat16),
                bc.reshape(-1, 1).astype(jnp.float32))

    w1t, b1t = prep(params["w1"], params["b1"])
    w2t, b2t = prep(w2, b2)
    w3t, b3t = prep(params["w3"], params["b3"])
    w4t, b4t = prep(w4, b4)
    w5t, b5t = prep(params["w5"], params["b5"])

    xf = x.reshape(n, cx, hw).astype(jnp.bfloat16)
    of = o.reshape(n, 1, hw).astype(jnp.bfloat16)
    wcol = (jnp.arange(hw, dtype=jnp.int32) % w).reshape(1, hw)

    def full(shape):
        return pl.BlockSpec(shape, lambda i, _n=len(shape): (0,) * _n)

    out = pl.pallas_call(
        functools.partial(_morph_block_kernel, H=h, W=w),
        out_shape=jax.ShapeDtypeStruct((n, 1, hw), jnp.float32),
        grid=(n,),
        in_specs=[
            full((1, hw)),                                           # wcol
            pl.BlockSpec((pl.Squeezed(), cx, hw), lambda i: (i, 0, 0)),  # x
            pl.BlockSpec((pl.Squeezed(), 1, hw), lambda i: (i, 0, 0)),   # o
            full(w1t.shape), full(b1t.shape),
            full(w2t.shape), full(b2t.shape),
            full(w3t.shape), full(b3t.shape),
            full(w4t.shape), full(b4t.shape),
            full(w5t.shape), full(b5t.shape),
        ],
        out_specs=pl.BlockSpec((pl.Squeezed(), 1, hw), lambda i: (i, 0, 0)),
        compiler_params=pltpu.CompilerParams(
            dimension_semantics=("parallel",),       # megacore on v7x
            vmem_limit_bytes=32 * 1024 * 1024,
        ),
    )(wcol, xf, of, w1t, b1t, w2t, b2t, w3t, b3t, w4t, b4t, w5t, b5t)
    return out.reshape(n, 1, h, w)


# ---------------------------------------------------------------------------
# Parameter init (shapes exactly as in the PyTorch __init__, eval-mode BN)
# ---------------------------------------------------------------------------
def _init_conv(key, cout, cin, k):
    kw, kb = jax.random.split(key)
    fan_in = float(cin * k * k)
    wgt = jax.random.normal(kw, (cout, cin, k, k), jnp.float32) / (fan_in ** 0.5)
    b = 0.01 * jax.random.normal(kb, (cout,), jnp.float32)
    return wgt, b


def _bn_params(c):
    # PyTorch BatchNorm2d defaults (eval): gamma=1, beta=0, running mean=0, var=1
    return (jnp.ones((c,), jnp.float32), jnp.zeros((c,), jnp.float32),
            jnp.zeros((c,), jnp.float32), jnp.ones((c,), jnp.float32))


def init_morph_block(key, inp_ch, channel=8):
    ks = jax.random.split(key, 5)
    p = {}
    p["w1"], p["b1"] = _init_conv(ks[0], channel, inp_ch, 5)        # ch_wv[0]
    p["w2"], p["b2"] = _init_conv(ks[1], channel, channel, 5)       # ch_wv[1]
    p["bn1"] = _bn_params(channel)                                  # ch_wv[2]
    p["w3"], p["b3"] = _init_conv(ks[2], channel // 2, channel, 3)  # ch_wv[3]
    p["w4"], p["b4"] = _init_conv(ks[3], 8, channel // 2, 3)        # ch_wq[0]
    p["bn2"] = _bn_params(8)                                        # ch_wq[1]
    p["w5"], p["b5"] = _init_conv(ks[4], 1, 8, 1)                   # ch_wq[2]
    return p


# ---------------------------------------------------------------------------
if __name__ == "__main__":
    key = jax.random.PRNGKey(0)
    kx, ko, kp = jax.random.split(key, 3)

    N, CX, H, W = 2, 4, 16, 16
    x = jax.random.normal(kx, (N, CX, H, W), jnp.float32)
    o = jax.nn.sigmoid(jax.random.normal(ko, (N, 1, H, W), jnp.float32))
    # cat([dilate(o), x, o]) has CX + 2 channels -> MorphBlock(inp_ch=CX+2)
    params = init_morph_block(kp, inp_ch=CX + 2, channel=8)

    fwd = jax.jit(morph_block_forward)
    out = fwd(params, x, o)
    jax.block_until_ready(out)

    assert out.shape == (N, 1, H, W)
    assert bool(jnp.all(jnp.isfinite(out)))
    assert bool(jnp.all((out >= 0.0) & (out <= 1.0)))   # sigmoid range
    print("KERNEL_OK")
</pallas_src>

<mosaic_0001>
module attributes {stable_mosaic.version = 11 : i64} {
  func.func @_morph_block_kernel(%arg0: i32, %arg1: memref<1x256xi32, #tpu.memory_space<vmem>>, %arg2: memref<1x4x256xbf16, #tpu.memory_space<vmem>>, %arg3: memref<1x1x256xbf16, #tpu.memory_space<vmem>>, %arg4: memref<25x8x6xbf16, #tpu.memory_space<vmem>>, %arg5: memref<8x1xf32, #tpu.memory_space<vmem>>, %arg6: memref<25x8x8xbf16, #tpu.memory_space<vmem>>, %arg7: memref<8x1xf32, #tpu.memory_space<vmem>>, %arg8: memref<9x4x8xbf16, #tpu.memory_space<vmem>>, %arg9: memref<4x1xf32, #tpu.memory_space<vmem>>, %arg10: memref<9x8x4xbf16, #tpu.memory_space<vmem>>, %arg11: memref<8x1xf32, #tpu.memory_space<vmem>>, %arg12: memref<1x1x8xbf16, #tpu.memory_space<vmem>>, %arg13: memref<1x1xf32, #tpu.memory_space<vmem>>, %arg14: memref<1x1x256xf32, #tpu.memory_space<vmem>>) attributes {dimension_semantics = [#tpu.dimension_semantics<parallel>], iteration_bounds = array<i64: 2>, scalar_prefetch = 0 : i64, scratch_operands = 0 : i64, tpu.core_type = #tpu.core_type<tc>, window_params = [{pipeline_mode = #tpu.pipeline_mode<synchronous>, transform_indices = @transform_0, window_bounds = array<i64: 1, 256>}, {transform_indices = @transform_1, window_bounds = array<i64: 1, 4, 256>}, {transform_indices = @transform_2, window_bounds = array<i64: 1, 1, 256>}, {pipeline_mode = #tpu.pipeline_mode<synchronous>, transform_indices = @transform_3, window_bounds = array<i64: 25, 8, 6>}, {pipeline_mode = #tpu.pipeline_mode<synchronous>, transform_indices = @transform_4, window_bounds = array<i64: 8, 1>}, {pipeline_mode = #tpu.pipeline_mode<synchronous>, transform_indices = @transform_5, window_bounds = array<i64: 25, 8, 8>}, {pipeline_mode = #tpu.pipeline_mode<synchronous>, transform_indices = @transform_6, window_bounds = array<i64: 8, 1>}, {pipeline_mode = #tpu.pipeline_mode<synchronous>, transform_indices = @transform_7, window_bounds = array<i64: 9, 4, 8>}, {pipeline_mode = #tpu.pipeline_mode<synchronous>, transform_indices = @transform_8, window_bounds = array<i64: 4, 1>}, {pipeline_mode = #tpu.pipeline_mode<synchronous>, transform_indices = @transform_9, window_bounds = array<i64: 9, 8, 4>}, {pipeline_mode = #tpu.pipeline_mode<synchronous>, transform_indices = @transform_10, window_bounds = array<i64: 8, 1>}, {pipeline_mode = #tpu.pipeline_mode<synchronous>, transform_indices = @transform_11, window_bounds = array<i64: 1, 1, 8>}, {pipeline_mode = #tpu.pipeline_mode<synchronous>, transform_indices = @transform_12, window_bounds = array<i64: 1, 1>}, {transform_indices = @transform_13, window_bounds = array<i64: 1, 1, 256>}]} {
    %c0 = arith.constant 0 : index
    %c0_0 = arith.constant 0 : index
    %0 = vector.load %arg1[%c0, %c0_0] : memref<1x256xi32, #tpu.memory_space<vmem>>, vector<1x256xi32>
    %c0_1 = arith.constant 0 : index
    %c0_2 = arith.constant 0 : index
    %c0_3 = arith.constant 0 : index
    %1 = vector.load %arg2[%c0_1, %c0_2, %c0_3] : memref<1x4x256xbf16, #tpu.memory_space<vmem>>, vector<1x4x256xbf16>
    %2 = vector.shape_cast %1 : vector<1x4x256xbf16> to vector<4x256xbf16>
    %3 = arith.extf %2 : vector<4x256xbf16> to vector<4x256xf32>
    %c0_4 = arith.constant 0 : index
    %c0_5 = arith.constant 0 : index
    %c0_6 = arith.constant 0 : index
    %4 = vector.load %arg3[%c0_4, %c0_5, %c0_6] : memref<1x1x256xbf16, #tpu.memory_space<vmem>>, vector<1x1x256xbf16>
    %5 = vector.shape_cast %4 : vector<1x1x256xbf16> to vector<1x256xbf16>
    %6 = arith.extf %5 : vector<1x256xbf16> to vector<1x256xf32>
    %cst = arith.constant 0xFF800000 : f32
    %7 = vector.broadcast %cst : f32 to vector<1x1xf32>
    %8 = tpu.concatenate %7, %6, %7 in 1 : vector<1x1xf32>, vector<1x256xf32>, vector<1x1xf32> -> vector<1x258xf32>
    %9 = vector.extract_strided_slice %8 {offsets = [0, 0], sizes = [1, 256], strides = [1, 1]} : vector<1x258xf32> to vector<1x256xf32>
    %c-1_i32 = arith.constant -1 : i32
    %10 = vector.broadcast %c-1_i32 : i32 to vector<1x256xi32>
    %11 = arith.addi %0, %10 : vector<1x256xi32>
    %c0_i32 = arith.constant 0 : i32
    %12 = vector.broadcast %c0_i32 : i32 to vector<1x256xi32>
    %13 = arith.cmpi sge, %11, %12 : vector<1x256xi32>
    %c-1_i32_7 = arith.constant -1 : i32
    %14 = vector.broadcast %c-1_i32_7 : i32 to vector<1x256xi32>
    %15 = arith.addi %0, %14 : vector<1x256xi32>
    %c16_i32 = arith.constant 16 : i32
    %16 = vector.broadcast %c16_i32 : i32 to vector<1x256xi32>
    %17 = arith.cmpi slt, %15, %16 : vector<1x256xi32>
    %18 = arith.andi %13, %17 : vector<1x256xi1>
    %cst_8 = arith.constant 0xFF800000 : f32
    %19 = vector.broadcast %cst_8 : f32 to vector<1x256xf32>
    %20 = arith.select %18, %9, %19 : vector<1x256xi1>, vector<1x256xf32>
    %21 = arith.maximumf %6, %20 : vector<1x256xf32>
    %22 = vector.extract_strided_slice %8 {offsets = [0, 2], sizes = [1, 256], strides = [1, 1]} : vector<1x258xf32> to vector<1x256xf32>
    %c1_i32 = arith.constant 1 : i32
    %23 = vector.broadcast %c1_i32 : i32 to vector<1x256xi32>
    %24 = arith.addi %0, %23 : vector<1x256xi32>
    %c0_i32_9 = arith.constant 0 : i32
    %25 = vector.broadcast %c0_i32_9 : i32 to vector<1x256xi32>
    %26 = arith.cmpi sge, %24, %25 : vector<1x256xi32>
    %c1_i32_10 = arith.constant 1 : i32
    %27 = vector.broadcast %c1_i32_10 : i32 to vector<1x256xi32>
    %28 = arith.addi %0, %27 : vector<1x256xi32>
    %c16_i32_11 = arith.constant 16 : i32
    %29 = vector.broadcast %c16_i32_11 : i32 to vector<1x256xi32>
    %30 = arith.cmpi slt, %28, %29 : vector<1x256xi32>
    %31 = arith.andi %26, %30 : vector<1x256xi1>
    %cst_12 = arith.constant 0xFF800000 : f32
    %32 = vector.broadcast %cst_12 : f32 to vector<1x256xf32>
    %33 = arith.select %31, %22, %32 : vector<1x256xi1>, vector<1x256xf32>
    %34 = arith.maximumf %21, %33 : vector<1x256xf32>
    %cst_13 = arith.constant 0xFF800000 : f32
    %35 = vector.broadcast %cst_13 : f32 to vector<1x16xf32>
    %36 = tpu.concatenate %35, %34, %35 in 1 : vector<1x16xf32>, vector<1x256xf32>, vector<1x16xf32> -> vector<1x288xf32>
    %37 = vector.extract_strided_slice %36 {offsets = [0, 0], sizes = [1, 256], strides = [1, 1]} : vector<1x288xf32> to vector<1x256xf32>
    %38 = arith.maximumf %34, %37 : vector<1x256xf32>
    %39 = vector.extract_strided_slice %36 {offsets = [0, 32], sizes = [1, 256], strides = [1, 1]} : vector<1x288xf32> to vector<1x256xf32>
    %40 = arith.maximumf %38, %39 : vector<1x256xf32>
    %41 = tpu.concatenate %40, %3, %6 in 0 : vector<1x256xf32>, vector<4x256xf32>, vector<1x256xf32> -> vector<6x256xf32>
    %42 = arith.truncf %41 : vector<6x256xf32> to vector<6x256xbf16>
    %cst_14 = arith.constant 0.000000e+00 : bf16
    %43 = vector.broadcast %cst_14 : bf16 to vector<6x34xbf16>
    %44 = tpu.concatenate %43, %42, %43 in 1 : vector<6x34xbf16>, vector<6x256xbf16>, vector<6x34xbf16> -> vector<6x324xbf16>
    %cst_15 = arith.constant 0.000000e+00 : f32
    %45 = vector.broadcast %cst_15 : f32 to vector<8x256xf32>
    %46 = vector.extract_strided_slice %44 {offsets = [0, 0], sizes = [6, 256], strides = [1, 1]} : vector<6x324xbf16> to vector<6x256xbf16>
    %c-2_i32 = arith.constant -2 : i32
    %47 = vector.broadcast %c-2_i32 : i32 to vector<1x256xi32>
    %48 = arith.addi %0, %47 : vector<1x256xi32>
    %c0_i32_16 = arith.constant 0 : i32
    %49 = vector.broadcast %c0_i32_16 : i32 to vector<1x256xi32>
    %50 = arith.cmpi sge, %48, %49 : vector<1x256xi32>
    %c-2_i32_17 = arith.constant -2 : i32
    %51 = vector.broadcast %c-2_i32_17 : i32 to vector<1x256xi32>
    %52 = arith.addi %0, %51 : vector<1x256xi32>
    %c16_i32_18 = arith.constant 16 : i32
    %53 = vector.broadcast %c16_i32_18 : i32 to vector<1x256xi32>
    %54 = arith.cmpi slt, %52, %53 : vector<1x256xi32>
    %55 = arith.andi %50, %54 : vector<1x256xi1>
    %cst_19 = arith.constant 0.000000e+00 : bf16
    %56 = vector.broadcast %cst_19 : bf16 to vector<6x256xbf16>
    %57 = vector.shape_cast %55 : vector<1x256xi1> to vector<1x256xi1>
    %58 = vector.broadcast %57 : vector<1x256xi1> to vector<6x256xi1>
    %59 = arith.select %58, %46, %56 : vector<6x256xi1>, vector<6x256xbf16>
    %c0_20 = arith.constant 0 : index
    %c0_21 = arith.constant 0 : index
    %c0_22 = arith.constant 0 : index
    %60 = vector.load %arg4[%c0_20, %c0_21, %c0_22] : memref<25x8x6xbf16, #tpu.memory_space<vmem>>, vector<1x8x6xbf16>
    %61 = vector.shape_cast %60 : vector<1x8x6xbf16> to vector<8x6xbf16>
    %cst_23 = arith.constant dense<0.000000e+00> : vector<8x256xf32>
    %62 = tpu.matmul %61, %59, %cst_23 {dimension_numbers = #tpu.dot_dimension_numbers<[1], [0], [0], [1], [0, 0, 1, 1], [], []>} : vector<8x6xbf16>, vector<6x256xbf16>, vector<8x256xf32> -> vector<8x256xf32>
    %63 = arith.addf %45, %62 : vector<8x256xf32>
    %64 = vector.extract_strided_slice %44 {offsets = [0, 1], sizes = [6, 256], strides = [1, 1]} : vector<6x324xbf16> to vector<6x256xbf16>
    %c-1_i32_24 = arith.constant -1 : i32
    %65 = vector.broadcast %c-1_i32_24 : i32 to vector<1x256xi32>
    %66 = arith.addi %0, %65 : vector<1x256xi32>
    %c0_i32_25 = arith.constant 0 : i32
    %67 = vector.broadcast %c0_i32_25 : i32 to vector<1x256xi32>
    %68 = arith.cmpi sge, %66, %67 : vector<1x256xi32>
    %c-1_i32_26 = arith.constant -1 : i32
    %69 = vector.broadcast %c-1_i32_26 : i32 to vector<1x256xi32>
    %70 = arith.addi %0, %69 : vector<1x256xi32>
    %c16_i32_27 = arith.constant 16 : i32
    %71 = vector.broadcast %c16_i32_27 : i32 to vector<1x256xi32>
    %72 = arith.cmpi slt, %70, %71 : vector<1x256xi32>
    %73 = arith.andi %68, %72 : vector<1x256xi1>
    %cst_28 = arith.constant 0.000000e+00 : bf16
    %74 = vector.broadcast %cst_28 : bf16 to vector<6x256xbf16>
    %75 = vector.shape_cast %73 : vector<1x256xi1> to vector<1x256xi1>
    %76 = vector.broadcast %75 : vector<1x256xi1> to vector<6x256xi1>
    %77 = arith.select %76, %64, %74 : vector<6x256xi1>, vector<6x256xbf16>
    %c1 = arith.constant 1 : index
    %c0_29 = arith.constant 0 : index
    %c0_30 = arith.constant 0 : index
    %78 = vector.load %arg4[%c1, %c0_29, %c0_30] : memref<25x8x6xbf16, #tpu.memory_space<vmem>>, vector<1x8x6xbf16>
    %79 = vector.shape_cast %78 : vector<1x8x6xbf16> to vector<8x6xbf16>
    %cst_31 = arith.constant dense<0.000000e+00> : vector<8x256xf32>
    %80 = tpu.matmul %79, %77, %cst_31 {dimension_numbers = #tpu.dot_dimension_numbers<[1], [0], [0], [1], [0, 0, 1, 1], [], []>} : vector<8x6xbf16>, vector<6x256xbf16>, vector<8x256xf32> -> vector<8x256xf32>
    %81 = arith.addf %63, %80 : vector<8x256xf32>
    %82 = vector.extract_strided_slice %44 {offsets = [0, 2], sizes = [6, 256], strides = [1, 1]} : vector<6x324xbf16> to vector<6x256xbf16>
    %c2 = arith.constant 2 : index
    %c0_32 = arith.constant 0 : index
    %c0_33 = arith.constant 0 : index
    %83 = vector.load %arg4[%c2, %c0_32, %c0_33] : memref<25x8x6xbf16, #tpu.memory_space<vmem>>, vector<1x8x6xbf16>
    %84 = vector.shape_cast %83 : vector<1x8x6xbf16> to vector<8x6xbf16>
    %cst_34 = arith.constant dense<0.000000e+00> : vector<8x256xf32>
    %85 = tpu.matmul %84, %82, %cst_34 {dimension_numbers = #tpu.dot_dimension_numbers<[1], [0], [0], [1], [0, 0, 1, 1], [], []>} : vector<8x6xbf16>, vector<6x256xbf16>, vector<8x256xf32> -> vector<8x256xf32>
    %86 = arith.addf %81, %85 : vector<8x256xf32>
    %87 = vector.extract_strided_slice %44 {offsets = [0, 3], sizes = [6, 256], strides = [1, 1]} : vector<6x324xbf16> to vector<6x256xbf16>
    %c1_i32_35 = arith.constant 1 : i32
    %88 = vector.broadcast %c1_i32_35 : i32 to vector<1x256xi32>
    %89 = arith.addi %0, %88 : vector<1x256xi32>
    %c0_i32_36 = arith.constant 0 : i32
    %90 = vector.broadcast %c0_i32_36 : i32 to vector<1x256xi32>
    %91 = arith.cmpi sge, %89, %90 : vector<1x256xi32>
    %c1_i32_37 = arith.constant 1 : i32
    %92 = vector.broadcast %c1_i32_37 : i32 to vector<1x256xi32>
    %93 = arith.addi %0, %92 : vector<1x256xi32>
    %c16_i32_38 = arith.constant 16 : i32
    %94 = vector.broadcast %c16_i32_38 : i32 to vector<1x256xi32>
    %95 = arith.cmpi slt, %93, %94 : vector<1x256xi32>
    %96 = arith.andi %91, %95 : vector<1x256xi1>
    %cst_39 = arith.constant 0.000000e+00 : bf16
    %97 = vector.broadcast %cst_39 : bf16 to vector<6x256xbf16>
    %98 = vector.shape_cast %96 : vector<1x256xi1> to vector<1x256xi1>
    %99 = vector.broadcast %98 : vector<1x256xi1> to vector<6x256xi1>
    %100 = arith.select %99, %87, %97 : vector<6x256xi1>, vector<6x256xbf16>
    %c3 = arith.constant 3 : index
    %c0_40 = arith.constant 0 : index
    %c0_41 = arith.constant 0 : index
    %101 = vector.load %arg4[%c3, %c0_40, %c0_41] : memref<25x8x6xbf16, #tpu.memory_space<vmem>>, vector<1x8x6xbf16>
    %102 = vector.shape_cast %101 : vector<1x8x6xbf16> to vector<8x6xbf16>
    %cst_42 = arith.constant dense<0.000000e+00> : vector<8x256xf32>
    %103 = tpu.matmul %102, %100, %cst_42 {dimension_numbers = #tpu.dot_dimension_numbers<[1], [0], [0], [1], [0, 0, 1, 1], [], []>} : vector<8x6xbf16>, vector<6x256xbf16>, vector<8x256xf32> -> vector<8x256xf32>
    %104 = arith.addf %86, %103 : vector<8x256xf32>
    %105 = vector.extract_strided_slice %44 {offsets = [0, 4], sizes = [6, 256], strides = [1, 1]} : vector<6x324xbf16> to vector<6x256xbf16>
    %c2_i32 = arith.constant 2 : i32
    %106 = vector.broadcast %c2_i32 : i32 to vector<1x256xi32>
    %107 = arith.addi %0, %106 : vector<1x256xi32>
    %c0_i32_43 = arith.constant 0 : i32
    %108 = vector.broadcast %c0_i32_43 : i32 to vector<1x256xi32>
    %109 = arith.cmpi sge, %107, %108 : vector<1x256xi32>
    %c2_i32_44 = arith.constant 2 : i32
    %110 = vector.broadcast %c2_i32_44 : i32 to vector<1x256xi32>
    %111 = arith.addi %0, %110 : vector<1x256xi32>
    %c16_i32_45 = arith.constant 16 : i32
    %112 = vector.broadcast %c16_i32_45 : i32 to vector<1x256xi32>
    %113 = arith.cmpi slt, %111, %112 : vector<1x256xi32>
    %114 = arith.andi %109, %113 : vector<1x256xi1>
    %cst_46 = arith.constant 0.000000e+00 : bf16
    %115 = vector.broadcast %cst_46 : bf16 to vector<6x256xbf16>
    %116 = vector.shape_cast %114 : vector<1x256xi1> to vector<1x256xi1>
    %117 = vector.broadcast %116 : vector<1x256xi1> to vector<6x256xi1>
    %118 = arith.select %117, %105, %115 : vector<6x256xi1>, vector<6x256xbf16>
    %c4 = arith.constant 4 : index
    %c0_47 = arith.constant 0 : index
    %c0_48 = arith.constant 0 : index
    %119 = vector.load %arg4[%c4, %c0_47, %c0_48] : memref<25x8x6xbf16, #tpu.memory_space<vmem>>, vector<1x8x6xbf16>
    %120 = vector.shape_cast %119 : vector<1x8x6xbf16> to vector<8x6xbf16>
    %cst_49 = arith.constant dense<0.000000e+00> : vector<8x256xf32>
    %121 = tpu.matmul %120, %118, %cst_49 {dimension_numbers = #tpu.dot_dimension_numbers<[1], [0], [0], [1], [0, 0, 1, 1], [], []>} : vector<8x6xbf16>, vector<6x256xbf16>, vector<8x256xf32> -> vector<8x256xf32>
    %122 = arith.addf %104, %121 : vector<8x256xf32>
    %123 = vector.extract_strided_slice %44 {offsets = [0, 16], sizes = [6, 256], strides = [1, 1]} : vector<6x324xbf16> to vector<6x256xbf16>
    %c-2_i32_50 = arith.constant -2 : i32
    %124 = vector.broadcast %c-2_i32_50 : i32 to vector<1x256xi32>
    %125 = arith.addi %0, %124 : vector<1x256xi32>
    %c0_i32_51 = arith.constant 0 : i32
    %126 = vector.broadcast %c0_i32_51 : i32 to vector<1x256xi32>
    %127 = arith.cmpi sge, %125, %126 : vector<1x256xi32>
    %c-2_i32_52 = arith.constant -2 : i32
    %128 = vector.broadcast %c-2_i32_52 : i32 to vector<1x256xi32>
    %129 = arith.addi %0, %128 : vector<1x256xi32>
    %c16_i32_53 = arith.constant 16 : i32
    %130 = vector.broadcast %c16_i32_53 : i32 to vector<1x256xi32>
    %131 = arith.cmpi slt, %129, %130 : vector<1x256xi32>
    %132 = arith.andi %127, %131 : vector<1x256xi1>
    %cst_54 = arith.constant 0.000000e+00 : bf16
    %133 = vector.broadcast %cst_54 : bf16 to vector<6x256xbf16>
    %134 = vector.shape_cast %132 : vector<1x256xi1> to vector<1x256xi1>
    %135 = vector.broadcast %134 : vector<1x256xi1> to vector<6x256xi1>
    %136 = arith.select %135, %123, %133 : vector<6x256xi1>, vector<6x256xbf16>
    %c5 = arith.constant 5 : index
    %c0_55 = arith.constant 0 : index
    %c0_56 = arith.constant 0 : index
    %137 = vector.load %arg4[%c5, %c0_55, %c0_56] : memref<25x8x6xbf16, #tpu.memory_space<vmem>>, vector<1x8x6xbf16>
    %138 = vector.shape_cast %137 : vector<1x8x6xbf16> to vector<8x6xbf16>
    %cst_57 = arith.constant dense<0.000000e+00> : vector<8x256xf32>
    %139 = tpu.matmul %138, %136, %cst_57 {dimension_numbers = #tpu.dot_dimension_numbers<[1], [0], [0], [1], [0, 0, 1, 1], [], []>} : vector<8x6xbf16>, vector<6x256xbf16>, vector<8x256xf32> -> vector<8x256xf32>
    %140 = arith.addf %122, %139 : vector<8x256xf32>
    %141 = vector.extract_strided_slice %44 {offsets = [0, 17], sizes = [6, 256], strides = [1, 1]} : vector<6x324xbf16> to vector<6x256xbf16>
    %c-1_i32_58 = arith.constant -1 : i32
    %142 = vector.broadcast %c-1_i32_58 : i32 to vector<1x256xi32>
    %143 = arith.addi %0, %142 : vector<1x256xi32>
    %c0_i32_59 = arith.constant 0 : i32
    %144 = vector.broadcast %c0_i32_59 : i32 to vector<1x256xi32>
    %145 = arith.cmpi sge, %143, %144 : vector<1x256xi32>
    %c-1_i32_60 = arith.constant -1 : i32
    %146 = vector.broadcast %c-1_i32_60 : i32 to vector<1x256xi32>
    %147 = arith.addi %0, %146 : vector<1x256xi32>
    %c16_i32_61 = arith.constant 16 : i32
    %148 = vector.broadcast %c16_i32_61 : i32 to vector<1x256xi32>
    %149 = arith.cmpi slt, %147, %148 : vector<1x256xi32>
    %150 = arith.andi %145, %149 : vector<1x256xi1>
    %cst_62 = arith.constant 0.000000e+00 : bf16
    %151 = vector.broadcast %cst_62 : bf16 to vector<6x256xbf16>
    %152 = vector.shape_cast %150 : vector<1x256xi1> to vector<1x256xi1>
    %153 = vector.broadcast %152 : vector<1x256xi1> to vector<6x256xi1>
    %154 = arith.select %153, %141, %151 : vector<6x256xi1>, vector<6x256xbf16>
    %c6 = arith.constant 6 : index
    %c0_63 = arith.constant 0 : index
    %c0_64 = arith.constant 0 : index
    %155 = vector.load %arg4[%c6, %c0_63, %c0_64] : memref<25x8x6xbf16, #tpu.memory_space<vmem>>, vector<1x8x6xbf16>
    %156 = vector.shape_cast %155 : vector<1x8x6xbf16> to vector<8x6xbf16>
    %cst_65 = arith.constant dense<0.000000e+00> : vector<8x256xf32>
    %157 = tpu.matmul %156, %154, %cst_65 {dimension_numbers = #tpu.dot_dimension_numbers<[1], [0], [0], [1], [0, 0, 1, 1], [], []>} : vector<8x6xbf16>, vector<6x256xbf16>, vector<8x256xf32> -> vector<8x256xf32>
    %158 = arith.addf %140, %157 : vector<8x256xf32>
    %159 = vector.extract_strided_slice %44 {offsets = [0, 18], sizes = [6, 256], strides = [1, 1]} : vector<6x324xbf16> to vector<6x256xbf16>
    %c7 = arith.constant 7 : index
    %c0_66 = arith.constant 0 : index
    %c0_67 = arith.constant 0 : index
    %160 = vector.load %arg4[%c7, %c0_66, %c0_67] : memref<25x8x6xbf16, #tpu.memory_space<vmem>>, vector<1x8x6xbf16>
    %161 = vector.shape_cast %160 : vector<1x8x6xbf16> to vector<8x6xbf16>
    %cst_68 = arith.constant dense<0.000000e+00> : vector<8x256xf32>
    %162 = tpu.matmul %161, %159, %cst_68 {dimension_numbers = #tpu.dot_dimension_numbers<[1], [0], [0], [1], [0, 0, 1, 1], [], []>} : vector<8x6xbf16>, vector<6x256xbf16>, vector<8x256xf32> -> vector<8x256xf32>
    %163 = arith.addf %158, %162 : vector<8x256xf32>
    %164 = vector.extract_strided_slice %44 {offsets = [0, 19], sizes = [6, 256], strides = [1, 1]} : vector<6x324xbf16> to vector<6x256xbf16>
    %c1_i32_69 = arith.constant 1 : i32
    %165 = vector.broadcast %c1_i32_69 : i32 to vector<1x256xi32>
    %166 = arith.addi %0, %165 : vector<1x256xi32>
    %c0_i32_70 = arith.constant 0 : i32
    %167 = vector.broadcast %c0_i32_70 : i32 to vector<1x256xi32>
    %168 = arith.cmpi sge, %166, %167 : vector<1x256xi32>
    %c1_i32_71 = arith.constant 1 : i32
    %169 = vector.broadcast %c1_i32_71 : i32 to vector<1x256xi32>
    %170 = arith.addi %0, %169 : vector<1x256xi32>
    %c16_i32_72 = arith.constant 16 : i32
    %171 = vector.broadcast %c16_i32_72 : i32 to vector<1x256xi32>
    %172 = arith.cmpi slt, %170, %171 : vector<1x256xi32>
    %173 = arith.andi %168, %172 : vector<1x256xi1>
    %cst_73 = arith.constant 0.000000e+00 : bf16
    %174 = vector.broadcast %cst_73 : bf16 to vector<6x256xbf16>
    %175 = vector.shape_cast %173 : vector<1x256xi1> to vector<1x256xi1>
    %176 = vector.broadcast %175 : vector<1x256xi1> to vector<6x256xi1>
    %177 = arith.select %176, %164, %174 : vector<6x256xi1>, vector<6x256xbf16>
    %c8 = arith.constant 8 : index
    %c0_74 = arith.constant 0 : index
    %c0_75 = arith.constant 0 : index
    %178 = vector.load %arg4[%c8, %c0_74, %c0_75] : memref<25x8x6xbf16, #tpu.memory_space<vmem>>, vector<1x8x6xbf16>
    %179 = vector.shape_cast %178 : vector<1x8x6xbf16> to vector<8x6xbf16>
    %cst_76 = arith.constant dense<0.000000e+00> : vector<8x256xf32>
    %180 = tpu.matmul %179, %177, %cst_76 {dimension_numbers = #tpu.dot_dimension_numbers<[1], [0], [0], [1], [0, 0, 1, 1], [], []>} : vector<8x6xbf16>, vector<6x256xbf16>, vector<8x256xf32> -> vector<8x256xf32>
    %181 = arith.addf %163, %180 : vector<8x256xf32>
    %182 = vector.extract_strided_slice %44 {offsets = [0, 20], sizes = [6, 256], strides = [1, 1]} : vector<6x324xbf16> to vector<6x256xbf16>
    %c2_i32_77 = arith.constant 2 : i32
    %183 = vector.broadcast %c2_i32_77 : i32 to vector<1x256xi32>
    %184 = arith.addi %0, %183 : vector<1x256xi32>
    %c0_i32_78 = arith.constant 0 : i32
    %185 = vector.broadcast %c0_i32_78 : i32 to vector<1x256xi32>
    %186 = arith.cmpi sge, %184, %185 : vector<1x256xi32>
    %c2_i32_79 = arith.constant 2 : i32
    %187 = vector.broadcast %c2_i32_79 : i32 to vector<1x256xi32>
    %188 = arith.addi %0, %187 : vector<1x256xi32>
    %c16_i32_80 = arith.constant 16 : i32
    %189 = vector.broadcast %c16_i32_80 : i32 to vector<1x256xi32>
    %190 = arith.cmpi slt, %188, %189 : vector<1x256xi32>
    %191 = arith.andi %186, %190 : vector<1x256xi1>
    %cst_81 = arith.constant 0.000000e+00 : bf16
    %192 = vector.broadcast %cst_81 : bf16 to vector<6x256xbf16>
    %193 = vector.shape_cast %191 : vector<1x256xi1> to vector<1x256xi1>
    %194 = vector.broadcast %193 : vector<1x256xi1> to vector<6x256xi1>
    %195 = arith.select %194, %182, %192 : vector<6x256xi1>, vector<6x256xbf16>
    %c9 = arith.constant 9 : index
    %c0_82 = arith.constant 0 : index
    %c0_83 = arith.constant 0 : index
    %196 = vector.load %arg4[%c9, %c0_82, %c0_83] : memref<25x8x6xbf16, #tpu.memory_space<vmem>>, vector<1x8x6xbf16>
    %197 = vector.shape_cast %196 : vector<1x8x6xbf16> to vector<8x6xbf16>
    %cst_84 = arith.constant dense<0.000000e+00> : vector<8x256xf32>
    %198 = tpu.matmul %197, %195, %cst_84 {dimension_numbers = #tpu.dot_dimension_numbers<[1], [0], [0], [1], [0, 0, 1, 1], [], []>} : vector<8x6xbf16>, vector<6x256xbf16>, vector<8x256xf32> -> vector<8x256xf32>
    %199 = arith.addf %181, %198 : vector<8x256xf32>
    %200 = vector.extract_strided_slice %44 {offsets = [0, 32], sizes = [6, 256], strides = [1, 1]} : vector<6x324xbf16> to vector<6x256xbf16>
    %c-2_i32_85 = arith.constant -2 : i32
    %201 = vector.broadcast %c-2_i32_85 : i32 to vector<1x256xi32>
    %202 = arith.addi %0, %201 : vector<1x256xi32>
    %c0_i32_86 = arith.constant 0 : i32
    %203 = vector.broadcast %c0_i32_86 : i32 to vector<1x256xi32>
    %204 = arith.cmpi sge, %202, %203 : vector<1x256xi32>
    %c-2_i32_87 = arith.constant -2 : i32
    %205 = vector.broadcast %c-2_i32_87 : i32 to vector<1x256xi32>
    %206 = arith.addi %0, %205 : vector<1x256xi32>
    %c16_i32_88 = arith.constant 16 : i32
    %207 = vector.broadcast %c16_i32_88 : i32 to vector<1x256xi32>
    %208 = arith.cmpi slt, %206, %207 : vector<1x256xi32>
    %209 = arith.andi %204, %208 : vector<1x256xi1>
    %cst_89 = arith.constant 0.000000e+00 : bf16
    %210 = vector.broadcast %cst_89 : bf16 to vector<6x256xbf16>
    %211 = vector.shape_cast %209 : vector<1x256xi1> to vector<1x256xi1>
    %212 = vector.broadcast %211 : vector<1x256xi1> to vector<6x256xi1>
    %213 = arith.select %212, %200, %210 : vector<6x256xi1>, vector<6x256xbf16>
    %c10 = arith.constant 10 : index
    %c0_90 = arith.constant 0 : index
    %c0_91 = arith.constant 0 : index
    %214 = vector.load %arg4[%c10, %c0_90, %c0_91] : memref<25x8x6xbf16, #tpu.memory_space<vmem>>, vector<1x8x6xbf16>
    %215 = vector.shape_cast %214 : vector<1x8x6xbf16> to vector<8x6xbf16>
    %cst_92 = arith.constant dense<0.000000e+00> : vector<8x256xf32>
    %216 = tpu.matmul %215, %213, %cst_92 {dimension_numbers = #tpu.dot_dimension_numbers<[1], [0], [0], [1], [0, 0, 1, 1], [], []>} : vector<8x6xbf16>, vector<6x256xbf16>, vector<8x256xf32> -> vector<8x256xf32>
    %217 = arith.addf %199, %216 : vector<8x256xf32>
    %218 = vector.extract_strided_slice %44 {offsets = [0, 33], sizes = [6, 256], strides = [1, 1]} : vector<6x324xbf16> to vector<6x256xbf16>
    %c-1_i32_93 = arith.constant -1 : i32
    %219 = vector.broadcast %c-1_i32_93 : i32 to vector<1x256xi32>
    %220 = arith.addi %0, %219 : vector<1x256xi32>
    %c0_i32_94 = arith.constant 0 : i32
    %221 = vector.broadcast %c0_i32_94 : i32 to vector<1x256xi32>
    %222 = arith.cmpi sge, %220, %221 : vector<1x256xi32>
    %c-1_i32_95 = arith.constant -1 : i32
    %223 = vector.broadcast %c-1_i32_95 : i32 to vector<1x256xi32>
    %224 = arith.addi %0, %223 : vector<1x256xi32>
    %c16_i32_96 = arith.constant 16 : i32
    %225 = vector.broadcast %c16_i32_96 : i32 to vector<1x256xi32>
    %226 = arith.cmpi slt, %224, %225 : vector<1x256xi32>
    %227 = arith.andi %222, %226 : vector<1x256xi1>
    %cst_97 = arith.constant 0.000000e+00 : bf16
    %228 = vector.broadcast %cst_97 : bf16 to vector<6x256xbf16>
    %229 = vector.shape_cast %227 : vector<1x256xi1> to vector<1x256xi1>
    %230 = vector.broadcast %229 : vector<1x256xi1> to vector<6x256xi1>
    %231 = arith.select %230, %218, %228 : vector<6x256xi1>, vector<6x256xbf16>
    %c11 = arith.constant 11 : index
    %c0_98 = arith.constant 0 : index
    %c0_99 = arith.constant 0 : index
    %232 = vector.load %arg4[%c11, %c0_98, %c0_99] : memref<25x8x6xbf16, #tpu.memory_space<vmem>>, vector<1x8x6xbf16>
    %233 = vector.shape_cast %232 : vector<1x8x6xbf16> to vector<8x6xbf16>
    %cst_100 = arith.constant dense<0.000000e+00> : vector<8x256xf32>
    %234 = tpu.matmul %233, %231, %cst_100 {dimension_numbers = #tpu.dot_dimension_numbers<[1], [0], [0], [1], [0, 0, 1, 1], [], []>} : vector<8x6xbf16>, vector<6x256xbf16>, vector<8x256xf32> -> vector<8x256xf32>
    %235 = arith.addf %217, %234 : vector<8x256xf32>
    %236 = vector.extract_strided_slice %44 {offsets = [0, 34], sizes = [6, 256], strides = [1, 1]} : vector<6x324xbf16> to vector<6x256xbf16>
    %c12 = arith.constant 12 : index
    %c0_101 = arith.constant 0 : index
    %c0_102 = arith.constant 0 : index
    %237 = vector.load %arg4[%c12, %c0_101, %c0_102] : memref<25x8x6xbf16, #tpu.memory_space<vmem>>, vector<1x8x6xbf16>
    %238 = vector.shape_cast %237 : vector<1x8x6xbf16> to vector<8x6xbf16>
    %cst_103 = arith.constant dense<0.000000e+00> : vector<8x256xf32>
    %239 = tpu.matmul %238, %236, %cst_103 {dimension_numbers = #tpu.dot_dimension_numbers<[1], [0], [0], [1], [0, 0, 1, 1], [], []>} : vector<8x6xbf16>, vector<6x256xbf16>, vector<8x256xf32> -> vector<8x256xf32>
    %240 = arith.addf %235, %239 : vector<8x256xf32>
    %241 = vector.extract_strided_slice %44 {offsets = [0, 35], sizes = [6, 256], strides = [1, 1]} : vector<6x324xbf16> to vector<6x256xbf16>
    %c1_i32_104 = arith.constant 1 : i32
    %242 = vector.broadcast %c1_i32_104 : i32 to vector<1x256xi32>
    %243 = arith.addi %0, %242 : vector<1x256xi32>
    %c0_i32_105 = arith.constant 0 : i32
    %244 = vector.broadcast %c0_i32_105 : i32 to vector<1x256xi32>
    %245 = arith.cmpi sge, %243, %244 : vector<1x256xi32>
    %c1_i32_106 = arith.constant 1 : i32
    %246 = vector.broadcast %c1_i32_106 : i32 to vector<1x256xi32>
    %247 = arith.addi %0, %246 : vector<1x256xi32>
    %c16_i32_107 = arith.constant 16 : i32
    %248 = vector.broadcast %c16_i32_107 : i32 to vector<1x256xi32>
    %249 = arith.cmpi slt, %247, %248 : vector<1x256xi32>
    %250 = arith.andi %245, %249 : vector<1x256xi1>
    %cst_108 = arith.constant 0.000000e+00 : bf16
    %251 = vector.broadcast %cst_108 : bf16 to vector<6x256xbf16>
    %252 = vector.shape_cast %250 : vector<1x256xi1> to vector<1x256xi1>
    %253 = vector.broadcast %252 : vector<1x256xi1> to vector<6x256xi1>
    %254 = arith.select %253, %241, %251 : vector<6x256xi1>, vector<6x256xbf16>
    %c13 = arith.constant 13 : index
    %c0_109 = arith.constant 0 : index
    %c0_110 = arith.constant 0 : index
    %255 = vector.load %arg4[%c13, %c0_109, %c0_110] : memref<25x8x6xbf16, #tpu.memory_space<vmem>>, vector<1x8x6xbf16>
    %256 = vector.shape_cast %255 : vector<1x8x6xbf16> to vector<8x6xbf16>
    %cst_111 = arith.constant dense<0.000000e+00> : vector<8x256xf32>
    %257 = tpu.matmul %256, %254, %cst_111 {dimension_numbers = #tpu.dot_dimension_numbers<[1], [0], [0], [1], [0, 0, 1, 1], [], []>} : vector<8x6xbf16>, vector<6x256xbf16>, vector<8x256xf32> -> vector<8x256xf32>
    %258 = arith.addf %240, %257 : vector<8x256xf32>
    %259 = vector.extract_strided_slice %44 {offsets = [0, 36], sizes = [6, 256], strides = [1, 1]} : vector<6x324xbf16> to vector<6x256xbf16>
    %c2_i32_112 = arith.constant 2 : i32
    %260 = vector.broadcast %c2_i32_112 : i32 to vector<1x256xi32>
    %261 = arith.addi %0, %260 : vector<1x256xi32>
    %c0_i32_113 = arith.constant 0 : i32
    %262 = vector.broadcast %c0_i32_113 : i32 to vector<1x256xi32>
    %263 = arith.cmpi sge, %261, %262 : vector<1x256xi32>
    %c2_i32_114 = arith.constant 2 : i32
    %264 = vector.broadcast %c2_i32_114 : i32 to vector<1x256xi32>
    %265 = arith.addi %0, %264 : vector<1x256xi32>
    %c16_i32_115 = arith.constant 16 : i32
    %266 = vector.broadcast %c16_i32_115 : i32 to vector<1x256xi32>
    %267 = arith.cmpi slt, %265, %266 : vector<1x256xi32>
    %268 = arith.andi %263, %267 : vector<1x256xi1>
    %cst_116 = arith.constant 0.000000e+00 : bf16
    %269 = vector.broadcast %cst_116 : bf16 to vector<6x256xbf16>
    %270 = vector.shape_cast %268 : vector<1x256xi1> to vector<1x256xi1>
    %271 = vector.broadcast %270 : vector<1x256xi1> to vector<6x256xi1>
    %272 = arith.select %271, %259, %269 : vector<6x256xi1>, vector<6x256xbf16>
    %c14 = arith.constant 14 : index
    %c0_117 = arith.constant 0 : index
    %c0_118 = arith.constant 0 : index
    %273 = vector.load %arg4[%c14, %c0_117, %c0_118] : memref<25x8x6xbf16, #tpu.memory_space<vmem>>, vector<1x8x6xbf16>
    %274 = vector.shape_cast %273 : vector<1x8x6xbf16> to vector<8x6xbf16>
    %cst_119 = arith.constant dense<0.000000e+00> : vector<8x256xf32>
    %275 = tpu.matmul %274, %272, %cst_119 {dimension_numbers = #tpu.dot_dimension_numbers<[1], [0], [0], [1], [0, 0, 1, 1], [], []>} : vector<8x6xbf16>, vector<6x256xbf16>, vector<8x256xf32> -> vector<8x256xf32>
    %276 = arith.addf %258, %275 : vector<8x256xf32>
    %277 = vector.extract_strided_slice %44 {offsets = [0, 48], sizes = [6, 256], strides = [1, 1]} : vector<6x324xbf16> to vector<6x256xbf16>
    %c-2_i32_120 = arith.constant -2 : i32
    %278 = vector.broadcast %c-2_i32_120 : i32 to vector<1x256xi32>
    %279 = arith.addi %0, %278 : vector<1x256xi32>
    %c0_i32_121 = arith.constant 0 : i32
    %280 = vector.broadcast %c0_i32_121 : i32 to vector<1x256xi32>
    %281 = arith.cmpi sge, %279, %280 : vector<1x256xi32>
    %c-2_i32_122 = arith.constant -2 : i32
    %282 = vector.broadcast %c-2_i32_122 : i32 to vector<1x256xi32>
    %283 = arith.addi %0, %282 : vector<1x256xi32>
    %c16_i32_123 = arith.constant 16 : i32
    %284 = vector.broadcast %c16_i32_123 : i32 to vector<1x256xi32>
    %285 = arith.cmpi slt, %283, %284 : vector<1x256xi32>
    %286 = arith.andi %281, %285 : vector<1x256xi1>
    %cst_124 = arith.constant 0.000000e+00 : bf16
    %287 = vector.broadcast %cst_124 : bf16 to vector<6x256xbf16>
    %288 = vector.shape_cast %286 : vector<1x256xi1> to vector<1x256xi1>
    %289 = vector.broadcast %288 : vector<1x256xi1> to vector<6x256xi1>
    %290 = arith.select %289, %277, %287 : vector<6x256xi1>, vector<6x256xbf16>
    %c15 = arith.constant 15 : index
    %c0_125 = arith.constant 0 : index
    %c0_126 = arith.constant 0 : index
    %291 = vector.load %arg4[%c15, %c0_125, %c0_126] : memref<25x8x6xbf16, #tpu.memory_space<vmem>>, vector<1x8x6xbf16>
    %292 = vector.shape_cast %291 : vector<1x8x6xbf16> to vector<8x6xbf16>
    %cst_127 = arith.constant dense<0.000000e+00> : vector<8x256xf32>
    %293 = tpu.matmul %292, %290, %cst_127 {dimension_numbers = #tpu.dot_dimension_numbers<[1], [0], [0], [1], [0, 0, 1, 1], [], []>} : vector<8x6xbf16>, vector<6x256xbf16>, vector<8x256xf32> -> vector<8x256xf32>
    %294 = arith.addf %276, %293 : vector<8x256xf32>
    %295 = vector.extract_strided_slice %44 {offsets = [0, 49], sizes = [6, 256], strides = [1, 1]} : vector<6x324xbf16> to vector<6x256xbf16>
    %c-1_i32_128 = arith.constant -1 : i32
    %296 = vector.broadcast %c-1_i32_128 : i32 to vector<1x256xi32>
    %297 = arith.addi %0, %296 : vector<1x256xi32>
    %c0_i32_129 = arith.constant 0 : i32
    %298 = vector.broadcast %c0_i32_129 : i32 to vector<1x256xi32>
    %299 = arith.cmpi sge, %297, %298 : vector<1x256xi32>
    %c-1_i32_130 = arith.constant -1 : i32
    %300 = vector.broadcast %c-1_i32_130 : i32 to vector<1x256xi32>
    %301 = arith.addi %0, %300 : vector<1x256xi32>
    %c16_i32_131 = arith.constant 16 : i32
    %302 = vector.broadcast %c16_i32_131 : i32 to vector<1x256xi32>
    %303 = arith.cmpi slt, %301, %302 : vector<1x256xi32>
    %304 = arith.andi %299, %303 : vector<1x256xi1>
    %cst_132 = arith.constant 0.000000e+00 : bf16
    %305 = vector.broadcast %cst_132 : bf16 to vector<6x256xbf16>
    %306 = vector.shape_cast %304 : vector<1x256xi1> to vector<1x256xi1>
    %307 = vector.broadcast %306 : vector<1x256xi1> to vector<6x256xi1>
    %308 = arith.select %307, %295, %305 : vector<6x256xi1>, vector<6x256xbf16>
    %c16 = arith.constant 16 : index
    %c0_133 = arith.constant 0 : index
    %c0_134 = arith.constant 0 : index
    %309 = vector.load %arg4[%c16, %c0_133, %c0_134] : memref<25x8x6xbf16, #tpu.memory_space<vmem>>, vector<1x8x6xbf16>
    %310 = vector.shape_cast %309 : vector<1x8x6xbf16> to vector<8x6xbf16>
    %cst_135 = arith.constant dense<0.000000e+00> : vector<8x256xf32>
    %311 = tpu.matmul %310, %308, %cst_135 {dimension_numbers = #tpu.dot_dimension_numbers<[1], [0], [0], [1], [0, 0, 1, 1], [], []>} : vector<8x6xbf16>, vector<6x256xbf16>, vector<8x256xf32> -> vector<8x256xf32>
    %312 = arith.addf %294, %311 : vector<8x256xf32>
    %313 = vector.extract_strided_slice %44 {offsets = [0, 50], sizes = [6, 256], strides = [1, 1]} : vector<6x324xbf16> to vector<6x256xbf16>
    %c17 = arith.constant 17 : index
    %c0_136 = arith.constant 0 : index
    %c0_137 = arith.constant 0 : index
    %314 = vector.load %arg4[%c17, %c0_136, %c0_137] : memref<25x8x6xbf16, #tpu.memory_space<vmem>>, vector<1x8x6xbf16>
    %315 = vector.shape_cast %314 : vector<1x8x6xbf16> to vector<8x6xbf16>
    %cst_138 = arith.constant dense<0.000000e+00> : vector<8x256xf32>
    %316 = tpu.matmul %315, %313, %cst_138 {dimension_numbers = #tpu.dot_dimension_numbers<[1], [0], [0], [1], [0, 0, 1, 1], [], []>} : vector<8x6xbf16>, vector<6x256xbf16>, vector<8x256xf32> -> vector<8x256xf32>
    %317 = arith.addf %312, %316 : vector<8x256xf32>
    %318 = vector.extract_strided_slice %44 {offsets = [0, 51], sizes = [6, 256], strides = [1, 1]} : vector<6x324xbf16> to vector<6x256xbf16>
    %c1_i32_139 = arith.constant 1 : i32
    %319 = vector.broadcast %c1_i32_139 : i32 to vector<1x256xi32>
    %320 = arith.addi %0, %319 : vector<1x256xi32>
    %c0_i32_140 = arith.constant 0 : i32
    %321 = vector.broadcast %c0_i32_140 : i32 to vector<1x256xi32>
    %322 = arith.cmpi sge, %320, %321 : vector<1x256xi32>
    %c1_i32_141 = arith.constant 1 : i32
    %323 = vector.broadcast %c1_i32_141 : i32 to vector<1x256xi32>
    %324 = arith.addi %0, %323 : vector<1x256xi32>
    %c16_i32_142 = arith.constant 16 : i32
    %325 = vector.broadcast %c16_i32_142 : i32 to vector<1x256xi32>
    %326 = arith.cmpi slt, %324, %325 : vector<1x256xi32>
    %327 = arith.andi %322, %326 : vector<1x256xi1>
    %cst_143 = arith.constant 0.000000e+00 : bf16
    %328 = vector.broadcast %cst_143 : bf16 to vector<6x256xbf16>
    %329 = vector.shape_cast %327 : vector<1x256xi1> to vector<1x256xi1>
    %330 = vector.broadcast %329 : vector<1x256xi1> to vector<6x256xi1>
    %331 = arith.select %330, %318, %328 : vector<6x256xi1>, vector<6x256xbf16>
    %c18 = arith.constant 18 : index
    %c0_144 = arith.constant 0 : index
    %c0_145 = arith.constant 0 : index
    %332 = vector.load %arg4[%c18, %c0_144, %c0_145] : memref<25x8x6xbf16, #tpu.memory_space<vmem>>, vector<1x8x6xbf16>
    %333 = vector.shape_cast %332 : vector<1x8x6xbf16> to vector<8x6xbf16>
    %cst_146 = arith.constant dense<0.000000e+00> : vector<8x256xf32>
    %334 = tpu.matmul %333, %331, %cst_146 {dimension_numbers = #tpu.dot_dimension_numbers<[1], [0], [0], [1], [0, 0, 1, 1], [], []>} : vector<8x6xbf16>, vector<6x256xbf16>, vector<8x256xf32> -> vector<8x256xf32>
    %335 = arith.addf %317, %334 : vector<8x256xf32>
    %336 = vector.extract_strided_slice %44 {offsets = [0, 52], sizes = [6, 256], strides = [1, 1]} : vector<6x324xbf16> to vector<6x256xbf16>
    %c2_i32_147 = arith.constant 2 : i32
    %337 = vector.broadcast %c2_i32_147 : i32 to vector<1x256xi32>
    %338 = arith.addi %0, %337 : vector<1x256xi32>
    %c0_i32_148 = arith.constant 0 : i32
    %339 = vector.broadcast %c0_i32_148 : i32 to vector<1x256xi32>
    %340 = arith.cmpi sge, %338, %339 : vector<1x256xi32>
    %c2_i32_149 = arith.constant 2 : i32
    %341 = vector.broadcast %c2_i32_149 : i32 to vector<1x256xi32>
    %342 = arith.addi %0, %341 : vector<1x256xi32>
    %c16_i32_150 = arith.constant 16 : i32
    %343 = vector.broadcast %c16_i32_150 : i32 to vector<1x256xi32>
    %344 = arith.cmpi slt, %342, %343 : vector<1x256xi32>
    %345 = arith.andi %340, %344 : vector<1x256xi1>
    %cst_151 = arith.constant 0.000000e+00 : bf16
    %346 = vector.broadcast %cst_151 : bf16 to vector<6x256xbf16>
    %347 = vector.shape_cast %345 : vector<1x256xi1> to vector<1x256xi1>
    %348 = vector.broadcast %347 : vector<1x256xi1> to vector<6x256xi1>
    %349 = arith.select %348, %336, %346 : vector<6x256xi1>, vector<6x256xbf16>
    %c19 = arith.constant 19 : index
    %c0_152 = arith.constant 0 : index
    %c0_153 = arith.constant 0 : index
    %350 = vector.load %arg4[%c19, %c0_152, %c0_153] : memref<25x8x6xbf16, #tpu.memory_space<vmem>>, vector<1x8x6xbf16>
    %351 = vector.shape_cast %350 : vector<1x8x6xbf16> to vector<8x6xbf16>
    %cst_154 = arith.constant dense<0.000000e+00> : vector<8x256xf32>
    %352 = tpu.matmul %351, %349, %cst_154 {dimension_numbers = #tpu.dot_dimension_numbers<[1], [0], [0], [1], [0, 0, 1, 1], [], []>} : vector<8x6xbf16>, vector<6x256xbf16>, vector<8x256xf32> -> vector<8x256xf32>
    %353 = arith.addf %335, %352 : vector<8x256xf32>
    %354 = vector.extract_strided_slice %44 {offsets = [0, 64], sizes = [6, 256], strides = [1, 1]} : vector<6x324xbf16> to vector<6x256xbf16>
    %c-2_i32_155 = arith.constant -2 : i32
    %355 = vector.broadcast %c-2_i32_155 : i32 to vector<1x256xi32>
    %356 = arith.addi %0, %355 : vector<1x256xi32>
    %c0_i32_156 = arith.constant 0 : i32
    %357 = vector.broadcast %c0_i32_156 : i32 to vector<1x256xi32>
    %358 = arith.cmpi sge, %356, %357 : vector<1x256xi32>
    %c-2_i32_157 = arith.constant -2 : i32
    %359 = vector.broadcast %c-2_i32_157 : i32 to vector<1x256xi32>
    %360 = arith.addi %0, %359 : vector<1x256xi32>
    %c16_i32_158 = arith.constant 16 : i32
    %361 = vector.broadcast %c16_i32_158 : i32 to vector<1x256xi32>
    %362 = arith.cmpi slt, %360, %361 : vector<1x256xi32>
    %363 = arith.andi %358, %362 : vector<1x256xi1>
    %cst_159 = arith.constant 0.000000e+00 : bf16
    %364 = vector.broadcast %cst_159 : bf16 to vector<6x256xbf16>
    %365 = vector.shape_cast %363 : vector<1x256xi1> to vector<1x256xi1>
    %366 = vector.broadcast %365 : vector<1x256xi1> to vector<6x256xi1>
    %367 = arith.select %366, %354, %364 : vector<6x256xi1>, vector<6x256xbf16>
    %c20 = arith.constant 20 : index
    %c0_160 = arith.constant 0 : index
    %c0_161 = arith.constant 0 : index
    %368 = vector.load %arg4[%c20, %c0_160, %c0_161] : memref<25x8x6xbf16, #tpu.memory_space<vmem>>, vector<1x8x6xbf16>
    %369 = vector.shape_cast %368 : vector<1x8x6xbf16> to vector<8x6xbf16>
    %cst_162 = arith.constant dense<0.000000e+00> : vector<8x256xf32>
    %370 = tpu.matmul %369, %367, %cst_162 {dimension_numbers = #tpu.dot_dimension_numbers<[1], [0], [0], [1], [0, 0, 1, 1], [], []>} : vector<8x6xbf16>, vector<6x256xbf16>, vector<8x256xf32> -> vector<8x256xf32>
    %371 = arith.addf %353, %370 : vector<8x256xf32>
    %372 = vector.extract_strided_slice %44 {offsets = [0, 65], sizes = [6, 256], strides = [1, 1]} : vector<6x324xbf16> to vector<6x256xbf16>
    %c-1_i32_163 = arith.constant -1 : i32
    %373 = vector.broadcast %c-1_i32_163 : i32 to vector<1x256xi32>
    %374 = arith.addi %0, %373 : vector<1x256xi32>
    %c0_i32_164 = arith.constant 0 : i32
    %375 = vector.broadcast %c0_i32_164 : i32 to vector<1x256xi32>
    %376 = arith.cmpi sge, %374, %375 : vector<1x256xi32>
    %c-1_i32_165 = arith.constant -1 : i32
    %377 = vector.broadcast %c-1_i32_165 : i32 to vector<1x256xi32>
    %378 = arith.addi %0, %377 : vector<1x256xi32>
    %c16_i32_166 = arith.constant 16 : i32
    %379 = vector.broadcast %c16_i32_166 : i32 to vector<1x256xi32>
    %380 = arith.cmpi slt, %378, %379 : vector<1x256xi32>
    %381 = arith.andi %376, %380 : vector<1x256xi1>
    %cst_167 = arith.constant 0.000000e+00 : bf16
    %382 = vector.broadcast %cst_167 : bf16 to vector<6x256xbf16>
    %383 = vector.shape_cast %381 : vector<1x256xi1> to vector<1x256xi1>
    %384 = vector.broadcast %383 : vector<1x256xi1> to vector<6x256xi1>
    %385 = arith.select %384, %372, %382 : vector<6x256xi1>, vector<6x256xbf16>
    %c21 = arith.constant 21 : index
    %c0_168 = arith.constant 0 : index
    %c0_169 = arith.constant 0 : index
    %386 = vector.load %arg4[%c21, %c0_168, %c0_169] : memref<25x8x6xbf16, #tpu.memory_space<vmem>>, vector<1x8x6xbf16>
    %387 = vector.shape_cast %386 : vector<1x8x6xbf16> to vector<8x6xbf16>
    %cst_170 = arith.constant dense<0.000000e+00> : vector<8x256xf32>
    %388 = tpu.matmul %387, %385, %cst_170 {dimension_numbers = #tpu.dot_dimension_numbers<[1], [0], [0], [1], [0, 0, 1, 1], [], []>} : vector<8x6xbf16>, vector<6x256xbf16>, vector<8x256xf32> -> vector<8x256xf32>
    %389 = arith.addf %371, %388 : vector<8x256xf32>
    %390 = vector.extract_strided_slice %44 {offsets = [0, 66], sizes = [6, 256], strides = [1, 1]} : vector<6x324xbf16> to vector<6x256xbf16>
    %c22 = arith.constant 22 : index
    %c0_171 = arith.constant 0 : index
    %c0_172 = arith.constant 0 : index
    %391 = vector.load %arg4[%c22, %c0_171, %c0_172] : memref<25x8x6xbf16, #tpu.memory_space<vmem>>, vector<1x8x6xbf16>
    %392 = vector.shape_cast %391 : vector<1x8x6xbf16> to vector<8x6xbf16>
    %cst_173 = arith.constant dense<0.000000e+00> : vector<8x256xf32>
    %393 = tpu.matmul %392, %390, %cst_173 {dimension_numbers = #tpu.dot_dimension_numbers<[1], [0], [0], [1], [0, 0, 1, 1], [], []>} : vector<8x6xbf16>, vector<6x256xbf16>, vector<8x256xf32> -> vector<8x256xf32>
    %394 = arith.addf %389, %393 : vector<8x256xf32>
    %395 = vector.extract_strided_slice %44 {offsets = [0, 67], sizes = [6, 256], strides = [1, 1]} : vector<6x324xbf16> to vector<6x256xbf16>
    %c1_i32_174 = arith.constant 1 : i32
    %396 = vector.broadcast %c1_i32_174 : i32 to vector<1x256xi32>
    %397 = arith.addi %0, %396 : vector<1x256xi32>
    %c0_i32_175 = arith.constant 0 : i32
    %398 = vector.broadcast %c0_i32_175 : i32 to vector<1x256xi32>
    %399 = arith.cmpi sge, %397, %398 : vector<1x256xi32>
    %c1_i32_176 = arith.constant 1 : i32
    %400 = vector.broadcast %c1_i32_176 : i32 to vector<1x256xi32>
    %401 = arith.addi %0, %400 : vector<1x256xi32>
    %c16_i32_177 = arith.constant 16 : i32
    %402 = vector.broadcast %c16_i32_177 : i32 to vector<1x256xi32>
    %403 = arith.cmpi slt, %401, %402 : vector<1x256xi32>
    %404 = arith.andi %399, %403 : vector<1x256xi1>
    %cst_178 = arith.constant 0.000000e+00 : bf16
    %405 = vector.broadcast %cst_178 : bf16 to vector<6x256xbf16>
    %406 = vector.shape_cast %404 : vector<1x256xi1> to vector<1x256xi1>
    %407 = vector.broadcast %406 : vector<1x256xi1> to vector<6x256xi1>
    %408 = arith.select %407, %395, %405 : vector<6x256xi1>, vector<6x256xbf16>
    %c23 = arith.constant 23 : index
    %c0_179 = arith.constant 0 : index
    %c0_180 = arith.constant 0 : index
    %409 = vector.load %arg4[%c23, %c0_179, %c0_180] : memref<25x8x6xbf16, #tpu.memory_space<vmem>>, vector<1x8x6xbf16>
    %410 = vector.shape_cast %409 : vector<1x8x6xbf16> to vector<8x6xbf16>
    %cst_181 = arith.constant dense<0.000000e+00> : vector<8x256xf32>
    %411 = tpu.matmul %410, %408, %cst_181 {dimension_numbers = #tpu.dot_dimension_numbers<[1], [0], [0], [1], [0, 0, 1, 1], [], []>} : vector<8x6xbf16>, vector<6x256xbf16>, vector<8x256xf32> -> vector<8x256xf32>
    %412 = arith.addf %394, %411 : vector<8x256xf32>
    %413 = vector.extract_strided_slice %44 {offsets = [0, 68], sizes = [6, 256], strides = [1, 1]} : vector<6x324xbf16> to vector<6x256xbf16>
    %c2_i32_182 = arith.constant 2 : i32
    %414 = vector.broadcast %c2_i32_182 : i32 to vector<1x256xi32>
    %415 = arith.addi %0, %414 : vector<1x256xi32>
    %c0_i32_183 = arith.constant 0 : i32
    %416 = vector.broadcast %c0_i32_183 : i32 to vector<1x256xi32>
    %417 = arith.cmpi sge, %415, %416 : vector<1x256xi32>
    %c2_i32_184 = arith.constant 2 : i32
    %418 = vector.broadcast %c2_i32_184 : i32 to vector<1x256xi32>
    %419 = arith.addi %0, %418 : vector<1x256xi32>
    %c16_i32_185 = arith.constant 16 : i32
    %420 = vector.broadcast %c16_i32_185 : i32 to vector<1x256xi32>
    %421 = arith.cmpi slt, %419, %420 : vector<1x256xi32>
    %422 = arith.andi %417, %421 : vector<1x256xi1>
    %cst_186 = arith.constant 0.000000e+00 : bf16
    %423 = vector.broadcast %cst_186 : bf16 to vector<6x256xbf16>
    %424 = vector.shape_cast %422 : vector<1x256xi1> to vector<1x256xi1>
    %425 = vector.broadcast %424 : vector<1x256xi1> to vector<6x256xi1>
    %426 = arith.select %425, %413, %423 : vector<6x256xi1>, vector<6x256xbf16>
    %c24 = arith.constant 24 : index
    %c0_187 = arith.constant 0 : index
    %c0_188 = arith.constant 0 : index
    %427 = vector.load %arg4[%c24, %c0_187, %c0_188] : memref<25x8x6xbf16, #tpu.memory_space<vmem>>, vector<1x8x6xbf16>
    %428 = vector.shape_cast %427 : vector<1x8x6xbf16> to vector<8x6xbf16>
    %cst_189 = arith.constant dense<0.000000e+00> : vector<8x256xf32>
    %429 = tpu.matmul %428, %426, %cst_189 {dimension_numbers = #tpu.dot_dimension_numbers<[1], [0], [0], [1], [0, 0, 1, 1], [], []>} : vector<8x6xbf16>, vector<6x256xbf16>, vector<8x256xf32> -> vector<8x256xf32>
    %430 = arith.addf %412, %429 : vector<8x256xf32>
    %c0_190 = arith.constant 0 : index
    %c0_191 = arith.constant 0 : index
    %431 = vector.load %arg5[%c0_190, %c0_191] : memref<8x1xf32, #tpu.memory_space<vmem>>, vector<8x1xf32>
    %432 = vector.broadcast %431 : vector<8x1xf32> to vector<8x256xf32>
    %433 = arith.addf %430, %432 : vector<8x256xf32>
    %434 = arith.truncf %433 : vector<8x256xf32> to vector<8x256xbf16>
    %cst_192 = arith.constant 0.000000e+00 : bf16
    %435 = vector.broadcast %cst_192 : bf16 to vector<8x34xbf16>
    %436 = tpu.concatenate %435, %434, %435 in 1 : vector<8x34xbf16>, vector<8x256xbf16>, vector<8x34xbf16> -> vector<8x324xbf16>
    %cst_193 = arith.constant 0.000000e+00 : f32
    %437 = vector.broadcast %cst_193 : f32 to vector<8x256xf32>
    %438 = vector.extract_strided_slice %436 {offsets = [0, 0], sizes = [8, 256], strides = [1, 1]} : vector<8x324xbf16> to vector<8x256xbf16>
    %c-2_i32_194 = arith.constant -2 : i32
    %439 = vector.broadcast %c-2_i32_194 : i32 to vector<1x256xi32>
    %440 = arith.addi %0, %439 : vector<1x256xi32>
    %c0_i32_195 = arith.constant 0 : i32
    %441 = vector.broadcast %c0_i32_195 : i32 to vector<1x256xi32>
    %442 = arith.cmpi sge, %440, %441 : vector<1x256xi32>
    %c-2_i32_196 = arith.constant -2 : i32
    %443 = vector.broadcast %c-2_i32_196 : i32 to vector<1x256xi32>
    %444 = arith.addi %0, %443 : vector<1x256xi32>
    %c16_i32_197 = arith.constant 16 : i32
    %445 = vector.broadcast %c16_i32_197 : i32 to vector<1x256xi32>
    %446 = arith.cmpi slt, %444, %445 : vector<1x256xi32>
    %447 = arith.andi %442, %446 : vector<1x256xi1>
    %cst_198 = arith.constant 0.000000e+00 : bf16
    %448 = vector.broadcast %cst_198 : bf16 to vector<8x256xbf16>
    %449 = vector.shape_cast %447 : vector<1x256xi1> to vector<1x256xi1>
    %450 = vector.broadcast %449 : vector<1x256xi1> to vector<8x256xi1>
    %451 = arith.select %450, %438, %448 : vector<8x256xi1>, vector<8x256xbf16>
    %c0_199 = arith.constant 0 : index
    %c0_200 = arith.constant 0 : index
    %c0_201 = arith.constant 0 : index
    %452 = vector.load %arg6[%c0_199, %c0_200, %c0_201] : memref<25x8x8xbf16, #tpu.memory_space<vmem>>, vector<1x8x8xbf16>
    %453 = vector.shape_cast %452 : vector<1x8x8xbf16> to vector<8x8xbf16>
    %cst_202 = arith.constant dense<0.000000e+00> : vector<8x256xf32>
    %454 = tpu.matmul %453, %451, %cst_202 {dimension_numbers = #tpu.dot_dimension_numbers<[1], [0], [0], [1], [0, 0, 1, 1], [], []>} : vector<8x8xbf16>, vector<8x256xbf16>, vector<8x256xf32> -> vector<8x256xf32>
    %455 = arith.addf %437, %454 : vector<8x256xf32>
    %456 = vector.extract_strided_slice %436 {offsets = [0, 1], sizes = [8, 256], strides = [1, 1]} : vector<8x324xbf16> to vector<8x256xbf16>
    %c-1_i32_203 = arith.constant -1 : i32
    %457 = vector.broadcast %c-1_i32_203 : i32 to vector<1x256xi32>
    %458 = arith.addi %0, %457 : vector<1x256xi32>
    %c0_i32_204 = arith.constant 0 : i32
    %459 = vector.broadcast %c0_i32_204 : i32 to vector<1x256xi32>
    %460 = arith.cmpi sge, %458, %459 : vector<1x256xi32>
    %c-1_i32_205 = arith.constant -1 : i32
    %461 = vector.broadcast %c-1_i32_205 : i32 to vector<1x256xi32>
    %462 = arith.addi %0, %461 : vector<1x256xi32>
    %c16_i32_206 = arith.constant 16 : i32
    %463 = vector.broadcast %c16_i32_206 : i32 to vector<1x256xi32>
    %464 = arith.cmpi slt, %462, %463 : vector<1x256xi32>
    %465 = arith.andi %460, %464 : vector<1x256xi1>
    %cst_207 = arith.constant 0.000000e+00 : bf16
    %466 = vector.broadcast %cst_207 : bf16 to vector<8x256xbf16>
    %467 = vector.shape_cast %465 : vector<1x256xi1> to vector<1x256xi1>
    %468 = vector.broadcast %467 : vector<1x256xi1> to vector<8x256xi1>
    %469 = arith.select %468, %456, %466 : vector<8x256xi1>, vector<8x256xbf16>
    %c1_208 = arith.constant 1 : index
    %c0_209 = arith.constant 0 : index
    %c0_210 = arith.constant 0 : index
    %470 = vector.load %arg6[%c1_208, %c0_209, %c0_210] : memref<25x8x8xbf16, #tpu.memory_space<vmem>>, vector<1x8x8xbf16>
    %471 = vector.shape_cast %470 : vector<1x8x8xbf16> to vector<8x8xbf16>
    %cst_211 = arith.constant dense<0.000000e+00> : vector<8x256xf32>
    %472 = tpu.matmul %471, %469, %cst_211 {dimension_numbers = #tpu.dot_dimension_numbers<[1], [0], [0], [1], [0, 0, 1, 1], [], []>} : vector<8x8xbf16>, vector<8x256xbf16>, vector<8x256xf32> -> vector<8x256xf32>
    %473 = arith.addf %455, %472 : vector<8x256xf32>
    %474 = vector.extract_strided_slice %436 {offsets = [0, 2], sizes = [8, 256], strides = [1, 1]} : vector<8x324xbf16> to vector<8x256xbf16>
    %c2_212 = arith.constant 2 : index
    %c0_213 = arith.constant 0 : index
    %c0_214 = arith.constant 0 : index
    %475 = vector.load %arg6[%c2_212, %c0_213, %c0_214] : memref<25x8x8xbf16, #tpu.memory_space<vmem>>, vector<1x8x8xbf16>
    %476 = vector.shape_cast %475 : vector<1x8x8xbf16> to vector<8x8xbf16>
    %cst_215 = arith.constant dense<0.000000e+00> : vector<8x256xf32>
    %477 = tpu.matmul %476, %474, %cst_215 {dimension_numbers = #tpu.dot_dimension_numbers<[1], [0], [0], [1], [0, 0, 1, 1], [], []>} : vector<8x8xbf16>, vector<8x256xbf16>, vector<8x256xf32> -> vector<8x256xf32>
    %478 = arith.addf %473, %477 : vector<8x256xf32>
    %479 = vector.extract_strided_slice %436 {offsets = [0, 3], sizes = [8, 256], strides = [1, 1]} : vector<8x324xbf16> to vector<8x256xbf16>
    %c1_i32_216 = arith.constant 1 : i32
    %480 = vector.broadcast %c1_i32_216 : i32 to vector<1x256xi32>
    %481 = arith.addi %0, %480 : vector<1x256xi32>
    %c0_i32_217 = arith.constant 0 : i32
    %482 = vector.broadcast %c0_i32_217 : i32 to vector<1x256xi32>
    %483 = arith.cmpi sge, %481, %482 : vector<1x256xi32>
    %c1_i32_218 = arith.constant 1 : i32
    %484 = vector.broadcast %c1_i32_218 : i32 to vector<1x256xi32>
    %485 = arith.addi %0, %484 : vector<1x256xi32>
    %c16_i32_219 = arith.constant 16 : i32
    %486 = vector.broadcast %c16_i32_219 : i32 to vector<1x256xi32>
    %487 = arith.cmpi slt, %485, %486 : vector<1x256xi32>
    %488 = arith.andi %483, %487 : vector<1x256xi1>
    %cst_220 = arith.constant 0.000000e+00 : bf16
    %489 = vector.broadcast %cst_220 : bf16 to vector<8x256xbf16>
    %490 = vector.shape_cast %488 : vector<1x256xi1> to vector<1x256xi1>
    %491 = vector.broadcast %490 : vector<1x256xi1> to vector<8x256xi1>
    %492 = arith.select %491, %479, %489 : vector<8x256xi1>, vector<8x256xbf16>
    %c3_221 = arith.constant 3 : index
    %c0_222 = arith.constant 0 : index
    %c0_223 = arith.constant 0 : index
    %493 = vector.load %arg6[%c3_221, %c0_222, %c0_223] : memref<25x8x8xbf16, #tpu.memory_space<vmem>>, vector<1x8x8xbf16>
    %494 = vector.shape_cast %493 : vector<1x8x8xbf16> to vector<8x8xbf16>
    %cst_224 = arith.constant dense<0.000000e+00> : vector<8x256xf32>
    %495 = tpu.matmul %494, %492, %cst_224 {dimension_numbers = #tpu.dot_dimension_numbers<[1], [0], [0], [1], [0, 0, 1, 1], [], []>} : vector<8x8xbf16>, vector<8x256xbf16>, vector<8x256xf32> -> vector<8x256xf32>
    %496 = arith.addf %478, %495 : vector<8x256xf32>
    %497 = vector.extract_strided_slice %436 {offsets = [0, 4], sizes = [8, 256], strides = [1, 1]} : vector<8x324xbf16> to vector<8x256xbf16>
    %c2_i32_225 = arith.constant 2 : i32
    %498 = vector.broadcast %c2_i32_225 : i32 to vector<1x256xi32>
    %499 = arith.addi %0, %498 : vector<1x256xi32>
    %c0_i32_226 = arith.constant 0 : i32
    %500 = vector.broadcast %c0_i32_226 : i32 to vector<1x256xi32>
    %501 = arith.cmpi sge, %499, %500 : vector<1x256xi32>
    %c2_i32_227 = arith.constant 2 : i32
    %502 = vector.broadcast %c2_i32_227 : i32 to vector<1x256xi32>
    %503 = arith.addi %0, %502 : vector<1x256xi32>
    %c16_i32_228 = arith.constant 16 : i32
    %504 = vector.broadcast %c16_i32_228 : i32 to vector<1x256xi32>
    %505 = arith.cmpi slt, %503, %504 : vector<1x256xi32>
    %506 = arith.andi %501, %505 : vector<1x256xi1>
    %cst_229 = arith.constant 0.000000e+00 : bf16
    %507 = vector.broadcast %cst_229 : bf16 to vector<8x256xbf16>
    %508 = vector.shape_cast %506 : vector<1x256xi1> to vector<1x256xi1>
    %509 = vector.broadcast %508 : vector<1x256xi1> to vector<8x256xi1>
    %510 = arith.select %509, %497, %507 : vector<8x256xi1>, vector<8x256xbf16>
    %c4_230 = arith.constant 4 : index
    %c0_231 = arith.constant 0 : index
    %c0_232 = arith.constant 0 : index
    %511 = vector.load %arg6[%c4_230, %c0_231, %c0_232] : memref<25x8x8xbf16, #tpu.memory_space<vmem>>, vector<1x8x8xbf16>
    %512 = vector.shape_cast %511 : vector<1x8x8xbf16> to vector<8x8xbf16>
    %cst_233 = arith.constant dense<0.000000e+00> : vector<8x256xf32>
    %513 = tpu.matmul %512, %510, %cst_233 {dimension_numbers = #tpu.dot_dimension_numbers<[1], [0], [0], [1], [0, 0, 1, 1], [], []>} : vector<8x8xbf16>, vector<8x256xbf16>, vector<8x256xf32> -> vector<8x256xf32>
    %514 = arith.addf %496, %513 : vector<8x256xf32>
    %515 = vector.extract_strided_slice %436 {offsets = [0, 16], sizes = [8, 256], strides = [1, 1]} : vector<8x324xbf16> to vector<8x256xbf16>
    %c-2_i32_234 = arith.constant -2 : i32
    %516 = vector.broadcast %c-2_i32_234 : i32 to vector<1x256xi32>
    %517 = arith.addi %0, %516 : vector<1x256xi32>
    %c0_i32_235 = arith.constant 0 : i32
    %518 = vector.broadcast %c0_i32_235 : i32 to vector<1x256xi32>
    %519 = arith.cmpi sge, %517, %518 : vector<1x256xi32>
    %c-2_i32_236 = arith.constant -2 : i32
    %520 = vector.broadcast %c-2_i32_236 : i32 to vector<1x256xi32>
    %521 = arith.addi %0, %520 : vector<1x256xi32>
    %c16_i32_237 = arith.constant 16 : i32
    %522 = vector.broadcast %c16_i32_237 : i32 to vector<1x256xi32>
    %523 = arith.cmpi slt, %521, %522 : vector<1x256xi32>
    %524 = arith.andi %519, %523 : vector<1x256xi1>
    %cst_238 = arith.constant 0.000000e+00 : bf16
    %525 = vector.broadcast %cst_238 : bf16 to vector<8x256xbf16>
    %526 = vector.shape_cast %524 : vector<1x256xi1> to vector<1x256xi1>
    %527 = vector.broadcast %526 : vector<1x256xi1> to vector<8x256xi1>
    %528 = arith.select %527, %515, %525 : vector<8x256xi1>, vector<8x256xbf16>
    %c5_239 = arith.constant 5 : index
    %c0_240 = arith.constant 0 : index
    %c0_241 = arith.constant 0 : index
    %529 = vector.load %arg6[%c5_239, %c0_240, %c0_241] : memref<25x8x8xbf16, #tpu.memory_space<vmem>>, vector<1x8x8xbf16>
    %530 = vector.shape_cast %529 : vector<1x8x8xbf16> to vector<8x8xbf16>
    %cst_242 = arith.constant dense<0.000000e+00> : vector<8x256xf32>
    %531 = tpu.matmul %530, %528, %cst_242 {dimension_numbers = #tpu.dot_dimension_numbers<[1], [0], [0], [1], [0, 0, 1, 1], [], []>} : vector<8x8xbf16>, vector<8x256xbf16>, vector<8x256xf32> -> vector<8x256xf32>
    %532 = arith.addf %514, %531 : vector<8x256xf32>
    %533 = vector.extract_strided_slice %436 {offsets = [0, 17], sizes = [8, 256], strides = [1, 1]} : vector<8x324xbf16> to vector<8x256xbf16>
    %c-1_i32_243 = arith.constant -1 : i32
    %534 = vector.broadcast %c-1_i32_243 : i32 to vector<1x256xi32>
    %535 = arith.addi %0, %534 : vector<1x256xi32>
    %c0_i32_244 = arith.constant 0 : i32
    %536 = vector.broadcast %c0_i32_244 : i32 to vector<1x256xi32>
    %537 = arith.cmpi sge, %535, %536 : vector<1x256xi32>
    %c-1_i32_245 = arith.constant -1 : i32
    %538 = vector.broadcast %c-1_i32_245 : i32 to vector<1x256xi32>
    %539 = arith.addi %0, %538 : vector<1x256xi32>
    %c16_i32_246 = arith.constant 16 : i32
    %540 = vector.broadcast %c16_i32_246 : i32 to vector<1x256xi32>
    %541 = arith.cmpi slt, %539, %540 : vector<1x256xi32>
    %542 = arith.andi %537, %541 : vector<1x256xi1>
    %cst_247 = arith.constant 0.000000e+00 : bf16
    %543 = vector.broadcast %cst_247 : bf16 to vector<8x256xbf16>
    %544 = vector.shape_cast %542 : vector<1x256xi1> to vector<1x256xi1>
    %545 = vector.broadcast %544 : vector<1x256xi1> to vector<8x256xi1>
    %546 = arith.select %545, %533, %543 : vector<8x256xi1>, vector<8x256xbf16>
    %c6_248 = arith.constant 6 : index
    %c0_249 = arith.constant 0 : index
    %c0_250 = arith.constant 0 : index
    %547 = vector.load %arg6[%c6_248, %c0_249, %c0_250] : memref<25x8x8xbf16, #tpu.memory_space<vmem>>, vector<1x8x8xbf16>
    %548 = vector.shape_cast %547 : vector<1x8x8xbf16> to vector<8x8xbf16>
    %cst_251 = arith.constant dense<0.000000e+00> : vector<8x256xf32>
    %549 = tpu.matmul %548, %546, %cst_251 {dimension_numbers = #tpu.dot_dimension_numbers<[1], [0], [0], [1], [0, 0, 1, 1], [], []>} : vector<8x8xbf16>, vector<8x256xbf16>, vector<8x256xf32> -> vector<8x256xf32>
    %550 = arith.addf %532, %549 : vector<8x256xf32>
    %551 = vector.extract_strided_slice %436 {offsets = [0, 18], sizes = [8, 256], strides = [1, 1]} : vector<8x324xbf16> to vector<8x256xbf16>
    %c7_252 = arith.constant 7 : index
    %c0_253 = arith.constant 0 : index
    %c0_254 = arith.constant 0 : index
    %552 = vector.load %arg6[%c7_252, %c0_253, %c0_254] : memref<25x8x8xbf16, #tpu.memory_space<vmem>>, vector<1x8x8xbf16>
    %553 = vector.shape_cast %552 : vector<1x8x8xbf16> to vector<8x8xbf16>
    %cst_255 = arith.constant dense<0.000000e+00> : vector<8x256xf32>
    %554 = tpu.matmul %553, %551, %cst_255 {dimension_numbers = #tpu.dot_dimension_numbers<[1], [0], [0], [1], [0, 0, 1, 1], [], []>} : vector<8x8xbf16>, vector<8x256xbf16>, vector<8x256xf32> -> vector<8x256xf32>
    %555 = arith.addf %550, %554 : vector<8x256xf32>
    %556 = vector.extract_strided_slice %436 {offsets = [0, 19], sizes = [8, 256], strides = [1, 1]} : vector<8x324xbf16> to vector<8x256xbf16>
    %c1_i32_256 = arith.constant 1 : i32
    %557 = vector.broadcast %c1_i32_256 : i32 to vector<1x256xi32>
    %558 = arith.addi %0, %557 : vector<1x256xi32>
    %c0_i32_257 = arith.constant 0 : i32
    %559 = vector.broadcast %c0_i32_257 : i32 to vector<1x256xi32>
    %560 = arith.cmpi sge, %558, %559 : vector<1x256xi32>
    %c1_i32_258 = arith.constant 1 : i32
    %561 = vector.broadcast %c1_i32_258 : i32 to vector<1x256xi32>
    %562 = arith.addi %0, %561 : vector<1x256xi32>
    %c16_i32_259 = arith.constant 16 : i32
    %563 = vector.broadcast %c16_i32_259 : i32 to vector<1x256xi32>
    %564 = arith.cmpi slt, %562, %563 : vector<1x256xi32>
    %565 = arith.andi %560, %564 : vector<1x256xi1>
    %cst_260 = arith.constant 0.000000e+00 : bf16
    %566 = vector.broadcast %cst_260 : bf16 to vector<8x256xbf16>
    %567 = vector.shape_cast %565 : vector<1x256xi1> to vector<1x256xi1>
    %568 = vector.broadcast %567 : vector<1x256xi1> to vector<8x256xi1>
    %569 = arith.select %568, %556, %566 : vector<8x256xi1>, vector<8x256xbf16>
    %c8_261 = arith.constant 8 : index
    %c0_262 = arith.constant 0 : index
    %c0_263 = arith.constant 0 : index
    %570 = vector.load %arg6[%c8_261, %c0_262, %c0_263] : memref<25x8x8xbf16, #tpu.memory_space<vmem>>, vector<1x8x8xbf16>
    %571 = vector.shape_cast %570 : vector<1x8x8xbf16> to vector<8x8xbf16>
    %cst_264 = arith.constant dense<0.000000e+00> : vector<8x256xf32>
    %572 = tpu.matmul %571, %569, %cst_264 {dimension_numbers = #tpu.dot_dimension_numbers<[1], [0], [0], [1], [0, 0, 1, 1], [], []>} : vector<8x8xbf16>, vector<8x256xbf16>, vector<8x256xf32> -> vector<8x256xf32>
    %573 = arith.addf %555, %572 : vector<8x256xf32>
    %574 = vector.extract_strided_slice %436 {offsets = [0, 20], sizes = [8, 256], strides = [1, 1]} : vector<8x324xbf16> to vector<8x256xbf16>
    %c2_i32_265 = arith.constant 2 : i32
    %575 = vector.broadcast %c2_i32_265 : i32 to vector<1x256xi32>
    %576 = arith.addi %0, %575 : vector<1x256xi32>
    %c0_i32_266 = arith.constant 0 : i32
    %577 = vector.broadcast %c0_i32_266 : i32 to vector<1x256xi32>
    %578 = arith.cmpi sge, %576, %577 : vector<1x256xi32>
    %c2_i32_267 = arith.constant 2 : i32
    %579 = vector.broadcast %c2_i32_267 : i32 to vector<1x256xi32>
    %580 = arith.addi %0, %579 : vector<1x256xi32>
    %c16_i32_268 = arith.constant 16 : i32
    %581 = vector.broadcast %c16_i32_268 : i32 to vector<1x256xi32>
    %582 = arith.cmpi slt, %580, %581 : vector<1x256xi32>
    %583 = arith.andi %578, %582 : vector<1x256xi1>
    %cst_269 = arith.constant 0.000000e+00 : bf16
    %584 = vector.broadcast %cst_269 : bf16 to vector<8x256xbf16>
    %585 = vector.shape_cast %583 : vector<1x256xi1> to vector<1x256xi1>
    %586 = vector.broadcast %585 : vector<1x256xi1> to vector<8x256xi1>
    %587 = arith.select %586, %574, %584 : vector<8x256xi1>, vector<8x256xbf16>
    %c9_270 = arith.constant 9 : index
    %c0_271 = arith.constant 0 : index
    %c0_272 = arith.constant 0 : index
    %588 = vector.load %arg6[%c9_270, %c0_271, %c0_272] : memref<25x8x8xbf16, #tpu.memory_space<vmem>>, vector<1x8x8xbf16>
    %589 = vector.shape_cast %588 : vector<1x8x8xbf16> to vector<8x8xbf16>
    %cst_273 = arith.constant dense<0.000000e+00> : vector<8x256xf32>
    %590 = tpu.matmul %589, %587, %cst_273 {dimension_numbers = #tpu.dot_dimension_numbers<[1], [0], [0], [1], [0, 0, 1, 1], [], []>} : vector<8x8xbf16>, vector<8x256xbf16>, vector<8x256xf32> -> vector<8x256xf32>
    %591 = arith.addf %573, %590 : vector<8x256xf32>
    %592 = vector.extract_strided_slice %436 {offsets = [0, 32], sizes = [8, 256], strides = [1, 1]} : vector<8x324xbf16> to vector<8x256xbf16>
    %c-2_i32_274 = arith.constant -2 : i32
    %593 = vector.broadcast %c-2_i32_274 : i32 to vector<1x256xi32>
    %594 = arith.addi %0, %593 : vector<1x256xi32>
    %c0_i32_275 = arith.constant 0 : i32
    %595 = vector.broadcast %c0_i32_275 : i32 to vector<1x256xi32>
    %596 = arith.cmpi sge, %594, %595 : vector<1x256xi32>
    %c-2_i32_276 = arith.constant -2 : i32
    %597 = vector.broadcast %c-2_i32_276 : i32 to vector<1x256xi32>
    %598 = arith.addi %0, %597 : vector<1x256xi32>
    %c16_i32_277 = arith.constant 16 : i32
    %599 = vector.broadcast %c16_i32_277 : i32 to vector<1x256xi32>
    %600 = arith.cmpi slt, %598, %599 : vector<1x256xi32>
    %601 = arith.andi %596, %600 : vector<1x256xi1>
    %cst_278 = arith.constant 0.000000e+00 : bf16
    %602 = vector.broadcast %cst_278 : bf16 to vector<8x256xbf16>
    %603 = vector.shape_cast %601 : vector<1x256xi1> to vector<1x256xi1>
    %604 = vector.broadcast %603 : vector<1x256xi1> to vector<8x256xi1>
    %605 = arith.select %604, %592, %602 : vector<8x256xi1>, vector<8x256xbf16>
    %c10_279 = arith.constant 10 : index
    %c0_280 = arith.constant 0 : index
    %c0_281 = arith.constant 0 : index
    %606 = vector.load %arg6[%c10_279, %c0_280, %c0_281] : memref<25x8x8xbf16, #tpu.memory_space<vmem>>, vector<1x8x8xbf16>
    %607 = vector.shape_cast %606 : vector<1x8x8xbf16> to vector<8x8xbf16>
    %cst_282 = arith.constant dense<0.000000e+00> : vector<8x256xf32>
    %608 = tpu.matmul %607, %605, %cst_282 {dimension_numbers = #tpu.dot_dimension_numbers<[1], [0], [0], [1], [0, 0, 1, 1], [], []>} : vector<8x8xbf16>, vector<8x256xbf16>, vector<8x256xf32> -> vector<8x256xf32>
    %609 = arith.addf %591, %608 : vector<8x256xf32>
    %610 = vector.extract_strided_slice %436 {offsets = [0, 33], sizes = [8, 256], strides = [1, 1]} : vector<8x324xbf16> to vector<8x256xbf16>
    %c-1_i32_283 = arith.constant -1 : i32
    %611 = vector.broadcast %c-1_i32_283 : i32 to vector<1x256xi32>
    %612 = arith.addi %0, %611 : vector<1x256xi32>
    %c0_i32_284 = arith.constant 0 : i32
    %613 = vector.broadcast %c0_i32_284 : i32 to vector<1x256xi32>
    %614 = arith.cmpi sge, %612, %613 : vector<1x256xi32>
    %c-1_i32_285 = arith.constant -1 : i32
    %615 = vector.broadcast %c-1_i32_285 : i32 to vector<1x256xi32>
    %616 = arith.addi %0, %615 : vector<1x256xi32>
    %c16_i32_286 = arith.constant 16 : i32
    %617 = vector.broadcast %c16_i32_286 : i32 to vector<1x256xi32>
    %618 = arith.cmpi slt, %616, %617 : vector<1x256xi32>
    %619 = arith.andi %614, %618 : vector<1x256xi1>
    %cst_287 = arith.constant 0.000000e+00 : bf16
    %620 = vector.broadcast %cst_287 : bf16 to vector<8x256xbf16>
    %621 = vector.shape_cast %619 : vector<1x256xi1> to vector<1x256xi1>
    %622 = vector.broadcast %621 : vector<1x256xi1> to vector<8x256xi1>
    %623 = arith.select %622, %610, %620 : vector<8x256xi1>, vector<8x256xbf16>
    %c11_288 = arith.constant 11 : index
    %c0_289 = arith.constant 0 : index
    %c0_290 = arith.constant 0 : index
    %624 = vector.load %arg6[%c11_288, %c0_289, %c0_290] : memref<25x8x8xbf16, #tpu.memory_space<vmem>>, vector<1x8x8xbf16>
    %625 = vector.shape_cast %624 : vector<1x8x8xbf16> to vector<8x8xbf16>
    %cst_291 = arith.constant dense<0.000000e+00> : vector<8x256xf32>
    %626 = tpu.matmul %625, %623, %cst_291 {dimension_numbers = #tpu.dot_dimension_numbers<[1], [0], [0], [1], [0, 0, 1, 1], [], []>} : vector<8x8xbf16>, vector<8x256xbf16>, vector<8x256xf32> -> vector<8x256xf32>
    %627 = arith.addf %609, %626 : vector<8x256xf32>
    %628 = vector.extract_strided_slice %436 {offsets = [0, 34], sizes = [8, 256], strides = [1, 1]} : vector<8x324xbf16> to vector<8x256xbf16>
    %c12_292 = arith.constant 12 : index
    %c0_293 = arith.constant 0 : index
    %c0_294 = arith.constant 0 : index
    %629 = vector.load %arg6[%c12_292, %c0_293, %c0_294] : memref<25x8x8xbf16, #tpu.memory_space<vmem>>, vector<1x8x8xbf16>
    %630 = vector.shape_cast %629 : vector<1x8x8xbf16> to vector<8x8xbf16>
    %cst_295 = arith.constant dense<0.000000e+00> : vector<8x256xf32>
    %631 = tpu.matmul %630, %628, %cst_295 {dimension_numbers = #tpu.dot_dimension_numbers<[1], [0], [0], [1], [0, 0, 1, 1], [], []>} : vector<8x8xbf16>, vector<8x256xbf16>, vector<8x256xf32> -> vector<8x256xf32>
    %632 = arith.addf %627, %631 : vector<8x256xf32>
    %633 = vector.extract_strided_slice %436 {offsets = [0, 35], sizes = [8, 256], strides = [1, 1]} : vector<8x324xbf16> to vector<8x256xbf16>
    %c1_i32_296 = arith.constant 1 : i32
    %634 = vector.broadcast %c1_i32_296 : i32 to vector<1x256xi32>
    %635 = arith.addi %0, %634 : vector<1x256xi32>
    %c0_i32_297 = arith.constant 0 : i32
    %636 = vector.broadcast %c0_i32_297 : i32 to vector<1x256xi32>
    %637 = arith.cmpi sge, %635, %636 : vector<1x256xi32>
    %c1_i32_298 = arith.constant 1 : i32
    %638 = vector.broadcast %c1_i32_298 : i32 to vector<1x256xi32>
    %639 = arith.addi %0, %638 : vector<1x256xi32>
    %c16_i32_299 = arith.constant 16 : i32
    %640 = vector.broadcast %c16_i32_299 : i32 to vector<1x256xi32>
    %641 = arith.cmpi slt, %639, %640 : vector<1x256xi32>
    %642 = arith.andi %637, %641 : vector<1x256xi1>
    %cst_300 = arith.constant 0.000000e+00 : bf16
    %643 = vector.broadcast %cst_300 : bf16 to vector<8x256xbf16>
    %644 = vector.shape_cast %642 : vector<1x256xi1> to vector<1x256xi1>
    %645 = vector.broadcast %644 : vector<1x256xi1> to vector<8x256xi1>
    %646 = arith.select %645, %633, %643 : vector<8x256xi1>, vector<8x256xbf16>
    %c13_301 = arith.constant 13 : index
    %c0_302 = arith.constant 0 : index
    %c0_303 = arith.constant 0 : index
    %647 = vector.load %arg6[%c13_301, %c0_302, %c0_303] : memref<25x8x8xbf16, #tpu.memory_space<vmem>>, vector<1x8x8xbf16>
    %648 = vector.shape_cast %647 : vector<1x8x8xbf16> to vector<8x8xbf16>
    %cst_304 = arith.constant dense<0.000000e+00> : vector<8x256xf32>
    %649 = tpu.matmul %648, %646, %cst_304 {dimension_numbers = #tpu.dot_dimension_numbers<[1], [0], [0], [1], [0, 0, 1, 1], [], []>} : vector<8x8xbf16>, vector<8x256xbf16>, vector<8x256xf32> -> vector<8x256xf32>
    %650 = arith.addf %632, %649 : vector<8x256xf32>
    %651 = vector.extract_strided_slice %436 {offsets = [0, 36], sizes = [8, 256], strides = [1, 1]} : vector<8x324xbf16> to vector<8x256xbf16>
    %c2_i32_305 = arith.constant 2 : i32
    %652 = vector.broadcast %c2_i32_305 : i32 to vector<1x256xi32>
    %653 = arith.addi %0, %652 : vector<1x256xi32>
    %c0_i32_306 = arith.constant 0 : i32
    %654 = vector.broadcast %c0_i32_306 : i32 to vector<1x256xi32>
    %655 = arith.cmpi sge, %653, %654 : vector<1x256xi32>
    %c2_i32_307 = arith.constant 2 : i32
    %656 = vector.broadcast %c2_i32_307 : i32 to vector<1x256xi32>
    %657 = arith.addi %0, %656 : vector<1x256xi32>
    %c16_i32_308 = arith.constant 16 : i32
    %658 = vector.broadcast %c16_i32_308 : i32 to vector<1x256xi32>
    %659 = arith.cmpi slt, %657, %658 : vector<1x256xi32>
    %660 = arith.andi %655, %659 : vector<1x256xi1>
    %cst_309 = arith.constant 0.000000e+00 : bf16
    %661 = vector.broadcast %cst_309 : bf16 to vector<8x256xbf16>
    %662 = vector.shape_cast %660 : vector<1x256xi1> to vector<1x256xi1>
    %663 = vector.broadcast %662 : vector<1x256xi1> to vector<8x256xi1>
    %664 = arith.select %663, %651, %661 : vector<8x256xi1>, vector<8x256xbf16>
    %c14_310 = arith.constant 14 : index
    %c0_311 = arith.constant 0 : index
    %c0_312 = arith.constant 0 : index
    %665 = vector.load %arg6[%c14_310, %c0_311, %c0_312] : memref<25x8x8xbf16, #tpu.memory_space<vmem>>, vector<1x8x8xbf16>
    %666 = vector.shape_cast %665 : vector<1x8x8xbf16> to vector<8x8xbf16>
    %cst_313 = arith.constant dense<0.000000e+00> : vector<8x256xf32>
    %667 = tpu.matmul %666, %664, %cst_313 {dimension_numbers = #tpu.dot_dimension_numbers<[1], [0], [0], [1], [0, 0, 1, 1], [], []>} : vector<8x8xbf16>, vector<8x256xbf16>, vector<8x256xf32> -> vector<8x256xf32>
    %668 = arith.addf %650, %667 : vector<8x256xf32>
    %669 = vector.extract_strided_slice %436 {offsets = [0, 48], sizes = [8, 256], strides = [1, 1]} : vector<8x324xbf16> to vector<8x256xbf16>
    %c-2_i32_314 = arith.constant -2 : i32
    %670 = vector.broadcast %c-2_i32_314 : i32 to vector<1x256xi32>
    %671 = arith.addi %0, %670 : vector<1x256xi32>
    %c0_i32_315 = arith.constant 0 : i32
    %672 = vector.broadcast %c0_i32_315 : i32 to vector<1x256xi32>
    %673 = arith.cmpi sge, %671, %672 : vector<1x256xi32>
    %c-2_i32_316 = arith.constant -2 : i32
    %674 = vector.broadcast %c-2_i32_316 : i32 to vector<1x256xi32>
    %675 = arith.addi %0, %674 : vector<1x256xi32>
    %c16_i32_317 = arith.constant 16 : i32
    %676 = vector.broadcast %c16_i32_317 : i32 to vector<1x256xi32>
    %677 = arith.cmpi slt, %675, %676 : vector<1x256xi32>
    %678 = arith.andi %673, %677 : vector<1x256xi1>
    %cst_318 = arith.constant 0.000000e+00 : bf16
    %679 = vector.broadcast %cst_318 : bf16 to vector<8x256xbf16>
    %680 = vector.shape_cast %678 : vector<1x256xi1> to vector<1x256xi1>
    %681 = vector.broadcast %680 : vector<1x256xi1> to vector<8x256xi1>
    %682 = arith.select %681, %669, %679 : vector<8x256xi1>, vector<8x256xbf16>
    %c15_319 = arith.constant 15 : index
    %c0_320 = arith.constant 0 : index
    %c0_321 = arith.constant 0 : index
    %683 = vector.load %arg6[%c15_319, %c0_320, %c0_321] : memref<25x8x8xbf16, #tpu.memory_space<vmem>>, vector<1x8x8xbf16>
    %684 = vector.shape_cast %683 : vector<1x8x8xbf16> to vector<8x8xbf16>
    %cst_322 = arith.constant dense<0.000000e+00> : vector<8x256xf32>
    %685 = tpu.matmul %684, %682, %cst_322 {dimension_numbers = #tpu.dot_dimension_numbers<[1], [0], [0], [1], [0, 0, 1, 1], [], []>} : vector<8x8xbf16>, vector<8x256xbf16>, vector<8x256xf32> -> vector<8x256xf32>
    %686 = arith.addf %668, %685 : vector<8x256xf32>
    %687 = vector.extract_strided_slice %436 {offsets = [0, 49], sizes = [8, 256], strides = [1, 1]} : vector<8x324xbf16> to vector<8x256xbf16>
    %c-1_i32_323 = arith.constant -1 : i32
    %688 = vector.broadcast %c-1_i32_323 : i32 to vector<1x256xi32>
    %689 = arith.addi %0, %688 : vector<1x256xi32>
    %c0_i32_324 = arith.constant 0 : i32
    %690 = vector.broadcast %c0_i32_324 : i32 to vector<1x256xi32>
    %691 = arith.cmpi sge, %689, %690 : vector<1x256xi32>
    %c-1_i32_325 = arith.constant -1 : i32
    %692 = vector.broadcast %c-1_i32_325 : i32 to vector<1x256xi32>
    %693 = arith.addi %0, %692 : vector<1x256xi32>
    %c16_i32_326 = arith.constant 16 : i32
    %694 = vector.broadcast %c16_i32_326 : i32 to vector<1x256xi32>
    %695 = arith.cmpi slt, %693, %694 : vector<1x256xi32>
    %696 = arith.andi %691, %695 : vector<1x256xi1>
    %cst_327 = arith.constant 0.000000e+00 : bf16
    %697 = vector.broadcast %cst_327 : bf16 to vector<8x256xbf16>
    %698 = vector.shape_cast %696 : vector<1x256xi1> to vector<1x256xi1>
    %699 = vector.broadcast %698 : vector<1x256xi1> to vector<8x256xi1>
    %700 = arith.select %699, %687, %697 : vector<8x256xi1>, vector<8x256xbf16>
    %c16_328 = arith.constant 16 : index
    %c0_329 = arith.constant 0 : index
    %c0_330 = arith.constant 0 : index
    %701 = vector.load %arg6[%c16_328, %c0_329, %c0_330] : memref<25x8x8xbf16, #tpu.memory_space<vmem>>, vector<1x8x8xbf16>
    %702 = vector.shape_cast %701 : vector<1x8x8xbf16> to vector<8x8xbf16>
    %cst_331 = arith.constant dense<0.000000e+00> : vector<8x256xf32>
    %703 = tpu.matmul %702, %700, %cst_331 {dimension_numbers = #tpu.dot_dimension_numbers<[1], [0], [0], [1], [0, 0, 1, 1], [], []>} : vector<8x8xbf16>, vector<8x256xbf16>, vector<8x256xf32> -> vector<8x256xf32>
    %704 = arith.addf %686, %703 : vector<8x256xf32>
    %705 = vector.extract_strided_slice %436 {offsets = [0, 50], sizes = [8, 256], strides = [1, 1]} : vector<8x324xbf16> to vector<8x256xbf16>
    %c17_332 = arith.constant 17 : index
    %c0_333 = arith.constant 0 : index
    %c0_334 = arith.constant 0 : index
    %706 = vector.load %arg6[%c17_332, %c0_333, %c0_334] : memref<25x8x8xbf16, #tpu.memory_space<vmem>>, vector<1x8x8xbf16>
    %707 = vector.shape_cast %706 : vector<1x8x8xbf16> to vector<8x8xbf16>
    %cst_335 = arith.constant dense<0.000000e+00> : vector<8x256xf32>
    %708 = tpu.matmul %707, %705, %cst_335 {dimension_numbers = #tpu.dot_dimension_numbers<[1], [0], [0], [1], [0, 0, 1, 1], [], []>} : vector<8x8xbf16>, vector<8x256xbf16>, vector<8x256xf32> -> vector<8x256xf32>
    %709 = arith.addf %704, %708 : vector<8x256xf32>
    %710 = vector.extract_strided_slice %436 {offsets = [0, 51], sizes = [8, 256], strides = [1, 1]} : vector<8x324xbf16> to vector<8x256xbf16>
    %c1_i32_336 = arith.constant 1 : i32
    %711 = vector.broadcast %c1_i32_336 : i32 to vector<1x256xi32>
    %712 = arith.addi %0, %711 : vector<1x256xi32>
    %c0_i32_337 = arith.constant 0 : i32
    %713 = vector.broadcast %c0_i32_337 : i32 to vector<1x256xi32>
    %714 = arith.cmpi sge, %712, %713 : vector<1x256xi32>
    %c1_i32_338 = arith.constant 1 : i32
    %715 = vector.broadcast %c1_i32_338 : i32 to vector<1x256xi32>
    %716 = arith.addi %0, %715 : vector<1x256xi32>
    %c16_i32_339 = arith.constant 16 : i32
    %717 = vector.broadcast %c16_i32_339 : i32 to vector<1x256xi32>
    %718 = arith.cmpi slt, %716, %717 : vector<1x256xi32>
    %719 = arith.andi %714, %718 : vector<1x256xi1>
    %cst_340 = arith.constant 0.000000e+00 : bf16
    %720 = vector.broadcast %cst_340 : bf16 to vector<8x256xbf16>
    %721 = vector.shape_cast %719 : vector<1x256xi1> to vector<1x256xi1>
    %722 = vector.broadcast %721 : vector<1x256xi1> to vector<8x256xi1>
    %723 = arith.select %722, %710, %720 : vector<8x256xi1>, vector<8x256xbf16>
    %c18_341 = arith.constant 18 : index
    %c0_342 = arith.constant 0 : index
    %c0_343 = arith.constant 0 : index
    %724 = vector.load %arg6[%c18_341, %c0_342, %c0_343] : memref<25x8x8xbf16, #tpu.memory_space<vmem>>, vector<1x8x8xbf16>
    %725 = vector.shape_cast %724 : vector<1x8x8xbf16> to vector<8x8xbf16>
    %cst_344 = arith.constant dense<0.000000e+00> : vector<8x256xf32>
    %726 = tpu.matmul %725, %723, %cst_344 {dimension_numbers = #tpu.dot_dimension_numbers<[1], [0], [0], [1], [0, 0, 1, 1], [], []>} : vector<8x8xbf16>, vector<8x256xbf16>, vector<8x256xf32> -> vector<8x256xf32>
    %727 = arith.addf %709, %726 : vector<8x256xf32>
    %728 = vector.extract_strided_slice %436 {offsets = [0, 52], sizes = [8, 256], strides = [1, 1]} : vector<8x324xbf16> to vector<8x256xbf16>
    %c2_i32_345 = arith.constant 2 : i32
    %729 = vector.broadcast %c2_i32_345 : i32 to vector<1x256xi32>
    %730 = arith.addi %0, %729 : vector<1x256xi32>
    %c0_i32_346 = arith.constant 0 : i32
    %731 = vector.broadcast %c0_i32_346 : i32 to vector<1x256xi32>
    %732 = arith.cmpi sge, %730, %731 : vector<1x256xi32>
    %c2_i32_347 = arith.constant 2 : i32
    %733 = vector.broadcast %c2_i32_347 : i32 to vector<1x256xi32>
    %734 = arith.addi %0, %733 : vector<1x256xi32>
    %c16_i32_348 = arith.constant 16 : i32
    %735 = vector.broadcast %c16_i32_348 : i32 to vector<1x256xi32>
    %736 = arith.cmpi slt, %734, %735 : vector<1x256xi32>
    %737 = arith.andi %732, %736 : vector<1x256xi1>
    %cst_349 = arith.constant 0.000000e+00 : bf16
    %738 = vector.broadcast %cst_349 : bf16 to vector<8x256xbf16>
    %739 = vector.shape_cast %737 : vector<1x256xi1> to vector<1x256xi1>
    %740 = vector.broadcast %739 : vector<1x256xi1> to vector<8x256xi1>
    %741 = arith.select %740, %728, %738 : vector<8x256xi1>, vector<8x256xbf16>
    %c19_350 = arith.constant 19 : index
    %c0_351 = arith.constant 0 : index
    %c0_352 = arith.constant 0 : index
    %742 = vector.load %arg6[%c19_350, %c0_351, %c0_352] : memref<25x8x8xbf16, #tpu.memory_space<vmem>>, vector<1x8x8xbf16>
    %743 = vector.shape_cast %742 : vector<1x8x8xbf16> to vector<8x8xbf16>
    %cst_353 = arith.constant dense<0.000000e+00> : vector<8x256xf32>
    %744 = tpu.matmul %743, %741, %cst_353 {dimension_numbers = #tpu.dot_dimension_numbers<[1], [0], [0], [1], [0, 0, 1, 1], [], []>} : vector<8x8xbf16>, vector<8x256xbf16>, vector<8x256xf32> -> vector<8x256xf32>
    %745 = arith.addf %727, %744 : vector<8x256xf32>
    %746 = vector.extract_strided_slice %436 {offsets = [0, 64], sizes = [8, 256], strides = [1, 1]} : vector<8x324xbf16> to vector<8x256xbf16>
    %c-2_i32_354 = arith.constant -2 : i32
    %747 = vector.broadcast %c-2_i32_354 : i32 to vector<1x256xi32>
    %748 = arith.addi %0, %747 : vector<1x256xi32>
    %c0_i32_355 = arith.constant 0 : i32
    %749 = vector.broadcast %c0_i32_355 : i32 to vector<1x256xi32>
    %750 = arith.cmpi sge, %748, %749 : vector<1x256xi32>
    %c-2_i32_356 = arith.constant -2 : i32
    %751 = vector.broadcast %c-2_i32_356 : i32 to vector<1x256xi32>
    %752 = arith.addi %0, %751 : vector<1x256xi32>
    %c16_i32_357 = arith.constant 16 : i32
    %753 = vector.broadcast %c16_i32_357 : i32 to vector<1x256xi32>
    %754 = arith.cmpi slt, %752, %753 : vector<1x256xi32>
    %755 = arith.andi %750, %754 : vector<1x256xi1>
    %cst_358 = arith.constant 0.000000e+00 : bf16
    %756 = vector.broadcast %cst_358 : bf16 to vector<8x256xbf16>
    %757 = vector.shape_cast %755 : vector<1x256xi1> to vector<1x256xi1>
    %758 = vector.broadcast %757 : vector<1x256xi1> to vector<8x256xi1>
    %759 = arith.select %758, %746, %756 : vector<8x256xi1>, vector<8x256xbf16>
    %c20_359 = arith.constant 20 : index
    %c0_360 = arith.constant 0 : index
    %c0_361 = arith.constant 0 : index
    %760 = vector.load %arg6[%c20_359, %c0_360, %c0_361] : memref<25x8x8xbf16, #tpu.memory_space<vmem>>, vector<1x8x8xbf16>
    %761 = vector.shape_cast %760 : vector<1x8x8xbf16> to vector<8x8xbf16>
    %cst_362 = arith.constant dense<0.000000e+00> : vector<8x256xf32>
    %762 = tpu.matmul %761, %759, %cst_362 {dimension_numbers = #tpu.dot_dimension_numbers<[1], [0], [0], [1], [0, 0, 1, 1], [], []>} : vector<8x8xbf16>, vector<8x256xbf16>, vector<8x256xf32> -> vector<8x256xf32>
    %763 = arith.addf %745, %762 : vector<8x256xf32>
    %764 = vector.extract_strided_slice %436 {offsets = [0, 65], sizes = [8, 256], strides = [1, 1]} : vector<8x324xbf16> to vector<8x256xbf16>
    %c-1_i32_363 = arith.constant -1 : i32
    %765 = vector.broadcast %c-1_i32_363 : i32 to vector<1x256xi32>
    %766 = arith.addi %0, %765 : vector<1x256xi32>
    %c0_i32_364 = arith.constant 0 : i32
    %767 = vector.broadcast %c0_i32_364 : i32 to vector<1x256xi32>
    %768 = arith.cmpi sge, %766, %767 : vector<1x256xi32>
    %c-1_i32_365 = arith.constant -1 : i32
    %769 = vector.broadcast %c-1_i32_365 : i32 to vector<1x256xi32>
    %770 = arith.addi %0, %769 : vector<1x256xi32>
    %c16_i32_366 = arith.constant 16 : i32
    %771 = vector.broadcast %c16_i32_366 : i32 to vector<1x256xi32>
    %772 = arith.cmpi slt, %770, %771 : vector<1x256xi32>
    %773 = arith.andi %768, %772 : vector<1x256xi1>
    %cst_367 = arith.constant 0.000000e+00 : bf16
    %774 = vector.broadcast %cst_367 : bf16 to vector<8x256xbf16>
    %775 = vector.shape_cast %773 : vector<1x256xi1> to vector<1x256xi1>
    %776 = vector.broadcast %775 : vector<1x256xi1> to vector<8x256xi1>
    %777 = arith.select %776, %764, %774 : vector<8x256xi1>, vector<8x256xbf16>
    %c21_368 = arith.constant 21 : index
    %c0_369 = arith.constant 0 : index
    %c0_370 = arith.constant 0 : index
    %778 = vector.load %arg6[%c21_368, %c0_369, %c0_370] : memref<25x8x8xbf16, #tpu.memory_space<vmem>>, vector<1x8x8xbf16>
    %779 = vector.shape_cast %778 : vector<1x8x8xbf16> to vector<8x8xbf16>
    %cst_371 = arith.constant dense<0.000000e+00> : vector<8x256xf32>
    %780 = tpu.matmul %779, %777, %cst_371 {dimension_numbers = #tpu.dot_dimension_numbers<[1], [0], [0], [1], [0, 0, 1, 1], [], []>} : vector<8x8xbf16>, vector<8x256xbf16>, vector<8x256xf32> -> vector<8x256xf32>
    %781 = arith.addf %763, %780 : vector<8x256xf32>
    %782 = vector.extract_strided_slice %436 {offsets = [0, 66], sizes = [8, 256], strides = [1, 1]} : vector<8x324xbf16> to vector<8x256xbf16>
    %c22_372 = arith.constant 22 : index
    %c0_373 = arith.constant 0 : index
    %c0_374 = arith.constant 0 : index
    %783 = vector.load %arg6[%c22_372, %c0_373, %c0_374] : memref<25x8x8xbf16, #tpu.memory_space<vmem>>, vector<1x8x8xbf16>
    %784 = vector.shape_cast %783 : vector<1x8x8xbf16> to vector<8x8xbf16>
    %cst_375 = arith.constant dense<0.000000e+00> : vector<8x256xf32>
    %785 = tpu.matmul %784, %782, %cst_375 {dimension_numbers = #tpu.dot_dimension_numbers<[1], [0], [0], [1], [0, 0, 1, 1], [], []>} : vector<8x8xbf16>, vector<8x256xbf16>, vector<8x256xf32> -> vector<8x256xf32>
    %786 = arith.addf %781, %785 : vector<8x256xf32>
    %787 = vector.extract_strided_slice %436 {offsets = [0, 67], sizes = [8, 256], strides = [1, 1]} : vector<8x324xbf16> to vector<8x256xbf16>
    %c1_i32_376 = arith.constant 1 : i32
    %788 = vector.broadcast %c1_i32_376 : i32 to vector<1x256xi32>
    %789 = arith.addi %0, %788 : vector<1x256xi32>
    %c0_i32_377 = arith.constant 0 : i32
    %790 = vector.broadcast %c0_i32_377 : i32 to vector<1x256xi32>
    %791 = arith.cmpi sge, %789, %790 : vector<1x256xi32>
    %c1_i32_378 = arith.constant 1 : i32
    %792 = vector.broadcast %c1_i32_378 : i32 to vector<1x256xi32>
    %793 = arith.addi %0, %792 : vector<1x256xi32>
    %c16_i32_379 = arith.constant 16 : i32
    %794 = vector.broadcast %c16_i32_379 : i32 to vector<1x256xi32>
    %795 = arith.cmpi slt, %793, %794 : vector<1x256xi32>
    %796 = arith.andi %791, %795 : vector<1x256xi1>
    %cst_380 = arith.constant 0.000000e+00 : bf16
    %797 = vector.broadcast %cst_380 : bf16 to vector<8x256xbf16>
    %798 = vector.shape_cast %796 : vector<1x256xi1> to vector<1x256xi1>
    %799 = vector.broadcast %798 : vector<1x256xi1> to vector<8x256xi1>
    %800 = arith.select %799, %787, %797 : vector<8x256xi1>, vector<8x256xbf16>
    %c23_381 = arith.constant 23 : index
    %c0_382 = arith.constant 0 : index
    %c0_383 = arith.constant 0 : index
    %801 = vector.load %arg6[%c23_381, %c0_382, %c0_383] : memref<25x8x8xbf16, #tpu.memory_space<vmem>>, vector<1x8x8xbf16>
    %802 = vector.shape_cast %801 : vector<1x8x8xbf16> to vector<8x8xbf16>
    %cst_384 = arith.constant dense<0.000000e+00> : vector<8x256xf32>
    %803 = tpu.matmul %802, %800, %cst_384 {dimension_numbers = #tpu.dot_dimension_numbers<[1], [0], [0], [1], [0, 0, 1, 1], [], []>} : vector<8x8xbf16>, vector<8x256xbf16>, vector<8x256xf32> -> vector<8x256xf32>
    %804 = arith.addf %786, %803 : vector<8x256xf32>
    %805 = vector.extract_strided_slice %436 {offsets = [0, 68], sizes = [8, 256], strides = [1, 1]} : vector<8x324xbf16> to vector<8x256xbf16>
    %c2_i32_385 = arith.constant 2 : i32
    %806 = vector.broadcast %c2_i32_385 : i32 to vector<1x256xi32>
    %807 = arith.addi %0, %806 : vector<1x256xi32>
    %c0_i32_386 = arith.constant 0 : i32
    %808 = vector.broadcast %c0_i32_386 : i32 to vector<1x256xi32>
    %809 = arith.cmpi sge, %807, %808 : vector<1x256xi32>
    %c2_i32_387 = arith.constant 2 : i32
    %810 = vector.broadcast %c2_i32_387 : i32 to vector<1x256xi32>
    %811 = arith.addi %0, %810 : vector<1x256xi32>
    %c16_i32_388 = arith.constant 16 : i32
    %812 = vector.broadcast %c16_i32_388 : i32 to vector<1x256xi32>
    %813 = arith.cmpi slt, %811, %812 : vector<1x256xi32>
    %814 = arith.andi %809, %813 : vector<1x256xi1>
    %cst_389 = arith.constant 0.000000e+00 : bf16
    %815 = vector.broadcast %cst_389 : bf16 to vector<8x256xbf16>
    %816 = vector.shape_cast %814 : vector<1x256xi1> to vector<1x256xi1>
    %817 = vector.broadcast %816 : vector<1x256xi1> to vector<8x256xi1>
    %818 = arith.select %817, %805, %815 : vector<8x256xi1>, vector<8x256xbf16>
    %c24_390 = arith.constant 24 : index
    %c0_391 = arith.constant 0 : index
    %c0_392 = arith.constant 0 : index
    %819 = vector.load %arg6[%c24_390, %c0_391, %c0_392] : memref<25x8x8xbf16, #tpu.memory_space<vmem>>, vector<1x8x8xbf16>
    %820 = vector.shape_cast %819 : vector<1x8x8xbf16> to vector<8x8xbf16>
    %cst_393 = arith.constant dense<0.000000e+00> : vector<8x256xf32>
    %821 = tpu.matmul %820, %818, %cst_393 {dimension_numbers = #tpu.dot_dimension_numbers<[1], [0], [0], [1], [0, 0, 1, 1], [], []>} : vector<8x8xbf16>, vector<8x256xbf16>, vector<8x256xf32> -> vector<8x256xf32>
    %822 = arith.addf %804, %821 : vector<8x256xf32>
    %c0_394 = arith.constant 0 : index
    %c0_395 = arith.constant 0 : index
    %823 = vector.load %arg7[%c0_394, %c0_395] : memref<8x1xf32, #tpu.memory_space<vmem>>, vector<8x1xf32>
    %824 = vector.broadcast %823 : vector<8x1xf32> to vector<8x256xf32>
    %825 = arith.addf %822, %824 : vector<8x256xf32>
    %826 = arith.truncf %825 : vector<8x256xf32> to vector<8x256xbf16>
    %cst_396 = arith.constant 0.000000e+00 : bf16
    %827 = vector.broadcast %cst_396 : bf16 to vector<8x17xbf16>
    %828 = tpu.concatenate %827, %826, %827 in 1 : vector<8x17xbf16>, vector<8x256xbf16>, vector<8x17xbf16> -> vector<8x290xbf16>
    %cst_397 = arith.constant 0.000000e+00 : f32
    %829 = vector.broadcast %cst_397 : f32 to vector<4x256xf32>
    %830 = vector.extract_strided_slice %828 {offsets = [0, 0], sizes = [8, 256], strides = [1, 1]} : vector<8x290xbf16> to vector<8x256xbf16>
    %c-1_i32_398 = arith.constant -1 : i32
    %831 = vector.broadcast %c-1_i32_398 : i32 to vector<1x256xi32>
    %832 = arith.addi %0, %831 : vector<1x256xi32>
    %c0_i32_399 = arith.constant 0 : i32
    %833 = vector.broadcast %c0_i32_399 : i32 to vector<1x256xi32>
    %834 = arith.cmpi sge, %832, %833 : vector<1x256xi32>
    %c-1_i32_400 = arith.constant -1 : i32
    %835 = vector.broadcast %c-1_i32_400 : i32 to vector<1x256xi32>
    %836 = arith.addi %0, %835 : vector<1x256xi32>
    %c16_i32_401 = arith.constant 16 : i32
    %837 = vector.broadcast %c16_i32_401 : i32 to vector<1x256xi32>
    %838 = arith.cmpi slt, %836, %837 : vector<1x256xi32>
    %839 = arith.andi %834, %838 : vector<1x256xi1>
    %cst_402 = arith.constant 0.000000e+00 : bf16
    %840 = vector.broadcast %cst_402 : bf16 to vector<8x256xbf16>
    %841 = vector.shape_cast %839 : vector<1x256xi1> to vector<1x256xi1>
    %842 = vector.broadcast %841 : vector<1x256xi1> to vector<8x256xi1>
    %843 = arith.select %842, %830, %840 : vector<8x256xi1>, vector<8x256xbf16>
    %c0_403 = arith.constant 0 : index
    %c0_404 = arith.constant 0 : index
    %c0_405 = arith.constant 0 : index
    %844 = vector.load %arg8[%c0_403, %c0_404, %c0_405] : memref<9x4x8xbf16, #tpu.memory_space<vmem>>, vector<1x4x8xbf16>
    %845 = vector.shape_cast %844 : vector<1x4x8xbf16> to vector<4x8xbf16>
    %cst_406 = arith.constant dense<0.000000e+00> : vector<4x256xf32>
    %846 = tpu.matmul %845, %843, %cst_406 {dimension_numbers = #tpu.dot_dimension_numbers<[1], [0], [0], [1], [0, 0, 1, 1], [], []>} : vector<4x8xbf16>, vector<8x256xbf16>, vector<4x256xf32> -> vector<4x256xf32>
    %847 = arith.addf %829, %846 : vector<4x256xf32>
    %848 = vector.extract_strided_slice %828 {offsets = [0, 1], sizes = [8, 256], strides = [1, 1]} : vector<8x290xbf16> to vector<8x256xbf16>
    %c1_407 = arith.constant 1 : index
    %c0_408 = arith.constant 0 : index
    %c0_409 = arith.constant 0 : index
    %849 = vector.load %arg8[%c1_407, %c0_408, %c0_409] : memref<9x4x8xbf16, #tpu.memory_space<vmem>>, vector<1x4x8xbf16>
    %850 = vector.shape_cast %849 : vector<1x4x8xbf16> to vector<4x8xbf16>
    %cst_410 = arith.constant dense<0.000000e+00> : vector<4x256xf32>
    %851 = tpu.matmul %850, %848, %cst_410 {dimension_numbers = #tpu.dot_dimension_numbers<[1], [0], [0], [1], [0, 0, 1, 1], [], []>} : vector<4x8xbf16>, vector<8x256xbf16>, vector<4x256xf32> -> vector<4x256xf32>
    %852 = arith.addf %847, %851 : vector<4x256xf32>
    %853 = vector.extract_strided_slice %828 {offsets = [0, 2], sizes = [8, 256], strides = [1, 1]} : vector<8x290xbf16> to vector<8x256xbf16>
    %c1_i32_411 = arith.constant 1 : i32
    %854 = vector.broadcast %c1_i32_411 : i32 to vector<1x256xi32>
    %855 = arith.addi %0, %854 : vector<1x256xi32>
    %c0_i32_412 = arith.constant 0 : i32
    %856 = vector.broadcast %c0_i32_412 : i32 to vector<1x256xi32>
    %857 = arith.cmpi sge, %855, %856 : vector<1x256xi32>
    %c1_i32_413 = arith.constant 1 : i32
    %858 = vector.broadcast %c1_i32_413 : i32 to vector<1x256xi32>
    %859 = arith.addi %0, %858 : vector<1x256xi32>
    %c16_i32_414 = arith.constant 16 : i32
    %860 = vector.broadcast %c16_i32_414 : i32 to vector<1x256xi32>
    %861 = arith.cmpi slt, %859, %860 : vector<1x256xi32>
    %862 = arith.andi %857, %861 : vector<1x256xi1>
    %cst_415 = arith.constant 0.000000e+00 : bf16
    %863 = vector.broadcast %cst_415 : bf16 to vector<8x256xbf16>
    %864 = vector.shape_cast %862 : vector<1x256xi1> to vector<1x256xi1>
    %865 = vector.broadcast %864 : vector<1x256xi1> to vector<8x256xi1>
    %866 = arith.select %865, %853, %863 : vector<8x256xi1>, vector<8x256xbf16>
    %c2_416 = arith.constant 2 : index
    %c0_417 = arith.constant 0 : index
    %c0_418 = arith.constant 0 : index
    %867 = vector.load %arg8[%c2_416, %c0_417, %c0_418] : memref<9x4x8xbf16, #tpu.memory_space<vmem>>, vector<1x4x8xbf16>
    %868 = vector.shape_cast %867 : vector<1x4x8xbf16> to vector<4x8xbf16>
    %cst_419 = arith.constant dense<0.000000e+00> : vector<4x256xf32>
    %869 = tpu.matmul %868, %866, %cst_419 {dimension_numbers = #tpu.dot_dimension_numbers<[1], [0], [0], [1], [0, 0, 1, 1], [], []>} : vector<4x8xbf16>, vector<8x256xbf16>, vector<4x256xf32> -> vector<4x256xf32>
    %870 = arith.addf %852, %869 : vector<4x256xf32>
    %871 = vector.extract_strided_slice %828 {offsets = [0, 16], sizes = [8, 256], strides = [1, 1]} : vector<8x290xbf16> to vector<8x256xbf16>
    %c-1_i32_420 = arith.constant -1 : i32
    %872 = vector.broadcast %c-1_i32_420 : i32 to vector<1x256xi32>
    %873 = arith.addi %0, %872 : vector<1x256xi32>
    %c0_i32_421 = arith.constant 0 : i32
    %874 = vector.broadcast %c0_i32_421 : i32 to vector<1x256xi32>
    %875 = arith.cmpi sge, %873, %874 : vector<1x256xi32>
    %c-1_i32_422 = arith.constant -1 : i32
    %876 = vector.broadcast %c-1_i32_422 : i32 to vector<1x256xi32>
    %877 = arith.addi %0, %876 : vector<1x256xi32>
    %c16_i32_423 = arith.constant 16 : i32
    %878 = vector.broadcast %c16_i32_423 : i32 to vector<1x256xi32>
    %879 = arith.cmpi slt, %877, %878 : vector<1x256xi32>
    %880 = arith.andi %875, %879 : vector<1x256xi1>
    %cst_424 = arith.constant 0.000000e+00 : bf16
    %881 = vector.broadcast %cst_424 : bf16 to vector<8x256xbf16>
    %882 = vector.shape_cast %880 : vector<1x256xi1> to vector<1x256xi1>
    %883 = vector.broadcast %882 : vector<1x256xi1> to vector<8x256xi1>
    %884 = arith.select %883, %871, %881 : vector<8x256xi1>, vector<8x256xbf16>
    %c3_425 = arith.constant 3 : index
    %c0_426 = arith.constant 0 : index
    %c0_427 = arith.constant 0 : index
    %885 = vector.load %arg8[%c3_425, %c0_426, %c0_427] : memref<9x4x8xbf16, #tpu.memory_space<vmem>>, vector<1x4x8xbf16>
    %886 = vector.shape_cast %885 : vector<1x4x8xbf16> to vector<4x8xbf16>
    %cst_428 = arith.constant dense<0.000000e+00> : vector<4x256xf32>
    %887 = tpu.matmul %886, %884, %cst_428 {dimension_numbers = #tpu.dot_dimension_numbers<[1], [0], [0], [1], [0, 0, 1, 1], [], []>} : vector<4x8xbf16>, vector<8x256xbf16>, vector<4x256xf32> -> vector<4x256xf32>
    %888 = arith.addf %870, %887 : vector<4x256xf32>
    %889 = vector.extract_strided_slice %828 {offsets = [0, 17], sizes = [8, 256], strides = [1, 1]} : vector<8x290xbf16> to vector<8x256xbf16>
    %c4_429 = arith.constant 4 : index
    %c0_430 = arith.constant 0 : index
    %c0_431 = arith.constant 0 : index
    %890 = vector.load %arg8[%c4_429, %c0_430, %c0_431] : memref<9x4x8xbf16, #tpu.memory_space<vmem>>, vector<1x4x8xbf16>
    %891 = vector.shape_cast %890 : vector<1x4x8xbf16> to vector<4x8xbf16>
    %cst_432 = arith.constant dense<0.000000e+00> : vector<4x256xf32>
    %892 = tpu.matmul %891, %889, %cst_432 {dimension_numbers = #tpu.dot_dimension_numbers<[1], [0], [0], [1], [0, 0, 1, 1], [], []>} : vector<4x8xbf16>, vector<8x256xbf16>, vector<4x256xf32> -> vector<4x256xf32>
    %893 = arith.addf %888, %892 : vector<4x256xf32>
    %894 = vector.extract_strided_slice %828 {offsets = [0, 18], sizes = [8, 256], strides = [1, 1]} : vector<8x290xbf16> to vector<8x256xbf16>
    %c1_i32_433 = arith.constant 1 : i32
    %895 = vector.broadcast %c1_i32_433 : i32 to vector<1x256xi32>
    %896 = arith.addi %0, %895 : vector<1x256xi32>
    %c0_i32_434 = arith.constant 0 : i32
    %897 = vector.broadcast %c0_i32_434 : i32 to vector<1x256xi32>
    %898 = arith.cmpi sge, %896, %897 : vector<1x256xi32>
    %c1_i32_435 = arith.constant 1 : i32
    %899 = vector.broadcast %c1_i32_435 : i32 to vector<1x256xi32>
    %900 = arith.addi %0, %899 : vector<1x256xi32>
    %c16_i32_436 = arith.constant 16 : i32
    %901 = vector.broadcast %c16_i32_436 : i32 to vector<1x256xi32>
    %902 = arith.cmpi slt, %900, %901 : vector<1x256xi32>
    %903 = arith.andi %898, %902 : vector<1x256xi1>
    %cst_437 = arith.constant 0.000000e+00 : bf16
    %904 = vector.broadcast %cst_437 : bf16 to vector<8x256xbf16>
    %905 = vector.shape_cast %903 : vector<1x256xi1> to vector<1x256xi1>
    %906 = vector.broadcast %905 : vector<1x256xi1> to vector<8x256xi1>
    %907 = arith.select %906, %894, %904 : vector<8x256xi1>, vector<8x256xbf16>
    %c5_438 = arith.constant 5 : index
    %c0_439 = arith.constant 0 : index
    %c0_440 = arith.constant 0 : index
    %908 = vector.load %arg8[%c5_438, %c0_439, %c0_440] : memref<9x4x8xbf16, #tpu.memory_space<vmem>>, vector<1x4x8xbf16>
    %909 = vector.shape_cast %908 : vector<1x4x8xbf16> to vector<4x8xbf16>
    %cst_441 = arith.constant dense<0.000000e+00> : vector<4x256xf32>
    %910 = tpu.matmul %909, %907, %cst_441 {dimension_numbers = #tpu.dot_dimension_numbers<[1], [0], [0], [1], [0, 0, 1, 1], [], []>} : vector<4x8xbf16>, vector<8x256xbf16>, vector<4x256xf32> -> vector<4x256xf32>
    %911 = arith.addf %893, %910 : vector<4x256xf32>
    %912 = vector.extract_strided_slice %828 {offsets = [0, 32], sizes = [8, 256], strides = [1, 1]} : vector<8x290xbf16> to vector<8x256xbf16>
    %c-1_i32_442 = arith.constant -1 : i32
    %913 = vector.broadcast %c-1_i32_442 : i32 to vector<1x256xi32>
    %914 = arith.addi %0, %913 : vector<1x256xi32>
    %c0_i32_443 = arith.constant 0 : i32
    %915 = vector.broadcast %c0_i32_443 : i32 to vector<1x256xi32>
    %916 = arith.cmpi sge, %914, %915 : vector<1x256xi32>
    %c-1_i32_444 = arith.constant -1 : i32
    %917 = vector.broadcast %c-1_i32_444 : i32 to vector<1x256xi32>
    %918 = arith.addi %0, %917 : vector<1x256xi32>
    %c16_i32_445 = arith.constant 16 : i32
    %919 = vector.broadcast %c16_i32_445 : i32 to vector<1x256xi32>
    %920 = arith.cmpi slt, %918, %919 : vector<1x256xi32>
    %921 = arith.andi %916, %920 : vector<1x256xi1>
    %cst_446 = arith.constant 0.000000e+00 : bf16
    %922 = vector.broadcast %cst_446 : bf16 to vector<8x256xbf16>
    %923 = vector.shape_cast %921 : vector<1x256xi1> to vector<1x256xi1>
    %924 = vector.broadcast %923 : vector<1x256xi1> to vector<8x256xi1>
    %925 = arith.select %924, %912, %922 : vector<8x256xi1>, vector<8x256xbf16>
    %c6_447 = arith.constant 6 : index
    %c0_448 = arith.constant 0 : index
    %c0_449 = arith.constant 0 : index
    %926 = vector.load %arg8[%c6_447, %c0_448, %c0_449] : memref<9x4x8xbf16, #tpu.memory_space<vmem>>, vector<1x4x8xbf16>
    %927 = vector.shape_cast %926 : vector<1x4x8xbf16> to vector<4x8xbf16>
    %cst_450 = arith.constant dense<0.000000e+00> : vector<4x256xf32>
    %928 = tpu.matmul %927, %925, %cst_450 {dimension_numbers = #tpu.dot_dimension_numbers<[1], [0], [0], [1], [0, 0, 1, 1], [], []>} : vector<4x8xbf16>, vector<8x256xbf16>, vector<4x256xf32> -> vector<4x256xf32>
    %929 = arith.addf %911, %928 : vector<4x256xf32>
    %930 = vector.extract_strided_slice %828 {offsets = [0, 33], sizes = [8, 256], strides = [1, 1]} : vector<8x290xbf16> to vector<8x256xbf16>
    %c7_451 = arith.constant 7 : index
    %c0_452 = arith.constant 0 : index
    %c0_453 = arith.constant 0 : index
    %931 = vector.load %arg8[%c7_451, %c0_452, %c0_453] : memref<9x4x8xbf16, #tpu.memory_space<vmem>>, vector<1x4x8xbf16>
    %932 = vector.shape_cast %931 : vector<1x4x8xbf16> to vector<4x8xbf16>
    %cst_454 = arith.constant dense<0.000000e+00> : vector<4x256xf32>
    %933 = tpu.matmul %932, %930, %cst_454 {dimension_numbers = #tpu.dot_dimension_numbers<[1], [0], [0], [1], [0, 0, 1, 1], [], []>} : vector<4x8xbf16>, vector<8x256xbf16>, vector<4x256xf32> -> vector<4x256xf32>
    %934 = arith.addf %929, %933 : vector<4x256xf32>
    %935 = vector.extract_strided_slice %828 {offsets = [0, 34], sizes = [8, 256], strides = [1, 1]} : vector<8x290xbf16> to vector<8x256xbf16>
    %c1_i32_455 = arith.constant 1 : i32
    %936 = vector.broadcast %c1_i32_455 : i32 to vector<1x256xi32>
    %937 = arith.addi %0, %936 : vector<1x256xi32>
    %c0_i32_456 = arith.constant 0 : i32
    %938 = vector.broadcast %c0_i32_456 : i32 to vector<1x256xi32>
    %939 = arith.cmpi sge, %937, %938 : vector<1x256xi32>
    %c1_i32_457 = arith.constant 1 : i32
    %940 = vector.broadcast %c1_i32_457 : i32 to vector<1x256xi32>
    %941 = arith.addi %0, %940 : vector<1x256xi32>
    %c16_i32_458 = arith.constant 16 : i32
    %942 = vector.broadcast %c16_i32_458 : i32 to vector<1x256xi32>
    %943 = arith.cmpi slt, %941, %942 : vector<1x256xi32>
    %944 = arith.andi %939, %943 : vector<1x256xi1>
    %cst_459 = arith.constant 0.000000e+00 : bf16
    %945 = vector.broadcast %cst_459 : bf16 to vector<8x256xbf16>
    %946 = vector.shape_cast %944 : vector<1x256xi1> to vector<1x256xi1>
    %947 = vector.broadcast %946 : vector<1x256xi1> to vector<8x256xi1>
    %948 = arith.select %947, %935, %945 : vector<8x256xi1>, vector<8x256xbf16>
    %c8_460 = arith.constant 8 : index
    %c0_461 = arith.constant 0 : index
    %c0_462 = arith.constant 0 : index
    %949 = vector.load %arg8[%c8_460, %c0_461, %c0_462] : memref<9x4x8xbf16, #tpu.memory_space<vmem>>, vector<1x4x8xbf16>
    %950 = vector.shape_cast %949 : vector<1x4x8xbf16> to vector<4x8xbf16>
    %cst_463 = arith.constant dense<0.000000e+00> : vector<4x256xf32>
    %951 = tpu.matmul %950, %948, %cst_463 {dimension_numbers = #tpu.dot_dimension_numbers<[1], [0], [0], [1], [0, 0, 1, 1], [], []>} : vector<4x8xbf16>, vector<8x256xbf16>, vector<4x256xf32> -> vector<4x256xf32>
    %952 = arith.addf %934, %951 : vector<4x256xf32>
    %c0_464 = arith.constant 0 : index
    %c0_465 = arith.constant 0 : index
    %953 = vector.load %arg9[%c0_464, %c0_465] : memref<4x1xf32, #tpu.memory_space<vmem>>, vector<4x1xf32>
    %954 = vector.broadcast %953 : vector<4x1xf32> to vector<4x256xf32>
    %955 = arith.addf %952, %954 : vector<4x256xf32>
    %956 = arith.truncf %955 : vector<4x256xf32> to vector<4x256xbf16>
    %cst_466 = arith.constant 0.000000e+00 : bf16
    %957 = vector.broadcast %cst_466 : bf16 to vector<4x17xbf16>
    %958 = tpu.concatenate %957, %956, %957 in 1 : vector<4x17xbf16>, vector<4x256xbf16>, vector<4x17xbf16> -> vector<4x290xbf16>
    %cst_467 = arith.constant 0.000000e+00 : f32
    %959 = vector.broadcast %cst_467 : f32 to vector<8x256xf32>
    %960 = vector.extract_strided_slice %958 {offsets = [0, 0], sizes = [4, 256], strides = [1, 1]} : vector<4x290xbf16> to vector<4x256xbf16>
    %c-1_i32_468 = arith.constant -1 : i32
    %961 = vector.broadcast %c-1_i32_468 : i32 to vector<1x256xi32>
    %962 = arith.addi %0, %961 : vector<1x256xi32>
    %c0_i32_469 = arith.constant 0 : i32
    %963 = vector.broadcast %c0_i32_469 : i32 to vector<1x256xi32>
    %964 = arith.cmpi sge, %962, %963 : vector<1x256xi32>
    %c-1_i32_470 = arith.constant -1 : i32
    %965 = vector.broadcast %c-1_i32_470 : i32 to vector<1x256xi32>
    %966 = arith.addi %0, %965 : vector<1x256xi32>
    %c16_i32_471 = arith.constant 16 : i32
    %967 = vector.broadcast %c16_i32_471 : i32 to vector<1x256xi32>
    %968 = arith.cmpi slt, %966, %967 : vector<1x256xi32>
    %969 = arith.andi %964, %968 : vector<1x256xi1>
    %cst_472 = arith.constant 0.000000e+00 : bf16
    %970 = vector.broadcast %cst_472 : bf16 to vector<4x256xbf16>
    %971 = vector.shape_cast %969 : vector<1x256xi1> to vector<1x256xi1>
    %972 = vector.broadcast %971 : vector<1x256xi1> to vector<4x256xi1>
    %973 = arith.select %972, %960, %970 : vector<4x256xi1>, vector<4x256xbf16>
    %c0_473 = arith.constant 0 : index
    %c0_474 = arith.constant 0 : index
    %c0_475 = arith.constant 0 : index
    %974 = vector.load %arg10[%c0_473, %c0_474, %c0_475] : memref<9x8x4xbf16, #tpu.memory_space<vmem>>, vector<1x8x4xbf16>
    %975 = vector.shape_cast %974 : vector<1x8x4xbf16> to vector<8x4xbf16>
    %cst_476 = arith.constant dense<0.000000e+00> : vector<8x256xf32>
    %976 = tpu.matmul %975, %973, %cst_476 {dimension_numbers = #tpu.dot_dimension_numbers<[1], [0], [0], [1], [0, 0, 1, 1], [], []>} : vector<8x4xbf16>, vector<4x256xbf16>, vector<8x256xf32> -> vector<8x256xf32>
    %977 = arith.addf %959, %976 : vector<8x256xf32>
    %978 = vector.extract_strided_slice %958 {offsets = [0, 1], sizes = [4, 256], strides = [1, 1]} : vector<4x290xbf16> to vector<4x256xbf16>
    %c1_477 = arith.constant 1 : index
    %c0_478 = arith.constant 0 : index
    %c0_479 = arith.constant 0 : index
    %979 = vector.load %arg10[%c1_477, %c0_478, %c0_479] : memref<9x8x4xbf16, #tpu.memory_space<vmem>>, vector<1x8x4xbf16>
    %980 = vector.shape_cast %979 : vector<1x8x4xbf16> to vector<8x4xbf16>
    %cst_480 = arith.constant dense<0.000000e+00> : vector<8x256xf32>
    %981 = tpu.matmul %980, %978, %cst_480 {dimension_numbers = #tpu.dot_dimension_numbers<[1], [0], [0], [1], [0, 0, 1, 1], [], []>} : vector<8x4xbf16>, vector<4x256xbf16>, vector<8x256xf32> -> vector<8x256xf32>
    %982 = arith.addf %977, %981 : vector<8x256xf32>
    %983 = vector.extract_strided_slice %958 {offsets = [0, 2], sizes = [4, 256], strides = [1, 1]} : vector<4x290xbf16> to vector<4x256xbf16>
    %c1_i32_481 = arith.constant 1 : i32
    %984 = vector.broadcast %c1_i32_481 : i32 to vector<1x256xi32>
    %985 = arith.addi %0, %984 : vector<1x256xi32>
    %c0_i32_482 = arith.constant 0 : i32
    %986 = vector.broadcast %c0_i32_482 : i32 to vector<1x256xi32>
    %987 = arith.cmpi sge, %985, %986 : vector<1x256xi32>
    %c1_i32_483 = arith.constant 1 : i32
    %988 = vector.broadcast %c1_i32_483 : i32 to vector<1x256xi32>
    %989 = arith.addi %0, %988 : vector<1x256xi32>
    %c16_i32_484 = arith.constant 16 : i32
    %990 = vector.broadcast %c16_i32_484 : i32 to vector<1x256xi32>
    %991 = arith.cmpi slt, %989, %990 : vector<1x256xi32>
    %992 = arith.andi %987, %991 : vector<1x256xi1>
    %cst_485 = arith.constant 0.000000e+00 : bf16
    %993 = vector.broadcast %cst_485 : bf16 to vector<4x256xbf16>
    %994 = vector.shape_cast %992 : vector<1x256xi1> to vector<1x256xi1>
    %995 = vector.broadcast %994 : vector<1x256xi1> to vector<4x256xi1>
    %996 = arith.select %995, %983, %993 : vector<4x256xi1>, vector<4x256xbf16>
    %c2_486 = arith.constant 2 : index
    %c0_487 = arith.constant 0 : index
    %c0_488 = arith.constant 0 : index
    %997 = vector.load %arg10[%c2_486, %c0_487, %c0_488] : memref<9x8x4xbf16, #tpu.memory_space<vmem>>, vector<1x8x4xbf16>
    %998 = vector.shape_cast %997 : vector<1x8x4xbf16> to vector<8x4xbf16>
    %cst_489 = arith.constant dense<0.000000e+00> : vector<8x256xf32>
    %999 = tpu.matmul %998, %996, %cst_489 {dimension_numbers = #tpu.dot_dimension_numbers<[1], [0], [0], [1], [0, 0, 1, 1], [], []>} : vector<8x4xbf16>, vector<4x256xbf16>, vector<8x256xf32> -> vector<8x256xf32>
    %1000 = arith.addf %982, %999 : vector<8x256xf32>
    %1001 = vector.extract_strided_slice %958 {offsets = [0, 16], sizes = [4, 256], strides = [1, 1]} : vector<4x290xbf16> to vector<4x256xbf16>
    %c-1_i32_490 = arith.constant -1 : i32
    %1002 = vector.broadcast %c-1_i32_490 : i32 to vector<1x256xi32>
    %1003 = arith.addi %0, %1002 : vector<1x256xi32>
    %c0_i32_491 = arith.constant 0 : i32
    %1004 = vector.broadcast %c0_i32_491 : i32 to vector<1x256xi32>
    %1005 = arith.cmpi sge, %1003, %1004 : vector<1x256xi32>
    %c-1_i32_492 = arith.constant -1 : i32
    %1006 = vector.broadcast %c-1_i32_492 : i32 to vector<1x256xi32>
    %1007 = arith.addi %0, %1006 : vector<1x256xi32>
    %c16_i32_493 = arith.constant 16 : i32
    %1008 = vector.broadcast %c16_i32_493 : i32 to vector<1x256xi32>
    %1009 = arith.cmpi slt, %1007, %1008 : vector<1x256xi32>
    %1010 = arith.andi %1005, %1009 : vector<1x256xi1>
    %cst_494 = arith.constant 0.000000e+00 : bf16
    %1011 = vector.broadcast %cst_494 : bf16 to vector<4x256xbf16>
    %1012 = vector.shape_cast %1010 : vector<1x256xi1> to vector<1x256xi1>
    %1013 = vector.broadcast %1012 : vector<1x256xi1> to vector<4x256xi1>
    %1014 = arith.select %1013, %1001, %1011 : vector<4x256xi1>, vector<4x256xbf16>
    %c3_495 = arith.constant 3 : index
    %c0_496 = arith.constant 0 : index
    %c0_497 = arith.constant 0 : index
    %1015 = vector.load %arg10[%c3_495, %c0_496, %c0_497] : memref<9x8x4xbf16, #tpu.memory_space<vmem>>, vector<1x8x4xbf16>
    %1016 = vector.shape_cast %1015 : vector<1x8x4xbf16> to vector<8x4xbf16>
    %cst_498 = arith.constant dense<0.000000e+00> : vector<8x256xf32>
    %1017 = tpu.matmul %1016, %1014, %cst_498 {dimension_numbers = #tpu.dot_dimension_numbers<[1], [0], [0], [1], [0, 0, 1, 1], [], []>} : vector<8x4xbf16>, vector<4x256xbf16>, vector<8x256xf32> -> vector<8x256xf32>
    %1018 = arith.addf %1000, %1017 : vector<8x256xf32>
    %1019 = vector.extract_strided_slice %958 {offsets = [0, 17], sizes = [4, 256], strides = [1, 1]} : vector<4x290xbf16> to vector<4x256xbf16>
    %c4_499 = arith.constant 4 : index
    %c0_500 = arith.constant 0 : index
    %c0_501 = arith.constant 0 : index
    %1020 = vector.load %arg10[%c4_499, %c0_500, %c0_501] : memref<9x8x4xbf16, #tpu.memory_space<vmem>>, vector<1x8x4xbf16>
    %1021 = vector.shape_cast %1020 : vector<1x8x4xbf16> to vector<8x4xbf16>
    %cst_502 = arith.constant dense<0.000000e+00> : vector<8x256xf32>
    %1022 = tpu.matmul %1021, %1019, %cst_502 {dimension_numbers = #tpu.dot_dimension_numbers<[1], [0], [0], [1], [0, 0, 1, 1], [], []>} : vector<8x4xbf16>, vector<4x256xbf16>, vector<8x256xf32> -> vector<8x256xf32>
    %1023 = arith.addf %1018, %1022 : vector<8x256xf32>
    %1024 = vector.extract_strided_slice %958 {offsets = [0, 18], sizes = [4, 256], strides = [1, 1]} : vector<4x290xbf16> to vector<4x256xbf16>
    %c1_i32_503 = arith.constant 1 : i32
    %1025 = vector.broadcast %c1_i32_503 : i32 to vector<1x256xi32>
    %1026 = arith.addi %0, %1025 : vector<1x256xi32>
    %c0_i32_504 = arith.constant 0 : i32
    %1027 = vector.broadcast %c0_i32_504 : i32 to vector<1x256xi32>
    %1028 = arith.cmpi sge, %1026, %1027 : vector<1x256xi32>
    %c1_i32_505 = arith.constant 1 : i32
    %1029 = vector.broadcast %c1_i32_505 : i32 to vector<1x256xi32>
    %1030 = arith.addi %0, %1029 : vector<1x256xi32>
    %c16_i32_506 = arith.constant 16 : i32
    %1031 = vector.broadcast %c16_i32_506 : i32 to vector<1x256xi32>
    %1032 = arith.cmpi slt, %1030, %1031 : vector<1x256xi32>
    %1033 = arith.andi %1028, %1032 : vector<1x256xi1>
    %cst_507 = arith.constant 0.000000e+00 : bf16
    %1034 = vector.broadcast %cst_507 : bf16 to vector<4x256xbf16>
    %1035 = vector.shape_cast %1033 : vector<1x256xi1> to vector<1x256xi1>
    %1036 = vector.broadcast %1035 : vector<1x256xi1> to vector<4x256xi1>
    %1037 = arith.select %1036, %1024, %1034 : vector<4x256xi1>, vector<4x256xbf16>
    %c5_508 = arith.constant 5 : index
    %c0_509 = arith.constant 0 : index
    %c0_510 = arith.constant 0 : index
    %1038 = vector.load %arg10[%c5_508, %c0_509, %c0_510] : memref<9x8x4xbf16, #tpu.memory_space<vmem>>, vector<1x8x4xbf16>
    %1039 = vector.shape_cast %1038 : vector<1x8x4xbf16> to vector<8x4xbf16>
    %cst_511 = arith.constant dense<0.000000e+00> : vector<8x256xf32>
    %1040 = tpu.matmul %1039, %1037, %cst_511 {dimension_numbers = #tpu.dot_dimension_numbers<[1], [0], [0], [1], [0, 0, 1, 1], [], []>} : vector<8x4xbf16>, vector<4x256xbf16>, vector<8x256xf32> -> vector<8x256xf32>
    %1041 = arith.addf %1023, %1040 : vector<8x256xf32>
    %1042 = vector.extract_strided_slice %958 {offsets = [0, 32], sizes = [4, 256], strides = [1, 1]} : vector<4x290xbf16> to vector<4x256xbf16>
    %c-1_i32_512 = arith.constant -1 : i32
    %1043 = vector.broadcast %c-1_i32_512 : i32 to vector<1x256xi32>
    %1044 = arith.addi %0, %1043 : vector<1x256xi32>
    %c0_i32_513 = arith.constant 0 : i32
    %1045 = vector.broadcast %c0_i32_513 : i32 to vector<1x256xi32>
    %1046 = arith.cmpi sge, %1044, %1045 : vector<1x256xi32>
    %c-1_i32_514 = arith.constant -1 : i32
    %1047 = vector.broadcast %c-1_i32_514 : i32 to vector<1x256xi32>
    %1048 = arith.addi %0, %1047 : vector<1x256xi32>
    %c16_i32_515 = arith.constant 16 : i32
    %1049 = vector.broadcast %c16_i32_515 : i32 to vector<1x256xi32>
    %1050 = arith.cmpi slt, %1048, %1049 : vector<1x256xi32>
    %1051 = arith.andi %1046, %1050 : vector<1x256xi1>
    %cst_516 = arith.constant 0.000000e+00 : bf16
    %1052 = vector.broadcast %cst_516 : bf16 to vector<4x256xbf16>
    %1053 = vector.shape_cast %1051 : vector<1x256xi1> to vector<1x256xi1>
    %1054 = vector.broadcast %1053 : vector<1x256xi1> to vector<4x256xi1>
    %1055 = arith.select %1054, %1042, %1052 : vector<4x256xi1>, vector<4x256xbf16>
    %c6_517 = arith.constant 6 : index
    %c0_518 = arith.constant 0 : index
    %c0_519 = arith.constant 0 : index
    %1056 = vector.load %arg10[%c6_517, %c0_518, %c0_519] : memref<9x8x4xbf16, #tpu.memory_space<vmem>>, vector<1x8x4xbf16>
    %1057 = vector.shape_cast %1056 : vector<1x8x4xbf16> to vector<8x4xbf16>
    %cst_520 = arith.constant dense<0.000000e+00> : vector<8x256xf32>
    %1058 = tpu.matmul %1057, %1055, %cst_520 {dimension_numbers = #tpu.dot_dimension_numbers<[1], [0], [0], [1], [0, 0, 1, 1], [], []>} : vector<8x4xbf16>, vector<4x256xbf16>, vector<8x256xf32> -> vector<8x256xf32>
    %1059 = arith.addf %1041, %1058 : vector<8x256xf32>
    %1060 = vector.extract_strided_slice %958 {offsets = [0, 33], sizes = [4, 256], strides = [1, 1]} : vector<4x290xbf16> to vector<4x256xbf16>
    %c7_521 = arith.constant 7 : index
    %c0_522 = arith.constant 0 : index
    %c0_523 = arith.constant 0 : index
    %1061 = vector.load %arg10[%c7_521, %c0_522, %c0_523] : memref<9x8x4xbf16, #tpu.memory_space<vmem>>, vector<1x8x4xbf16>
    %1062 = vector.shape_cast %1061 : vector<1x8x4xbf16> to vector<8x4xbf16>
    %cst_524 = arith.constant dense<0.000000e+00> : vector<8x256xf32>
    %1063 = tpu.matmul %1062, %1060, %cst_524 {dimension_numbers = #tpu.dot_dimension_numbers<[1], [0], [0], [1], [0, 0, 1, 1], [], []>} : vector<8x4xbf16>, vector<4x256xbf16>, vector<8x256xf32> -> vector<8x256xf32>
    %1064 = arith.addf %1059, %1063 : vector<8x256xf32>
    %1065 = vector.extract_strided_slice %958 {offsets = [0, 34], sizes = [4, 256], strides = [1, 1]} : vector<4x290xbf16> to vector<4x256xbf16>
    %c1_i32_525 = arith.constant 1 : i32
    %1066 = vector.broadcast %c1_i32_525 : i32 to vector<1x256xi32>
    %1067 = arith.addi %0, %1066 : vector<1x256xi32>
    %c0_i32_526 = arith.constant 0 : i32
    %1068 = vector.broadcast %c0_i32_526 : i32 to vector<1x256xi32>
    %1069 = arith.cmpi sge, %1067, %1068 : vector<1x256xi32>
    %c1_i32_527 = arith.constant 1 : i32
    %1070 = vector.broadcast %c1_i32_527 : i32 to vector<1x256xi32>
    %1071 = arith.addi %0, %1070 : vector<1x256xi32>
    %c16_i32_528 = arith.constant 16 : i32
    %1072 = vector.broadcast %c16_i32_528 : i32 to vector<1x256xi32>
    %1073 = arith.cmpi slt, %1071, %1072 : vector<1x256xi32>
    %1074 = arith.andi %1069, %1073 : vector<1x256xi1>
    %cst_529 = arith.constant 0.000000e+00 : bf16
    %1075 = vector.broadcast %cst_529 : bf16 to vector<4x256xbf16>
    %1076 = vector.shape_cast %1074 : vector<1x256xi1> to vector<1x256xi1>
    %1077 = vector.broadcast %1076 : vector<1x256xi1> to vector<4x256xi1>
    %1078 = arith.select %1077, %1065, %1075 : vector<4x256xi1>, vector<4x256xbf16>
    %c8_530 = arith.constant 8 : index
    %c0_531 = arith.constant 0 : index
    %c0_532 = arith.constant 0 : index
    %1079 = vector.load %arg10[%c8_530, %c0_531, %c0_532] : memref<9x8x4xbf16, #tpu.memory_space<vmem>>, vector<1x8x4xbf16>
    %1080 = vector.shape_cast %1079 : vector<1x8x4xbf16> to vector<8x4xbf16>
    %cst_533 = arith.constant dense<0.000000e+00> : vector<8x256xf32>
    %1081 = tpu.matmul %1080, %1078, %cst_533 {dimension_numbers = #tpu.dot_dimension_numbers<[1], [0], [0], [1], [0, 0, 1, 1], [], []>} : vector<8x4xbf16>, vector<4x256xbf16>, vector<8x256xf32> -> vector<8x256xf32>
    %1082 = arith.addf %1064, %1081 : vector<8x256xf32>
    %c0_534 = arith.constant 0 : index
    %c0_535 = arith.constant 0 : index
    %1083 = vector.load %arg11[%c0_534, %c0_535] : memref<8x1xf32, #tpu.memory_space<vmem>>, vector<8x1xf32>
    %1084 = vector.broadcast %1083 : vector<8x1xf32> to vector<8x256xf32>
    %1085 = arith.addf %1082, %1084 : vector<8x256xf32>
    %1086 = arith.truncf %1085 : vector<8x256xf32> to vector<8x256xbf16>
    %cst_536 = arith.constant 0.000000e+00 : f32
    %1087 = vector.broadcast %cst_536 : f32 to vector<1x256xf32>
    %c0_537 = arith.constant 0 : index
    %c0_538 = arith.constant 0 : index
    %c0_539 = arith.constant 0 : index
    %1088 = vector.load %arg12[%c0_537, %c0_538, %c0_539] : memref<1x1x8xbf16, #tpu.memory_space<vmem>>, vector<1x1x8xbf16>
    %1089 = vector.shape_cast %1088 : vector<1x1x8xbf16> to vector<1x8xbf16>
    %cst_540 = arith.constant dense<0.000000e+00> : vector<1x256xf32>
    %1090 = tpu.matmul %1089, %1086, %cst_540 {dimension_numbers = #tpu.dot_dimension_numbers<[1], [0], [0], [1], [0, 0, 1, 1], [], []>} : vector<1x8xbf16>, vector<8x256xbf16>, vector<1x256xf32> -> vector<1x256xf32>
    %1091 = arith.addf %1087, %1090 : vector<1x256xf32>
    %c0_541 = arith.constant 0 : index
    %c0_542 = arith.constant 0 : index
    %1092 = vector.load %arg13[%c0_541, %c0_542] : memref<1x1xf32, #tpu.memory_space<vmem>>, vector<1x1xf32>
    %1093 = vector.broadcast %1092 : vector<1x1xf32> to vector<1x256xf32>
    %1094 = arith.addf %1091, %1093 : vector<1x256xf32>
    %1095 = math.absf %1094 : vector<1x256xf32>
    %cst_543 = arith.constant 0.000000e+00 : f32
    %1096 = vector.broadcast %cst_543 : f32 to vector<1x256xf32>
    %1097 = arith.subf %1096, %1095 : vector<1x256xf32>
    %1098 = math.exp %1097 : vector<1x256xf32>
    %cst_544 = arith.constant 1.000000e+00 : f32
    %1099 = vector.broadcast %cst_544 : f32 to vector<1x256xf32>
    %1100 = arith.addf %1099, %1098 : vector<1x256xf32>
    %cst_545 = arith.constant 1.000000e+00 : f32
    %1101 = vector.broadcast %cst_545 : f32 to vector<1x256xf32>
    %1102 = arith.divf %1101, %1100 : vector<1x256xf32>
    %cst_546 = arith.constant 0.000000e+00 : f32
    %1103 = vector.broadcast %cst_546 : f32 to vector<1x256xf32>
    %1104 = arith.cmpf oge, %1094, %1103 : vector<1x256xf32>
    %cst_547 = arith.constant 1.000000e+00 : f32
    %1105 = vector.broadcast %cst_547 : f32 to vector<1x256xf32>
    %1106 = arith.subf %1105, %1102 : vector<1x256xf32>
    %1107 = arith.select %1104, %1102, %1106 : vector<1x256xi1>, vector<1x256xf32>
    %c0_548 = arith.constant 0 : index
    %c0_549 = arith.constant 0 : index
    %c0_550 = arith.constant 0 : index
    %1108 = vector.load %arg14[%c0_548, %c0_549, %c0_550] : memref<1x1x256xf32, #tpu.memory_space<vmem>>, vector<1x1x256xf32>
    %1109 = vector.shape_cast %1108 : vector<1x1x256xf32> to vector<1x256xf32>
    %1110 = vector.shape_cast %1107 : vector<1x256xf32> to vector<1x1x256xf32>
    tpu.vector_store %arg14[%c0_548, %c0_549, %c0_550], %1110 {strides = array<i32>} : memref<1x1x256xf32, #tpu.memory_space<vmem>>, vector<1x1x256xf32>,
    return
  }
  func.func @transform_0(%arg0: i32) -> (i32, i32) {
    %c0_i32 = arith.constant 0 : i32
    %c0_i32_0 = arith.constant 0 : i32
    %c0_i32_1 = arith.constant 0 : i32
    return %c0_i32, %c0_i32_0 : i32, i32
  }
  func.func @transform_1(%arg0: i32) -> (i32, i32, i32) {
    %c0_i32 = arith.constant 0 : i32
    %c0_i32_0 = arith.constant 0 : i32
    %c0_i32_1 = arith.constant 0 : i32
    return %arg0, %c0_i32, %c0_i32_0 : i32, i32, i32
  }
  func.func @transform_2(%arg0: i32) -> (i32, i32, i32) {
    %c0_i32 = arith.constant 0 : i32
    %c0_i32_0 = arith.constant 0 : i32
    %c0_i32_1 = arith.constant 0 : i32
    return %arg0, %c0_i32, %c0_i32_0 : i32, i32, i32
  }
  func.func @transform_3(%arg0: i32) -> (i32, i32, i32) {
    %c0_i32 = arith.constant 0 : i32
    %c0_i32_0 = arith.constant 0 : i32
    %c0_i32_1 = arith.constant 0 : i32
    %c0_i32_2 = arith.constant 0 : i32
    return %c0_i32, %c0_i32_0, %c0_i32_1 : i32, i32, i32
  }
  func.func @transform_4(%arg0: i32) -> (i32, i32) {
    %c0_i32 = arith.constant 0 : i32
    %c0_i32_0 = arith.constant 0 : i32
    %c0_i32_1 = arith.constant 0 : i32
    return %c0_i32, %c0_i32_0 : i32, i32
  }
  func.func @transform_5(%arg0: i32) -> (i32, i32, i32) {
    %c0_i32 = arith.constant 0 : i32
    %c0_i32_0 = arith.constant 0 : i32
    %c0_i32_1 = arith.constant 0 : i32
    %c0_i32_2 = arith.constant 0 : i32
    return %c0_i32, %c0_i32_0, %c0_i32_1 : i32, i32, i32
  }
  func.func @transform_6(%arg0: i32) -> (i32, i32) {
    %c0_i32 = arith.constant 0 : i32
    %c0_i32_0 = arith.constant 0 : i32
    %c0_i32_1 = arith.constant 0 : i32
    return %c0_i32, %c0_i32_0 : i32, i32
  }
  func.func @transform_7(%arg0: i32) -> (i32, i32, i32) {
    %c0_i32 = arith.constant 0 : i32
    %c0_i32_0 = arith.constant 0 : i32
    %c0_i32_1 = arith.constant 0 : i32
    %c0_i32_2 = arith.constant 0 : i32
    return %c0_i32, %c0_i32_0, %c0_i32_1 : i32, i32, i32
  }
  func.func @transform_8(%arg0: i32) -> (i32, i32) {
    %c0_i32 = arith.constant 0 : i32
    %c0_i32_0 = arith.constant 0 : i32
    %c0_i32_1 = arith.constant 0 : i32
    return %c0_i32, %c0_i32_0 : i32, i32
  }
  func.func @transform_9(%arg0: i32) -> (i32, i32, i32) {
    %c0_i32 = arith.constant 0 : i32
    %c0_i32_0 = arith.constant 0 : i32
    %c0_i32_1 = arith.constant 0 : i32
    %c0_i32_2 = arith.constant 0 : i32
    return %c0_i32, %c0_i32_0, %c0_i32_1 : i32, i32, i32
  }
  func.func @transform_10(%arg0: i32) -> (i32, i32) {
    %c0_i32 = arith.constant 0 : i32
    %c0_i32_0 = arith.constant 0 : i32
    %c0_i32_1 = arith.constant 0 : i32
    return %c0_i32, %c0_i32_0 : i32, i32
  }
  func.func @transform_11(%arg0: i32) -> (i32, i32, i32) {
    %c0_i32 = arith.constant 0 : i32
    %c0_i32_0 = arith.constant 0 : i32
    %c0_i32_1 = arith.constant 0 : i32
    %c0_i32_2 = arith.constant 0 : i32
    return %c0_i32, %c0_i32_0, %c0_i32_1 : i32, i32, i32
  }
  func.func @transform_12(%arg0: i32) -> (i32, i32) {
    %c0_i32 = arith.constant 0 : i32
    %c0_i32_0 = arith.constant 0 : i32
    %c0_i32_1 = arith.constant 0 : i32
    return %c0_i32, %c0_i32_0 : i32, i32
  }
  func.func @transform_13(%arg0: i32) -> (i32, i32, i32) {
    %c0_i32 = arith.constant 0 : i32
    %c0_i32_0 = arith.constant 0 : i32
    %c0_i32_1 = arith.constant 0 : i32
    return %arg0, %c0_i32, %c0_i32_0 : i32, i32, i32
  }
}

</mosaic_0001>

<bundles_post_ra>
// kernel: morph_block_forward.1
= control target key start
LH: loop header
LB: loop body
LE: loop exit
PB: predicated region body
PF: predicated region fallthrough
CT: control target
= control target key end

     0   :  { %s6118_s27 = smov 0   ;;  %s8062_s0 = inlined_call_operand.vmem [shape: s32[1,256], index: 0, kind: input, shape index: {}]   ;;  %s8063_s1 = inlined_call_operand.vmem [shape: bf16[2,4,256], index: 1, kind: input, shape index: {}]   ;;  %s8064_s2 = inlined_call_operand.vmem [shape: bf16[2,1,256], index: 2, kind: input, shape index: {}]   ;;  %s8065_s3 = inlined_call_operand.vmem [shape: bf16[25,8,6], index: 3, kind: input, shape index: {}]   ;;  %s8066_s4 = inlined_call_operand.vmem [shape: f32[8,1], index: 4, kind: input, shape index: {}]   ;;  %s8067_s5 = inlined_call_operand.vmem [shape: bf16[25,8,8], index: 5, kind: input, shape index: {}]   ;;  %s8068_s6 = inlined_call_operand.vmem [shape: f32[8,1], index: 6, kind: input, shape index: {}]   ;;  %s8069_s7 = inlined_call_operand.vmem [shape: bf16[9,4,8], index: 7, kind: input, shape index: {}]   ;;  %s8070_s8 = inlined_call_operand.vmem [shape: f32[4,1], index: 8, kind: input, shape index: {}]   ;;  %s8071_s9 = inlined_call_operand.vmem [shape: bf16[9,8,4], index: 9, kind: input, shape index: {}]   ;;  %s8072_s10 = inlined_call_operand.vmem [shape: f32[8,1], index: 10, kind: input, shape index: {}]   ;;  %s8073_s11 = inlined_call_operand.vmem [shape: bf16[1,1,8], index: 11, kind: input, shape index: {}]   ;;  %s8074_s12 = inlined_call_operand.<no memory space> [shape: f32[1,1], index: 12, kind: input, shape index: {}]   ;;  %s8075_s13 = inlined_call_operand.vmem [shape: f32[2,1,256], index: 13, kind: output, shape index: {}]  }
   0x1   :  { %v18_v0 = vstv %s8074_s12 }
   0x2   :  { %19 = vst [vmem:[#allocation2] sm:$0x1] %v18_v0 }
   0x3 LB: > { %s5702_s28 = sadd.s32 4294967295, %s5994_s27   ;;  %p5706_p0 = scmp.ge.s32.totalorder %s5994_s27, 1  ;;  %s5994_s27 = sphi %s6118_s27, %s25_s27  }
   0x4   : > { %p398_p1 = scmp.lt.s32.totalorder %s5994_s27, 3 }
   0x6   : > { %p399_p2 = pnand %p5706_p0, %p398_p1 }
   0x8   : > { %402 = sbr.rel (%p399_p2) target bundleno = 2974 (0xb9e), region = 72 }
   0xf   : > { %p445_p3 = scmp.lt.s32.totalorder %s5702_s28, 1  ;;  %v8130_v1 = vlaneseq  ;;  %s5996_s15 = smov 1   ;;  %v8131_v10 = vmov 0   ;;  %v5998_v11 = vmov 1966171168   ;;  %vm479_vm0 = vcmask 7168  }
  0x10   : > { %764 = vmatprep.mubr.bf16.mxu0 %v8131_v10  ;;  %814 = vmatprep.mubr.bf16.mxu1 %v8131_v10  ;;  %v492_v12 = vunpack.c.l.s4 %v5998_v11  ;;  %s8077_s16 = smov 126   ;;  %v461_v26 = vld [vmem:[%s8062_s0] sm:$0x3]  ;;  %v6000_v28 = vmov 857870592   ;;  %vm8196_vm6 = vcmask 1031168  }
  0x11   : > { %s8453_s28 = smov (!%p445_p3, %s5702_s28), 1  ;;  %v6129_v2 = vshrl.u32 %v8130_v1, 7  ;;  %5978 = vset.pattern.permute.xlu1 %v8131_v10  ;;  %5979 = vset.pattern.permute.xlu0 %v8131_v10  ;;  %v485_v27 = vadd.s32 4294967295, %v461_v26  ;;  %v509_v29 = vunpack.c.l.s4 %v6000_v28  ;;  %v517_v32 = vadd.s32 1, %v461_v26  ;;  %s8105_s19 = smov 16  }
  0x12   : > { %s8076_s12 = sshll.u32 %s8453_s28, 1  ;;  %v493_v13 = vunpack.c.0.s8 %v492_v12  ;;  %v987_v52 = vadd.s32 2, %v461_v26  ;;  %v644_v56 = vadd.s32 4294967294, %v461_v26  ;;  %s6002_s20 = smov 3  }
  0x13   : > { %s453_s14 = scalar_lea.vmem %s8064_s2, %s8076_s12  ;;  %v6138_v3 = vsub.s32 0, %v6129_v2  ;;  %v6141_v4 = vsub.s32 2, %v6129_v2  ;;  %vm486_vm1 = vcmp.ge.s32.totalorder %v485_v27, 0  ;;  %vm487_vm2 = vcmp.lt.s32.totalorder %v485_v27, 16  ;;  %s6003_s21 = smov 4  }
  0x14   : > { %v464_v5 = vld [vmem:[%s453_s14] sm:$0x3]  ;;  %v6157_v17 = vsub.s32 %v493_v13, %v6129_v2  ;;  %v510_v30 = vunpack.c.0.s8 %v509_v29  ;;  %vm488_vm3 = vmand %vm486_vm1, %vm487_vm2  ;;  %vm518_vm4 = vcmp.ge.s32.totalorder %v517_v32, 0  ;;  %vm519_vm5 = vcmp.lt.s32.totalorder %v517_v32, 16  ;;  %s8092_s22 = smov 17   ;;  %s6005_s23 = smov 19  }
  0x15   : > { %8234 = vst [vmem:[#allocation3_spill] sm:$0xff] %v6138_v3  ;;  %v465_v6 = vunpack.c.l.bf16 %v464_v5  ;;  %v655_v34 = vsub.s32 1, %v6129_v2  ;;  %v674_v36 = vsel %vm488_vm3, 1, %v8131_v10  ;;  %vm520_vm7 = vmand %vm518_vm4, %vm519_vm5  ;;  %vm988_vm14 = vcmp.ge.s32.totalorder %v987_v52, 0  ;;  %s6006_s24 = smov 20   ;;  %s8096_s25 = smov 32  }
  0x16   : > { %8235 = vst [vmem:[#allocation4_spill] sm:$0xff] %v6157_v17  ;;  %v513_v33 = vsub.s32 %v510_v30, %v6129_v2  ;;  %v678_v40 = vrot.slane %v674_v36, %v6138_v3  ;;  %v888_v42 = vsel %vm520_vm7, 1, %v8131_v10  ;;  %vm989_vm15 = vcmp.lt.s32.totalorder %v987_v52, 16  ;;  %s6008_s26 = smov 33   ;;  %s6009_s29 = smov 35  }
  0x17   : > { %v6144_v7 = vrot.slane %v465_v6, %v6138_v3  ;;  %v6147_v8 = vrot.slane %v465_v6, %v6141_v4  ;;  %v682_v41 = vrot.slane %v674_v36, %v655_v34  ;;  %v892_v47 = vrot.slane %v888_v42, %v6138_v3  ;;  %vm990_vm1 = vmand %vm988_vm14, %vm989_vm15  ;;  %s6010_s30 = smov 36   ;;  %s6011_s14 = smov 48  }
  0x18   : > { %vm683_vm8 = vcmp.eq.s32.totalorder %v678_v40, 1  ;;  %v896_v48 = vrot.slane %v888_v42, %v655_v34  ;;  %v991_v58 = vsel %vm990_vm1, 1, %v8131_v10  ;;  %vm645_vm2 = vcmp.ge.s32.totalorder %v644_v56, 0  ;;  %s6012_s17 = smov 49   ;;  %s8079_s18 = smov 51  }
  0x19   : > { %v5973_v9 = vpack.i.bf16 %v6147_v8, %v6144_v7  ;;  %vm684_vm9 = vcmp.eq.s32.totalorder %v682_v41, 1  ;;  %vm897_vm11 = vcmp.eq.s32.totalorder %v892_v47, 1  ;;  %v995_v59 = vrot.slane %v991_v58, %v6138_v3  ;;  %s6015_s12 = smov 52  }
  0x1a   : > { %vm685_vm10 = vmpackc.low %vm684_vm9, %vm683_vm8  ;;  %vm898_vm12 = vcmp.eq.s32.totalorder %v896_v48, 1  ;;  %v999_v60 = vrot.slane %v991_v58, %v655_v34  ;;  %v667_v11 = vsub.s32 4, %v6129_v2  ;;  %vm619_vm14 = vcmask 1040384  }
  0x1b   : > { %5974 = vrot.lane.b32.xlu0 %v5973_v9, %s5996_s15  ;;  %v686_v51 = vsel %vm685_vm10, 65537, %v8131_v10  ;;  %vm899_vm13 = vmpackc.low %vm898_vm12, %vm897_vm11  ;;  %vm1000_vm4 = vcmp.eq.s32.totalorder %v995_v59, 1  ;;  %vm8084_vm12 = vcmask 130048   ;;  %vm622_vm15 = vcmask 1044480  }
  0x1c   : > { %v6186_v54 = vrot.slane %v686_v51, %v6138_v3  ;;  %v6190_v55 = vsel %vm899_vm13, 65537, %v8131_v10  ;;  %vm1001_vm5 = vcmp.eq.s32.totalorder %v999_v60, 1  ;;  %v6235_v13 = vrot.slane %v686_v51, %v667_v11 }
  0x1d   : > { %v6194_v57 = vrot.slane %v6190_v55, %v6138_v3  ;;  %vm1002_vm8 = vmpackc.low %vm1001_vm5, %vm1000_vm4  ;;  %vm8212_vm13 = vcmask 785408   ;;  %vm633_vm1 = vcmask 277504   ;;  %vm725_vm4 = vcmask 1042432  }
  0x1e   : > { %8236 = vst [vmem:[#allocation5_spill] sm:$0xff] %v6186_v54  ;;  %v1003_v62 = vsel %vm1002_vm8, 65537, %v8131_v10  ;;  %8238 = vst [vmem:[#allocation7_spill] sm:$0xff] %v6235_v13  ;;  %vm721_vm8 = vcmask 48128  }
  0x1f   : > { %8237 = vst [vmem:[#allocation6_spill] sm:$0xff] %v6194_v57  ;;  %v6206_v5 = vrot.slane %v1003_v62, %v6138_v3  ;;  %v1011_v28 = vrot.slane %v1003_v62, %v667_v11 }
  0x8d   : > { %v5975_v14 = vpop.permute.xlu0 %5974 }
  0x8e   : > { %v5977_v15 = vunpack.i.h.bf16 %v5975_v14  ;;  %v5976_v16 = vunpack.i.l.bf16 %v5975_v14  ;;  %v6014_v14 = vmov 1983009808  }
  0x90   : > { %v484_v18 = vsel %vm479_vm0, %v5977_v15, -inf  ;;  %v480_v19 = vsel %vm479_vm0, %v5976_v16, %v5977_v15  ;;  %v483_v20 = vsel %vm479_vm0, -inf, %v5976_v16  ;;  %v576_v15 = vunpack.c.l.s4 %v6014_v14 }
  0x91   : > { %v490_v21 = vcombine.low %v483_v20, %v480_v19  ;;  %v528_v22 = vrot.slane %v484_v18, %v6157_v17 }
  0x92   : > { %v577_v18 = vunpack.c.0.s8 %v576_v15 }
  0x93   : > { %v497_v23 = vrot.slane %v490_v21, %v6157_v17 }
  0x94   : > { %v580_v19 = vsub.s32 %v577_v18, %v6129_v2  ;;  %v6251_v2 = vrot.slane %v6190_v55, %v667_v11 }
  0x95   : > { %v529_v24 = vcombine.low %v497_v23, %v528_v22  ;;  %v504_v31 = vrot.slane %v497_v23, %v6157_v17 }
  0x96   : > { %8239 = vst [vmem:[#allocation8_spill] sm:$0xff] %v6251_v2 }
  0x97   : > { %v536_v25 = vrot.slane %v529_v24, %v6157_v17  ;;  %v506_v35 = vsel %vm488_vm3, %v504_v31, -inf  ;;  %vm646_vm3 = vcmp.lt.s32.totalorder %v644_v56, 16 }
  0x98   : > { %v514_v38 = vrot.slane %v506_v35, %v513_v33 }
  0x99   : > { %537 = vrot.lane.b32.xlu0 %v536_v25, %s8077_s16  ;;  %s8177_s16 = smov 64  }
  0x9a   : > { %v516_v46 = vmax.f32 %v465_v6, %v514_v38 }
 0x10b   : > { %v538_v37 = vpop.permute.xlu0 %537 }
 0x10c   : > { %v539_v39 = vrot.slane %v538_v37, 1 }
 0x10e   : > { %v541_v43 = vsel %vm8196_vm6, %v538_v37, %v539_v39 }
 0x10f   : > { %v543_v44 = vsel %vm520_vm7, %v541_v43, -inf  ;;  %vm647_vm7 = vmand %vm645_vm2, %vm646_vm3 }
 0x110   : > { %v551_v45 = vrot.slane %v543_v44, %v513_v33  ;;  %v648_v61 = vsel %vm647_vm7, 1, %v8131_v10  ;;  %vm913_vm7 = vcmask 23552  }
 0x111   : > { %v652_v63 = vrot.slane %v648_v61, %v6138_v3  ;;  %v656_v0 = vrot.slane %v648_v61, %v655_v34 }
 0x112   : > { %v6177_v49 = vmax.f32 %v516_v46, %v551_v45 }
 0x113   : > { %vm657_vm9 = vcmp.eq.s32.totalorder %v652_v63, 1  ;;  %vm658_vm10 = vcmp.eq.s32.totalorder %v656_v0, 1 }
 0x114   : > { %v558_v50 = vrot.slane %v6177_v49, %v6138_v3  ;;  %v562_v53 = vrot.slane %v6177_v49, %v6141_v4  ;;  %vm659_vm11 = vmpackc.low %vm658_vm10, %vm657_vm9 }
 0x115   : > { %v660_v6 = vsel %vm659_vm11, 65537, %v8131_v10 }
 0x116   : > { %563 = vrot.lane.b32.xlu1 %v558_v50, %s8105_s19  ;;  %v6212_v9 = vrot.slane %v660_v6, %v6138_v3  ;;  %v6231_v12 = vrot.slane %v660_v6, %v667_v11 }
 0x118   : > { %vm670_vm2 = vcmp.ne.s16.totalorder %v6231_v12, 0  ;;  %vm669_vm3 = vcmp.ne.s16.totalorder %v6212_v9, 0 }
 0x11a   : > { %565 = vrot.lane.b32.xlu1 %v562_v53, %s8105_s19 }
 0x11e   : > { %695 = vrot.lane.b32.xlu1 %v6186_v54, %s5996_s15 }
 0x122   : > { %909 = vrot.lane.b32.xlu1 %v6194_v57, %s6002_s20 }
 0x126   : > { %1012 = vrot.lane.b32.xlu1 %v6206_v5, %s6003_s21 }
 0x12a   : > { %1090 = vrot.lane.b32.xlu1 %v6212_v9, %s8105_s19 }
 0x12e   : > { %1168 = vrot.lane.b32.xlu1 %v6186_v54, %s8092_s22 }
 0x132   : > { %1309 = vrot.lane.b32.xlu1 %v6194_v57, %s6005_s23 }
 0x136   : > { %1387 = vrot.lane.b32.xlu1 %v6206_v5, %s6006_s24 }
 0x13a   : > { %1465 = vrot.lane.b32.xlu1 %v6212_v9, %s8096_s25 }
 0x13e   : > { %1543 = vrot.lane.b32.xlu1 %v6186_v54, %s6008_s26 }
 0x142   : > { %1684 = vrot.lane.b32.xlu1 %v6194_v57, %s6009_s29 }
 0x146   : > { %1762 = vrot.lane.b32.xlu1 %v6206_v5, %s6010_s30 }
 0x14a   : > { %1842 = vrot.lane.b32.xlu1 %v6231_v12, %s6011_s14 }
 0x14e   : > { %1920 = vrot.lane.b32.xlu1 %v6235_v13, %s6012_s17 }
 0x152   : > { %2059 = vrot.lane.b32.xlu1 %v6194_v57, %s8079_s18  ;;  %s6017_s18 = smov 96  }
 0x156   : > { %2137 = vrot.lane.b32.xlu1 %v6206_v5, %s6015_s12 }
 0x15a   : > { %2215 = vrot.lane.b32.xlu1 %v6212_v9, %s8177_s16 }
 0x188   : > { %v564_v16 = vpop.permute.xlu1 %563 }
 0x189   : > { %v571_v21 = vsel %vm8084_vm12, -inf, %v564_v16 }
 0x18c   : > { %v566_v20 = vpop.permute.xlu1 %565 }
 0x18d   : > { %v568_v22 = vsel %vm8084_vm12, %v564_v16, %v566_v20  ;;  %v572_v23 = vsel %vm8084_vm12, %v566_v20, -inf }
 0x18e   : > { %v574_v24 = vcombine.low %v571_v21, %v568_v22  ;;  %v591_v25 = vrot.slane %v572_v23, %v580_v19 }
 0x190   : > { %v581_v26 = vrot.slane %v574_v24, %v580_v19 }
 0x192   : > { %v592_v27 = vcombine.low %v581_v26, %v591_v25  ;;  %v583_v34 = vmax.f32 %v6177_v49, %v581_v26 }
 0x194   : > { %593 = vrot.lane.b32.xlu0 %v592_v27, %s6017_s18 }
 0x198   : > { %697 = vrot.lane.b32.xlu0 %v6235_v13, %s5996_s15  ;;  %s8240_s15 = smov 51  }
 0x19c   : > { %911 = vrot.lane.b32.xlu0 %v6251_v2, %s6002_s20  ;;  %s5915_s20 = sshll.u32 %s8453_s28, 2 }
 0x1a0   : > { %1014 = vrot.lane.b32.xlu0 %v1011_v28, %s6003_s21  ;;  %s8111_s21 = smov 62  }
 0x1a4   : > { %1092 = vrot.lane.b32.xlu0 %v6231_v12, %s8105_s19  ;;  %s8199_s19 = smov 95  }
 0x1a8   : > { %1170 = vrot.lane.b32.xlu0 %v6235_v13, %s8092_s22  ;;  %s6031_s22 = smov 109  }
 0x1ac   : > { %1311 = vrot.lane.b32.xlu0 %v6251_v2, %s6005_s23  ;;  %s6029_s23 = smov 112  }
 0x1b0   : > { %1389 = vrot.lane.b32.xlu0 %v1011_v28, %s6006_s24  ;;  %s449_s24 = scalar_lea.vmem %s8063_s1, %s5915_s20  ;;  %s8115_s20 = smov 78  }
 0x1b1   : > { %v462_v29 = vld [vmem:[%s449_s24] sm:$0xf]  ;;  %s6030_s24 = smov 111  }
 0x1b2   : > { %v463_v30 = vunpack.c.l.bf16 %v462_v29 }
 0x1b4   : > { %1467 = vrot.lane.b32.xlu0 %v6231_v12, %s8096_s25  ;;  %v612_v32 = vcombine.high %v463_v30, %v463_v30  ;;  %v613_v37 = vrot.slane %v463_v30, 7  ;;  %s6032_s25 = smov 108  }
 0x1b6   : > { %v614_v38 = vrot.slane %v612_v32, 7 }
 0x1b8   : > { %1545 = vrot.lane.b32.xlu0 %v6235_v13, %s6008_s26  ;;  %s6019_s26 = smov 65  }
 0x1bc   : > { %1686 = vrot.lane.b32.xlu0 %v6251_v2, %s6009_s29  ;;  %s6020_s29 = smov 67  }
 0x1c0   : > { %1764 = vrot.lane.b32.xlu0 %v1011_v28, %s6010_s30  ;;  %s6021_s30 = smov 68  }
 0x1c4   : > { %1840 = vrot.lane.b32.xlu0 %v6212_v9, %s6011_s14  ;;  %s8247_s14 = smov 126  }
 0x1c8   : > { %1918 = vrot.lane.b32.xlu0 %v6186_v54, %s6012_s17  ;;  %s8220_s17 = smov 110  }
 0x1cc   : > { %2061 = vrot.lane.b32.xlu0 %v6251_v2, %s8240_s15  ;;  %s8222_s15 = smov 94  }
 0x1d0   : > { %2139 = vrot.lane.b32.xlu0 %v1011_v28, %s6015_s12  ;;  %s8224_s12 = smov 34  }
 0x1d4   : > { %2217 = vrot.lane.b32.xlu0 %v6231_v12, %s8177_s16 }
 0x206   : > { %v594_v31 = vpop.permute.xlu0 %593 }
 0x207   : > { %v595_v33 = vrot.slane %v594_v31, 2 }
 0x209   : > { %v597_v35 = vsel %vm8212_vm13, %v594_v31, %v595_v33 }
 0x20a   : > { %v599_v36 = vmax.f32 %v583_v34, %v597_v35  ;;  %v673_v35 = vld [vmem:[%s8065_s3] sm:$0xf] }
 0x20c   : > { %v604_v39 = vrot.slane %v599_v36, %v6138_v3  ;;  %v608_v40 = vrot.slane %v599_v36, %v6141_v4  ;;  %v6298_v4 = vpop.permute.xlu0 %697 }
 0x20d   : > { %vm8088_vm9 = vcmp.ne.s16.totalorder %v6298_v4, 0 }
 0x20e   : > { %v620_v41 = vsel %vm619_vm14, %v604_v39, %v613_v37  ;;  %v621_v42 = vsel %vm619_vm14, %v608_v40, %v614_v38  ;;  %vm8082_vm14 = vcmask 31744  }
 0x20f   : > { %v623_v43 = vsel %vm622_vm15, %v620_v41, %v6144_v7  ;;  %v624_v44 = vsel %vm622_vm15, %v621_v42, %v6147_v8  ;;  %v6300_v7 = vpop.permute.xlu1 %695 }
 0x210   : > { %v625_v45 = vpack.c.bf16 %v623_v43, %v623_v43  ;;  %v626_v46 = vpack.c.bf16 %v624_v44, %v624_v44  ;;  %v6302_v8 = vpop.permute.xlu0 %911  ;;  %vm701_vm5 = vcmp.ne.s16.totalorder %v6300_v7, 0  ;;  %v6416_v34 = vsel %vm479_vm0, %v6300_v7, %v6298_v4 }
 0x211   : > { %vm8081_vm10 = vcmp.ne.s16.totalorder %v6416_v34, 0  ;;  %vm8083_vm15 = vcmp.ne.s16.totalorder %v6302_v8, 0 }
 0x212   : > { %629 = vrot.lane.b32.xlu1 %v625_v45, %s8224_s12  ;;  %631 = vrot.lane.b32.xlu0 %v626_v46, %s8224_s12 }
 0x213   : > { %v6304_v47 = vpop.permute.xlu1 %909 }
 0x214   : > { %v6306_v48 = vpop.permute.xlu0 %1014  ;;  %v6436_v38 = vsel %vm913_vm7, %v6304_v47, %v6302_v8  ;;  %vm8161_vm0 = vcmp.ne.s16.totalorder %v6304_v47, 0 }
 0x215   : > { %vm8080_vm11 = vcmp.ne.s16.totalorder %v6436_v38, 0 }
 0x216   : > { %2292 = vrot.lane.b32.xlu1 %v6186_v54, %s6019_s26  ;;  %2294 = vrot.lane.b32.xlu0 %v6235_v13, %s6019_s26  ;;  %s6026_s26 = smov 127  }
 0x217   : > { %v6308_v49 = vpop.permute.xlu1 %1012 }
 0x218   : > { %v6310_v50 = vpop.permute.xlu0 %1092  ;;  %vm1018_vm7 = vcmp.ne.s16.totalorder %v6308_v49, 0  ;;  %v6461_v43 = vsel %vm8082_vm14, %v6308_v49, %v6306_v48 }
 0x21a   : > { %2433 = vrot.lane.b32.xlu1 %v6194_v57, %s6020_s29  ;;  %2435 = vrot.lane.b32.xlu0 %v6251_v2, %s6020_s29  ;;  %s6027_s29 = smov 125  }
 0x21b   : > { %v6312_v51 = vpop.permute.xlu1 %1090 }
 0x21c   : > { %v6314_v52 = vpop.permute.xlu0 %1170  ;;  %v6476_v46 = vsel %vm8084_vm12, %v6312_v51, %v6310_v50  ;;  %vm8089_vm14 = vcmp.ne.s16.totalorder %v6312_v51, 0  ;;  %vm8090_vm12 = vcmask 138240  }
 0x21e   : > { %2511 = vrot.lane.b32.xlu1 %v6206_v5, %s6021_s30  ;;  %2513 = vrot.lane.b32.xlu0 %v1011_v28, %s6021_s30  ;;  %s6028_s30 = smov 124  }
 0x21f   : > { %v6316_v53 = vpop.permute.xlu1 %1168 }
 0x220   : > { %v6318_v55 = vpop.permute.xlu0 %1311 }
 0x223   : > { %v6320_v56 = vpop.permute.xlu1 %1309 }
 0x224   : > { %v6322_v58 = vpop.permute.xlu0 %1389 }
 0x227   : > { %v6324_v59 = vpop.permute.xlu1 %1387 }
 0x228   : > { %v6326_v60 = vpop.permute.xlu0 %1467 }
 0x22b   : > { %v6328_v61 = vpop.permute.xlu1 %1465 }
 0x22c   : > { %v6330_v62 = vpop.permute.xlu0 %1545 }
 0x22f   : > { %v6332_v63 = vpop.permute.xlu1 %1543 }
 0x230   : > { %v6334_v0 = vpop.permute.xlu0 %1686 }
 0x233   : > { %v6336_v5 = vpop.permute.xlu1 %1684 }
 0x234   : > { %v6338_v6 = vpop.permute.xlu0 %1764 }
 0x235   : > { %8241 = vst [vmem:[#allocation9_spill] sm:$0xff] %v6338_v6 }
 0x237   : > { %v6340_v11 = vpop.permute.xlu1 %1762 }
 0x238   : > { %v6342_v14 = vpop.permute.xlu0 %1840 }
 0x23b   : > { %v6344_v15 = vpop.permute.xlu1 %1842 }
 0x23c   : > { %8242 = vst [vmem:[#allocation10_spill] sm:$0xff] %v6344_v15  ;;  %v6346_v16 = vpop.permute.xlu0 %1918 }
 0x23f   : > { %v6348_v18 = vpop.permute.xlu1 %1920 }
 0x240   : > { %8243 = vst [vmem:[#allocation11_spill] sm:$0xff] %v6348_v18  ;;  %v6350_v19 = vpop.permute.xlu0 %2061 }
 0x241   : > { %8244 = vst [vmem:[#allocation12_spill] sm:$0xff] %v6350_v19 }
 0x243   : > { %v6352_v20 = vpop.permute.xlu1 %2059 }
 0x244   : > { %v6354_v21 = vpop.permute.xlu0 %2139 }
 0x245   : > { %8245 = vst [vmem:[#allocation13_spill] sm:$0xff] %v6354_v21 }
 0x247   : > { %v6356_v22 = vpop.permute.xlu1 %2137 }
 0x248   : > { %v6358_v23 = vpop.permute.xlu0 %2217 }
 0x249   : > { %8246 = vst [vmem:[#allocation14_spill] sm:$0xff] %v6358_v23 }
 0x24b   : > { %v6360_v24 = vpop.permute.xlu1 %2215 }
 0x284   : > { %v630_v25 = vpop.permute.xlu1 %629  ;;  %v632_v26 = vpop.permute.xlu0 %631 }
 0x285   : > { %v6365_v27 = vsel %vm633_vm1, 0, %v630_v25  ;;  %v6368_v28 = vsel %vm633_vm1, %v630_v25, %v632_v26  ;;  %v6383_v32 = vsel %vm633_vm1, %v632_v26, 0 }
 0x286   : > { %827 = vrot.lane.b32.xlu0 %v6365_v27, %s8247_s14  ;;  %829 = vrot.lane.b32.xlu1 %v6368_v28, %s8247_s14  ;;  %v672_v29 = vsel %vm670_vm2, %v6368_v28, 0  ;;  %v671_v30 = vsel %vm669_vm3, %v6365_v27, 0  ;;  %v704_v33 = vsel %vm701_vm5, %v6365_v27, 0  ;;  %v706_v36 = vsel %vm8088_vm9, %v6383_v32, 0 }
 0x287   : > { %5714 = vmatprep.subr.msk.bf16.mxu1 %vm725_vm4, %v672_v29  ;;  %v777_v31 = vsel %vm725_vm4, %v671_v30, 0  ;;  %v705_v37 = vsel %vm8081_vm10, %v6368_v28, 0  ;;  %v918_v39 = vsel %vm8161_vm0, %v6365_v27, 0  ;;  %v919_v40 = vsel %vm8080_vm11, %v6368_v28, 0 }
 0x288   : > { %783 = vmatpush1.bf16.msra.mxu1 %v777_v31  ;;  %v920_v41 = vsel %vm8083_vm15, %v6383_v32, 0  ;;  %v1021_v42 = vsel %vm1018_vm7, %v6365_v27, 0  ;;  %vm8086_vm11 = vcmp.ne.s16.totalorder %v6461_v43, 0  ;;  %vm8085_vm10 = vcmp.ne.s16.totalorder %v6306_v48, 0 }
 0x289   : > { %v1022_v44 = vsel %vm8086_vm11, %v6368_v28, 0  ;;  %v1023_v45 = vsel %vm8085_vm10, %v6383_v32, 0  ;;  %vm8087_vm15 = vcmp.ne.s16.totalorder %v6476_v46, 0  ;;  %v1099_v25 = vsel %vm8089_vm14, %v6365_v27, 0 }
 0x28a   : > { %831 = vrot.lane.b32.xlu0 %v6383_v32, %s8247_s14  ;;  %1248 = vrot.lane.b32.xlu1 %v6365_v27, %s8220_s17  ;;  %v1100_v26 = vsel %vm8087_vm15, %v6368_v28, 0  ;;  %vm8091_vm10 = vcmp.ne.s16.totalorder %v6310_v50, 0  ;;  %vm8100_vm11 = vcmp.ne.s16.totalorder %v6316_v53, 0  ;;  %v6501_v31 = vsel %vm8090_vm12, %v6316_v53, %v6314_v52 }
 0x28b   : > { %5715 = vmatmul.mubr.msk.bf16.vlgmr.msra.gmra.mrb[0].mxu1 %vm721_vm8, %v673_v35  ;;  %v1101_v29 = vsel %vm8091_vm10, %v6383_v32, 0  ;;  %v1177_v30 = vsel %vm8100_vm11, %v6365_v27, 0  ;;  %vm1313_vm15 = vcmask 154624   ;;  %vm8095_vm9 = vcmp.ne.s16.totalorder %v6501_v31, 0 }
 0x28c   : > { %976 = vmatprep.mubr.bf16.mxu1 %v8131_v10  ;;  %vm8094_vm14 = vcmp.ne.s16.totalorder %v6314_v52, 0  ;;  %vm8099_vm10 = vcmp.ne.s16.totalorder %v6320_v56, 0  ;;  %vm2437_vm0 = vcmask 547840  }
 0x28d   : > { %v1179_v35 = vsel %vm8094_vm14, %v6383_v32, 0  ;;  %vm8109_vm14 = vcmp.ne.s16.totalorder %v6324_v59, 0 }
 0x28e   : > { %1250 = vrot.lane.b32.xlu0 %v6368_v28, %s8220_s17  ;;  %1252 = vrot.lane.b32.xlu1 %v6383_v32, %s8220_s17 }
 0x292   : > { %1623 = vrot.lane.b32.xlu0 %v6365_v27, %s8222_s15  ;;  %1625 = vrot.lane.b32.xlu1 %v6368_v28, %s8222_s15 }
 0x296   : > { %1627 = vrot.lane.b32.xlu0 %v6383_v32, %s8222_s15  ;;  %1998 = vrot.lane.b32.xlu1 %v6365_v27, %s8115_s20 }
 0x29a   : > { %2000 = vrot.lane.b32.xlu0 %v6368_v28, %s8115_s20  ;;  %2002 = vrot.lane.b32.xlu1 %v6383_v32, %s8115_s20  ;;  %s8126_s20 = smov 92  }
 0x29e   : > { %2372 = vrot.lane.b32.xlu0 %v6365_v27, %s8111_s21  ;;  %2374 = vrot.lane.b32.xlu1 %v6368_v28, %s8111_s21 }
 0x2a2   : > { %2376 = vrot.lane.b32.xlu0 %v6383_v32, %s8111_s21  ;;  %712 = vrot.lane.b32.xlu1 %v704_v33, %s6026_s26  ;;  %v1178_v33 = vsel %vm8095_vm9, %v6368_v28, 0  ;;  %vm8101_vm9 = vcmp.ne.s16.totalorder %v6318_v55, 0  ;;  %s8121_s21 = smov 93  }
 0x2a6   : > { %716 = vrot.lane.b32.xlu1 %v706_v36, %s6026_s26  ;;  %714 = vrot.lane.b32.xlu0 %v705_v37, %s6026_s26  ;;  %v6515_v36 = vsel %vm1313_vm15, %v6320_v56, %v6318_v55  ;;  %vm1391_vm15 = vcmask 162816  }
 0x2a7   : > { %vm8098_vm12 = vcmp.ne.s16.totalorder %v6515_v36, 0 }
 0x2a8   : > { %v1319_v37 = vsel %vm8098_vm12, %v6368_v28, 0  ;;  %vm8102_vm12 = vcmask 261120  }
 0x2aa   : > { %926 = vrot.lane.b32.xlu1 %v918_v39, %s6027_s29  ;;  %928 = vrot.lane.b32.xlu0 %v919_v40, %s6027_s29  ;;  %v1318_v39 = vsel %vm8099_vm10, %v6365_v27, 0  ;;  %v1396_v40 = vsel %vm8109_vm14, %v6365_v27, 0  ;;  %vm8104_vm10 = vcmp.ne.s16.totalorder %v6322_v58, 0 }
 0x2ae   : > { %930 = vrot.lane.b32.xlu1 %v920_v41, %s6027_s29  ;;  %1029 = vrot.lane.b32.xlu0 %v1021_v42, %s6028_s30  ;;  %v1320_v41 = vsel %vm8101_vm9, %v6383_v32, 0  ;;  %v6539_v42 = vsel %vm1391_vm15, %v6324_v59, %v6322_v58  ;;  %vm8108_vm9 = vcmp.ne.s16.totalorder %v6328_v61, 0 }
 0x2af   : > { %vm8103_vm11 = vcmp.ne.s16.totalorder %v6539_v42, 0 }
 0x2b2   : > { %1031 = vrot.lane.b32.xlu1 %v1022_v44, %s6028_s30  ;;  %1033 = vrot.lane.b32.xlu0 %v1023_v45, %s6028_s30  ;;  %v1398_v44 = vsel %vm8104_vm10, %v6383_v32, 0  ;;  %v1397_v45 = vsel %vm8103_vm11, %v6368_v28, 0  ;;  %vm8119_vm11 = vcmp.ne.s16.totalorder %v6332_v63, 0  ;;  %vm8110_vm10 = vcmp.ne.s16.totalorder %v6326_v60, 0 }
 0x2b6   : > { %1107 = vrot.lane.b32.xlu1 %v1099_v25, %s6029_s23  ;;  %1109 = vrot.lane.b32.xlu0 %v1100_v26, %s6029_s23  ;;  %v6554_v25 = vsel %vm8102_vm12, %v6328_v61, %v6326_v60  ;;  %vm1547_vm12 = vcmask 269312  }
 0x2b7   : > { %vm8107_vm15 = vcmp.ne.s16.totalorder %v6554_v25, 0 }
 0x2b8   : > { %v1475_v26 = vsel %vm8107_vm15, %v6368_v28, 0  ;;  %vm1688_vm15 = vcmask 285696  }
 0x2ba   : > { %1111 = vrot.lane.b32.xlu1 %v1101_v29, %s6029_s23  ;;  %1185 = vrot.lane.b32.xlu0 %v1177_v30, %s6030_s24  ;;  %v1474_v29 = vsel %vm8108_vm9, %v6365_v27, 0  ;;  %v1552_v30 = vsel %vm8119_vm11, %v6365_v27, 0  ;;  %vm8114_vm9 = vcmp.ne.s16.totalorder %v6330_v62, 0  ;;  %vm8123_vm11 = vcmp.ne.s16.totalorder %v6338_v6, 0 }
 0x2be   : > { %1187 = vrot.lane.b32.xlu1 %v1178_v33, %s6030_s24  ;;  %1189 = vrot.lane.b32.xlu0 %v1179_v35, %s6030_s24  ;;  %v1476_v33 = vsel %vm8110_vm10, %v6383_v32, 0  ;;  %v6578_v35 = vsel %vm1547_vm12, %v6332_v63, %v6330_v62  ;;  %vm8118_vm12 = vcmp.ne.s16.totalorder %v6336_v5, 0 }
 0x2bf   : > { %vm8113_vm14 = vcmp.ne.s16.totalorder %v6578_v35, 0 }
 0x2c2   : > { %1328 = vrot.lane.b32.xlu1 %v1319_v37, %s6031_s22  ;;  %1326 = vrot.lane.b32.xlu0 %v1318_v39, %s6031_s22  ;;  %v1554_v37 = vsel %vm8114_vm9, %v6383_v32, 0  ;;  %v1553_v39 = vsel %vm8113_vm14, %v6368_v28, 0  ;;  %vm8120_vm14 = vcmp.ne.s16.totalorder %v6334_v0, 0  ;;  %vm8129_vm9 = vcmp.ne.s16.totalorder %v6340_v11, 0 }
 0x2c6   : > { %1404 = vrot.lane.b32.xlu1 %v1396_v40, %s6032_s25  ;;  %1330 = vrot.lane.b32.xlu0 %v1320_v41, %s6031_s22  ;;  %v6592_v40 = vsel %vm1688_vm15, %v6336_v5, %v6334_v0  ;;  %v1693_v41 = vsel %vm8118_vm12, %v6365_v27, 0  ;;  %vm1766_vm15 = vcmask 293888  }
 0x2c7   : > { %vm8117_vm10 = vcmp.ne.s16.totalorder %v6592_v40, 0 }
 0x2ca   : > { %1408 = vrot.lane.b32.xlu1 %v1398_v44, %s6032_s25  ;;  %1406 = vrot.lane.b32.xlu0 %v1397_v45, %s6032_s25  ;;  %v1694_v44 = vsel %vm8117_vm10, %v6368_v28, 0  ;;  %v1695_v45 = vsel %vm8120_vm14, %v6383_v32, 0  ;;  %vm1844_vm10 = vcmask 392192  }
 0x2ce   : > { %1484 = vrot.lane.b32.xlu1 %v1475_v26, %s6017_s18  ;;  %1482 = vrot.lane.b32.xlu0 %v1474_v29, %s6017_s18  ;;  %v1771_v26 = vsel %vm8129_vm9, %v6365_v27, 0  ;;  %v6616_v29 = vsel %vm1766_vm15, %v6340_v11, %v6338_v6  ;;  %vm8128_vm15 = vcmp.ne.s16.totalorder %v6342_v14, 0 }
 0x2cf   : > { %8248 = vst [vmem:[#allocation15_spill] sm:$0xff] %v6616_v29  ;;  %vm8124_vm12 = vcmp.ne.s16.totalorder %v6616_v29, 0 }
 0x2d2   : > { %1560 = vrot.lane.b32.xlu1 %v1552_v30, %s8199_s19  ;;  %1486 = vrot.lane.b32.xlu0 %v1476_v33, %s6017_s18  ;;  %v1772_v30 = vsel %vm8124_vm12, %v6368_v28, 0  ;;  %v1773_v33 = vsel %vm8123_vm11, %v6383_v32, 0  ;;  %vm8139_vm11 = vcmp.ne.s16.totalorder %v6344_v15, 0  ;;  %vm8147_vm12 = vcmp.ne.s16.totalorder %v6346_v16, 0 }
 0x2d6   : > { %1564 = vrot.lane.b32.xlu1 %v1554_v37, %s8199_s19  ;;  %1562 = vrot.lane.b32.xlu0 %v1553_v39, %s8199_s19  ;;  %v6630_v37 = vsel %vm1844_vm10, %v6342_v14, %v6344_v15  ;;  %v1849_v39 = vsel %vm8128_vm15, %v6365_v27, 0  ;;  %vm1922_vm10 = vcmask 400384   ;;  %vm8135_vm15 = vcmp.ne.s16.totalorder %v6348_v18, 0  ;;  %s8274_s19 = smov 93  }
 0x2d7   : > { %8249 = vst [vmem:[#allocation16_spill] sm:$0xff] %v6630_v37  ;;  %vm8125_vm14 = vcmp.ne.s16.totalorder %v6630_v37, 0  ;;  %v1929_v1 = vsel %vm8135_vm15, %v6383_v32, 0  ;;  %vm2141_vm15 = vcmask 424960  }
 0x2d8   : > { %v6698_v3 = vsel %vm2141_vm15, %v6356_v22, %v6354_v21  ;;  %vm2221_vm15 = vcmp.ne.s16.totalorder %v6360_v24, 0 }
 0x2d9   : > { %8257 = vst [vmem:[#allocation24_spill] sm:$0xff] %v6698_v3 }
 0x2da   : > { %1701 = vrot.lane.b32.xlu1 %v1693_v41, %s8121_s21  ;;  %1703 = vrot.lane.b32.xlu0 %v1694_v44, %s8121_s21  ;;  %v1850_v41 = vsel %vm8125_vm14, %v6368_v28, 0  ;;  %v6644_v44 = vpop.permute.xlu1 %2292  ;;  %vm2063_vm14 = vcmask 416768  }
 0x2de   : > { %1705 = vrot.lane.b32.xlu1 %v1695_v45, %s8121_s21  ;;  %1779 = vrot.lane.b32.xlu0 %v1771_v26, %s8126_s20  ;;  %s8136_s21 = smov 80   ;;  %v6646_v45 = vpop.permute.xlu0 %2294  ;;  %v1851_v26 = vsel %vm8139_vm11, %v6383_v32, 0  ;;  %vm8155_vm11 = vcmp.ne.s16.totalorder %v6356_v22, 0 }
 0x2df   : > { %8250 = vst [vmem:[#allocation17_spill] sm:$0xff] %v6646_v45  ;;  %v2146_v13 = vsel %vm8155_vm11, %v6365_v27, 0  ;;  %vm2296_vm11 = vcmask 531456  }
 0x2e2   : > { %1781 = vrot.lane.b32.xlu1 %v1772_v30, %s8126_s20  ;;  %1783 = vrot.lane.b32.xlu0 %v1773_v33, %s8126_s20  ;;  %v1927_v30 = vsel %vm8147_vm12, %v6365_v27, 0  ;;  %v6658_v33 = vsel %vm1922_vm10, %v6346_v16, %v6348_v18  ;;  %s8144_s20 = smov 79   ;;  %v6676_v10 = vpop.permute.xlu0 %2435  ;;  %vm8146_vm10 = vcmp.ne.s16.totalorder %v6352_v20, 0  ;;  %vm8159_vm12 = vcmp.ne.s16.totalorder %v6698_v3, 0 }
 0x2e3   : > { %8251 = vst [vmem:[#allocation18_spill] sm:$0xff] %v6658_v33  ;;  %vm8138_vm9 = vcmp.ne.s16.totalorder %v6658_v33, 0  ;;  %8254 = vst [vmem:[#allocation21_spill] sm:$0xff] %v6676_v10  ;;  %v2068_v17 = vsel %vm8146_vm10, %v6365_v27, 0  ;;  %vm8160_vm10 = vcmp.ne.s16.totalorder %v6354_v21, 0  ;;  %v2224_v3 = vsel %vm2221_vm15, %v6365_v27, 0 }
 0x2e4   : > { %v2148_v57 = vsel %vm8160_vm10, %v6383_v32, 0  ;;  %vm8171_vm10 = vcmp.ne.s16.totalorder %v6358_v23, 0 }
 0x2e6   : > { %1857 = vrot.lane.b32.xlu1 %v1849_v39, %s8136_s21  ;;  %1859 = vrot.lane.b32.xlu0 %v1850_v41, %s8136_s21  ;;  %v6666_v39 = vsel %vm2063_vm14, %v6352_v20, %v6350_v19  ;;  %v1928_v41 = vsel %vm8138_vm9, %v6368_v28, 0  ;;  %vm8154_vm9 = vcmp.ne.s16.totalorder %v6350_v19, 0 }
 0x2e7   : > { %8252 = vst [vmem:[#allocation19_spill] sm:$0xff] %v6666_v39  ;;  %vm8143_vm14 = vcmp.ne.s16.totalorder %v6666_v39, 0 }
 0x2ea   : > { %1861 = vrot.lane.b32.xlu1 %v1851_v26, %s8136_s21  ;;  %1935 = vrot.lane.b32.xlu0 %v1927_v30, %s8144_s20  ;;  %v6674_v26 = vpop.permute.xlu1 %2433  ;;  %v2069_v30 = vsel %vm8143_vm14, %v6368_v28, 0  ;;  %s8189_s21 = smov 77   ;;  %vm2219_vm14 = vcmask 523264  }
 0x2eb   : > { %8253 = vst [vmem:[#allocation20_spill] sm:$0xff] %v6674_v26  ;;  %v6717_v54 = vsel %vm2219_vm14, %v6360_v24, %v6358_v23 }
 0x2ec   : > { %8258 = vst [vmem:[#allocation25_spill] sm:$0xff] %v6717_v54 }
 0x2ee   : > { %1937 = vrot.lane.b32.xlu1 %v1928_v41, %s8144_s20  ;;  %1939 = vrot.lane.b32.xlu0 %v1929_v1, %s8144_s20  ;;  %v6692_v1 = vpop.permute.xlu1 %2511  ;;  %v6694_v41 = vpop.permute.xlu0 %2513  ;;  %s8165_s20 = smov 76  }
 0x2ef   : > { %8255 = vst [vmem:[#allocation22_spill] sm:$0xff] %v6692_v1  ;;  %8256 = vst [vmem:[#allocation23_spill] sm:$0xff] %v6694_v41 }
 0x2f2   : > { %2078 = vrot.lane.b32.xlu1 %v2069_v30, %s8189_s21  ;;  %2076 = vrot.lane.b32.xlu0 %v2068_v17, %s8189_s21  ;;  %v2070_v17 = vsel %vm8154_vm9, %v6383_v32, 0  ;;  %vm8164_vm9 = vcmp.ne.s16.totalorder %v6717_v54, 0 }
 0x2f3   : > { %v2225_v21 = vsel %vm8164_vm9, %v6368_v28, 0 }
 0x2f6   : > { %2154 = vrot.lane.b32.xlu1 %v2146_v13, %s8165_s20  ;;  %2080 = vrot.lane.b32.xlu0 %v2070_v17, %s8189_s21  ;;  %v2147_v13 = vsel %vm8159_vm12, %v6368_v28, 0  ;;  %vm8172_vm12 = vcmp.ne.s16.totalorder %v6644_v44, 0  ;;  %s8273_s21 = smov 92  }
 0x2f7   : > { %v2301_v39 = vsel %vm8172_vm12, %v6365_v27, 0 }
 0x2f8   : > { %v6710_v30 = vpop.permute.xlu1 %829  ;;  %v6712_v2 = vpop.permute.xlu0 %827 }
 0x2fa   : > { %2158 = vrot.lane.b32.xlu1 %v2148_v57, %s8165_s20  ;;  %2156 = vrot.lane.b32.xlu0 %v2147_v13, %s8165_s20  ;;  %v6744_v57 = vsel %vm2296_vm11, %v6644_v44, %v6646_v45  ;;  %vm8176_vm11 = vcmp.ne.s16.totalorder %v6646_v45, 0  ;;  %s8184_s20 = smov 63  }
 0x2fb   : > { %8259 = vst [vmem:[#allocation26_spill] sm:$0xff] %v6744_v57  ;;  %vm8175_vm9 = vcmp.ne.s16.totalorder %v6744_v57, 0  ;;  %v2303_v23 = vsel %vm8176_vm11, %v6383_v32, 0  ;;  %vm2517_vm11 = vcmp.ne.s16.totalorder %v6692_v1, 0 }
 0x2fc   : > { %v6729_v17 = vpop.permute.xlu1 %1248  ;;  %v6731_v19 = vpop.permute.xlu0 %831  ;;  %v2302_v37 = vsel %vm8175_vm9, %v6368_v28, 0  ;;  %vm2441_vm9 = vcmp.ne.s16.totalorder %v6676_v10, 0  ;;  %v2520_v15 = vsel %vm2517_vm11, %v6365_v27, 0 }
 0x2fe   : > { %2234 = vrot.lane.b32.xlu1 %v2225_v21, %s8177_s16  ;;  %2232 = vrot.lane.b32.xlu0 %v2224_v3, %s8177_s16  ;;  %v2226_v21 = vsel %vm8171_vm10, %v6383_v32, 0  ;;  %v6763_v3 = vsel %vm2437_vm0, %v6674_v26, %v6676_v10  ;;  %vm8183_vm10 = vcmp.ne.s16.totalorder %v6674_v26, 0  ;;  %vm2515_vm0 = vcmask 556032  }
 0x2ff   : > { %8260 = vst [vmem:[#allocation27_spill] sm:$0xff] %v6763_v3  ;;  %vm8182_vm12 = vcmp.ne.s16.totalorder %v6763_v3, 0  ;;  %v2442_v45 = vsel %vm8183_vm10, %v6365_v27, 0  ;;  %v2444_v3 = vsel %vm2441_vm9, %v6383_v32, 0  ;;  %vm8203_vm10 = vcmp.ne.s16.totalorder %v6694_v41, 0 }
 0x300   : > { %v6747_v13 = vpop.permute.xlu1 %1252  ;;  %v6749_v54 = vpop.permute.xlu0 %1250  ;;  %v2443_v57 = vsel %vm8182_vm12, %v6368_v28, 0  ;;  %v2522_v10 = vsel %vm8203_vm10, %v6383_v32, 0  ;;  %vm8205_vm10 = vcmask 908288  }
 0x302   : > { %2309 = vrot.lane.b32.xlu1 %v2301_v39, %s8184_s20  ;;  %2236 = vrot.lane.b32.xlu0 %v2226_v21, %s8177_s16  ;;  %s8187_s16 = smov 61  }
 0x304   : > { %v6765_v18 = vpop.permute.xlu1 %1625  ;;  %v6767_v33 = vpop.permute.xlu0 %1623 }
 0x306   : > { %2313 = vrot.lane.b32.xlu1 %v2303_v23, %s8184_s20  ;;  %2311 = vrot.lane.b32.xlu0 %v2302_v37, %s8184_s20  ;;  %v6795_v23 = vsel %vm2515_vm0, %v6692_v1, %v6694_v41  ;;  %s8197_s20 = smov 60   ;;  %vm8195_vm0 = vcmask 1039360  }
 0x307   : > { %8261 = vst [vmem:[#allocation28_spill] sm:$0xff] %v6795_v23  ;;  %vm2518_vm12 = vcmp.ne.s16.totalorder %v6795_v23, 0 }
 0x308   : > { %v6779_v39 = vpop.permute.xlu1 %1998  ;;  %v6781_v21 = vpop.permute.xlu0 %1627  ;;  %v2521_v27 = vsel %vm2518_vm12, %v6368_v28, 0  ;;  %v834_v28 = vsel %vm8196_vm6, %v6712_v2, %v6710_v30 }
 0x30a   : > { %2450 = vrot.lane.b32.xlu1 %v2442_v45, %s8187_s16  ;;  %2452 = vrot.lane.b32.xlu0 %v2443_v57, %s8187_s16 }
 0x30c   : > { %v6797_v37 = vpop.permute.xlu1 %2002  ;;  %v6799_v26 = vpop.permute.xlu0 %2000 }
 0x30e   : > { %2454 = vrot.lane.b32.xlu1 %v2444_v3, %s8187_s16  ;;  %2528 = vrot.lane.b32.xlu0 %v2520_v15, %s8197_s20  ;;  %v2589_v15 = vld [vmem:[%s8066_s4] sm:$0xff]  ;;  %s8270_s16 = smov 95  }
 0x310   : > { %v6811_v45 = vpop.permute.xlu1 %2374  ;;  %v6813_v57 = vpop.permute.xlu0 %2372 }
 0x312   : > { %2532 = vrot.lane.b32.xlu0 %v2522_v10, %s8197_s20  ;;  %2530 = vrot.lane.b32.xlu1 %v2521_v27, %s8197_s20  ;;  %v835_v27 = vsel %vm8196_vm6, %v6710_v30, %v6731_v19  ;;  %vm8202_vm6 = vcmask 1014784   ;;  %s8283_s20 = smov 77  }
 0x314   : > { %v713_v3 = vpop.permute.xlu1 %712  ;;  %v6826_v1 = vpop.permute.xlu0 %2376 }
 0x316   : > { %2592 = vperm.xlu1 %5978, %v2589_v15   ;;  %v5711_v15 = vld [vmem:[%s8065_s3 + $0x4] sm:$0xf] }
 0x318   : > { %v717_v6 = vpop.permute.xlu1 %716  ;;  %v715_v41 = vpop.permute.xlu0 %714 }
 0x319   : > { %v720_v32 = vsel %vm8195_vm0, %v715_v41, %v717_v6  ;;  %v719_v23 = vsel %vm8195_vm0, %v713_v3, %v715_v41  ;;  %vm8201_vm0 = vcmask 1022976   ;;  %v8262_v3 = vmov 0  }
 0x31a   : > { %5712 = vmatprep.subr.msk.bf16.mxu0 %vm725_vm4, %v720_v32  ;;  %v727_v10 = vsel %vm725_vm4, %v719_v23, 0  ;;  %v840_v23 = vsel %vm725_vm4, %v834_v28, 0  ;;  %v5716_v28 = vld [vmem:[%s8065_s3 + $0x8] sm:$0xf] }
 0x31b   : > { %733 = vmatpush1.bf16.msra.mxu0 %v727_v10 }
 0x31c   : > { %v927_v6 = vpop.permute.xlu1 %926  ;;  %5717 = vmatprep.subr.msk.bf16.mxu0 %vm725_vm4, %v835_v27  ;;  %v929_v41 = vpop.permute.xlu0 %928 }
 0x31d   : > { %v933_v2 = vsel %vm8201_vm0, %v927_v6, %v929_v41  ;;  %v5719_v6 = vld [vmem:[%s8065_s3 + $0xc] sm:$0xf] }
 0x31e   : > { %5713 = vmatmul.mubr.msk.bf16.vlgmr.msra.gmra.mrb[0].mxu0 %vm721_vm8, %v5711_v15  ;;  %v939_v10 = vsel %vm725_vm4, %v933_v2, 0 }
 0x31f   : > { %846 = vmatpush1.bf16.msra.mxu0 %v840_v23  ;;  %877 = vmatprep.mubr.bf16.mxu0 %v8262_v3 }
 0x320   : > { %v931_v19 = vpop.permute.xlu1 %930  ;;  %v1030_v30 = vpop.permute.xlu0 %1029 }
 0x321   : > { %v934_v32 = vsel %vm8201_vm0, %v929_v41, %v931_v19  ;;  %vm1113_vm0 = vcmask 916480  }
 0x322   : > { %5720 = vmatprep.subr.msk.bf16.mxu1 %vm725_vm4, %v934_v32 }
 0x323   : > { %945 = vmatpush1.bf16.msra.mxu1 %v939_v10  ;;  %v5722_v10 = vld [vmem:[%s8065_s3 + $0x10] sm:$0xf] }
 0x324   : > { %v1032_v27 = vpop.permute.xlu1 %1031  ;;  %v1034_v15 = vpop.permute.xlu0 %1033 }
 0x325   : > { %v1036_v23 = vsel %vm8202_vm6, %v1030_v30, %v1032_v27  ;;  %v1037_v41 = vsel %vm8202_vm6, %v1032_v27, %v1034_v15  ;;  %vm8204_vm6 = vcmask 900096  }
 0x326   : > { %5718 = vmatmul.mubr.msk.bf16.vlgmr.msra.gmra.mrb[4].mxu0 %vm721_vm8, %v5716_v28  ;;  %5723 = vmatprep.subr.msk.bf16.mxu0 %vm725_vm4, %v1037_v41  ;;  %v1042_v2 = vsel %vm725_vm4, %v1036_v23, 0  ;;  %v1255_v23 = vsel %vm8204_vm6, %v6729_v17, %v6749_v54  ;;  %v1256_v41 = vsel %vm8204_vm6, %v6749_v54, %v6747_v13  ;;  %v5728_v13 = vld [vmem:[%s8065_s3 + $0x18] sm:$0xf]  ;;  %vm8207_vm6 = vcmask 891904  }
 0x327   : > { %1048 = vmatpush1.bf16.msra.mxu0 %v1042_v2  ;;  %5721 = vmatmul.mubr.msk.bf16.vlgmr.msra.gmra.mrb[4].mxu1 %vm721_vm8, %v5719_v6  ;;  %v5725_v2 = vld [vmem:[%s8065_s3 + $0x14] sm:$0xf]  ;;  %v1261_v17 = vsel %vm725_vm4, %v1255_v23, 0 }
 0x328   : > { %v1108_v19 = vpop.permute.xlu1 %1107  ;;  %v1110_v32 = vpop.permute.xlu0 %1109  ;;  %1079 = vmatprep.mubr.bf16.mxu0 %v8262_v3  ;;  %1157 = vmatprep.mubr.bf16.mxu1 %v8262_v3 }
 0x329   : > { %v1114_v30 = vsel %vm1113_vm0, %v1108_v19, %v1110_v32 }
 0x32a   : > { %v1120_v6 = vsel %vm725_vm4, %v1114_v30, 0 }
 0x32c   : > { %v1112_v28 = vpop.permute.xlu1 %1111  ;;  %v1186_v27 = vpop.permute.xlu0 %1185 }
 0x32d   : > { %v1115_v15 = vsel %vm1113_vm0, %v1110_v32, %v1112_v28 }
 0x32e   : > { %5724 = vmatmul.mubr.msk.bf16.vlgmr.msra.gmra.mrb[8].mxu0 %vm721_vm8, %v5722_v10  ;;  %5726 = vmatprep.subr.msk.bf16.mxu1 %vm725_vm4, %v1115_v15 }
 0x32f   : > { %1126 = vmatpush1.bf16.msra.mxu1 %v1120_v6  ;;  %1235 = vmatprep.mubr.bf16.mxu0 %v8262_v3  ;;  %v5731_v6 = vld [vmem:[%s8065_s3 + $0x1c] sm:$0xf] }
 0x330   : > { %v1188_v19 = vpop.permute.xlu1 %1187  ;;  %5732 = vmatprep.subr.msk.bf16.mxu1 %vm725_vm4, %v1256_v41  ;;  %v1190_v32 = vpop.permute.xlu0 %1189 }
 0x331   : > { %v1192_v30 = vsel %vm8205_vm10, %v1186_v27, %v1188_v19  ;;  %v1193_v10 = vsel %vm8205_vm10, %v1188_v19, %v1190_v32  ;;  %vm8206_vm10 = vcmask 883712   ;;  %v5734_v32 = vld [vmem:[%s8065_s3 + $0x20] sm:$0xf] }
 0x332   : > { %5727 = vmatmul.mubr.msk.bf16.vlgmr.msra.gmra.mrb[8].mxu1 %vm721_vm8, %v5725_v2  ;;  %5729 = vmatprep.subr.msk.bf16.mxu0 %vm725_vm4, %v1193_v10  ;;  %v1198_v54 = vsel %vm725_vm4, %v1192_v30, 0 }
 0x333   : > { %1204 = vmatpush1.bf16.msra.mxu0 %v1198_v54  ;;  %1267 = vmatpush1.bf16.msra.mxu1 %v1261_v17 }
 0x334   : > { %v1329_v28 = vpop.permute.xlu1 %1328  ;;  %v1327_v15 = vpop.permute.xlu0 %1326  ;;  %1298 = vmatprep.mubr.bf16.mxu1 %v8262_v3 }
 0x335   : > { %v1333_v27 = vsel %vm8207_vm6, %v1327_v15, %v1329_v28 }
 0x336   : > { %5730 = vmatmul.mubr.msk.bf16.vlgmr.msra.gmra.mrb[12].mxu0 %vm721_vm8, %v5728_v13  ;;  %v1339_v19 = vsel %vm725_vm4, %v1333_v27, 0 }
 0x337   : > { %1376 = vmatprep.mubr.bf16.mxu0 %v8262_v3 }
 0x338   : > { %v1405_v23 = vpop.permute.xlu1 %1404  ;;  %v1331_v41 = vpop.permute.xlu0 %1330 }
 0x339   : > { %v1334_v2 = vsel %vm8207_vm6, %v1329_v28, %v1331_v41  ;;  %v5737_v28 = vld [vmem:[%s8065_s3 + $0x24] sm:$0xf]  ;;  %vm8209_vm6 = vcmask 777216  }
 0x33a   : > { %5733 = vmatmul.mubr.msk.bf16.vlgmr.msra.gmra.mrb[12].mxu1 %vm721_vm8, %v5731_v6  ;;  %5735 = vmatprep.subr.msk.bf16.mxu0 %vm725_vm4, %v1334_v2 }
 0x33b   : > { %1345 = vmatpush1.bf16.msra.mxu0 %v1339_v19  ;;  %1454 = vmatprep.mubr.bf16.mxu1 %v8262_v3 }
 0x33c   : > { %v1409_v30 = vpop.permute.xlu1 %1408  ;;  %v1407_v10 = vpop.permute.xlu0 %1406 }
 0x33d   : > { %v1411_v54 = vsel %vm8206_vm10, %v1405_v23, %v1407_v10  ;;  %v1412_v17 = vsel %vm8206_vm10, %v1407_v10, %v1409_v30  ;;  %vm8208_vm10 = vcmask 769024   ;;  %v5740_v10 = vld [vmem:[%s8065_s3 + $0x28] sm:$0xf] }
 0x33e   : > { %5736 = vmatmul.mubr.msk.bf16.vlgmr.msra.gmra.mrb[16].mxu0 %vm721_vm8, %v5734_v32  ;;  %5738 = vmatprep.subr.msk.bf16.mxu1 %vm725_vm4, %v1412_v17  ;;  %v1417_v13 = vsel %vm725_vm4, %v1411_v54, 0  ;;  %v1630_v32 = vsel %vm8208_vm10, %v6767_v33, %v6765_v18  ;;  %v1631_v30 = vsel %vm8208_vm10, %v6765_v18, %v6781_v21  ;;  %v5743_v33 = vld [vmem:[%s8065_s3 + $0x2c] sm:$0xf]  ;;  %vm8210_vm10 = vcmask 760832  }
 0x33f   : > { %1423 = vmatpush1.bf16.msra.mxu1 %v1417_v13  ;;  %1532 = vmatprep.mubr.bf16.mxu0 %v8262_v3 }
 0x340   : > { %v1485_v15 = vpop.permute.xlu1 %1484  ;;  %v1483_v27 = vpop.permute.xlu0 %1482 }
 0x341   : > { %v1489_v6 = vsel %vm8212_vm13, %v1483_v27, %v1485_v15 }
 0x342   : > { %5739 = vmatmul.mubr.msk.bf16.vlgmr.msra.gmra.mrb[16].mxu1 %vm721_vm8, %v5737_v28  ;;  %v1495_v19 = vsel %vm725_vm4, %v1489_v6, 0 }
 0x343   : > { %1610 = vmatprep.mubr.bf16.mxu1 %v8262_v3 }
 0x344   : > { %v1561_v23 = vpop.permute.xlu1 %1560  ;;  %v1487_v41 = vpop.permute.xlu0 %1486 }
 0x345   : > { %v1490_v2 = vsel %vm8212_vm13, %v1485_v15, %v1487_v41  ;;  %v1636_v15 = vsel %vm725_vm4, %v1630_v32, 0  ;;  %vm8214_vm13 = vcmask 646144  }
 0x346   : > { %5741 = vmatprep.subr.msk.bf16.mxu0 %vm725_vm4, %v1490_v2 }
 0x347   : > { %1501 = vmatpush1.bf16.msra.mxu0 %v1495_v19 }
 0x348   : > { %v1565_v54 = vpop.permute.xlu1 %1564  ;;  %5747 = vmatprep.subr.msk.bf16.mxu0 %vm725_vm4, %v1631_v30  ;;  %v1563_v17 = vpop.permute.xlu0 %1562  ;;  %v5749_v30 = vld [vmem:[%s8065_s3 + $0x34] sm:$0xf] }
 0x349   : > { %v1567_v13 = vsel %vm8209_vm6, %v1561_v23, %v1563_v17  ;;  %v1568_v28 = vsel %vm8209_vm6, %v1563_v17, %v1565_v54  ;;  %v5746_v23 = vld [vmem:[%s8065_s3 + $0x30] sm:$0xf]  ;;  %vm8211_vm6 = vcmask 752640  }
 0x34a   : > { %5742 = vmatmul.mubr.msk.bf16.vlgmr.msra.gmra.mrb[20].mxu0 %vm721_vm8, %v5740_v10  ;;  %5744 = vmatprep.subr.msk.bf16.mxu1 %vm725_vm4, %v1568_v28  ;;  %v1573_v18 = vsel %vm725_vm4, %v1567_v13, 0 }
 0x34b   : > { %1579 = vmatpush1.bf16.msra.mxu1 %v1573_v18  ;;  %1642 = vmatpush1.bf16.msra.mxu0 %v1636_v15  ;;  %v5752_v15 = vld [vmem:[%s8065_s3 + $0x38] sm:$0xf] }
 0x34c   : > { %v1702_v21 = vpop.permute.xlu1 %1701  ;;  %v1704_v27 = vpop.permute.xlu0 %1703  ;;  %1673 = vmatprep.mubr.bf16.mxu0 %v8262_v3 }
 0x34d   : > { %v1708_v6 = vsel %vm8210_vm10, %v1702_v21, %v1704_v27 }
 0x34e   : > { %5745 = vmatmul.mubr.msk.bf16.vlgmr.msra.gmra.mrb[20].mxu1 %vm721_vm8, %v5743_v33  ;;  %v1714_v32 = vsel %vm725_vm4, %v1708_v6, 0 }
 0x34f   : > { %1751 = vmatprep.mubr.bf16.mxu1 %v8262_v3 }
 0x350   : > { %v1706_v41 = vpop.permute.xlu1 %1705  ;;  %v1780_v2 = vpop.permute.xlu0 %1779 }
 0x351   : > { %v1709_v19 = vsel %vm8210_vm10, %v1704_v27, %v1706_v41  ;;  %vm1863_vm10 = vcmask 654336  }
 0x352   : > { %5748 = vmatmul.mubr.msk.bf16.vlgmr.msra.gmra.mrb[24].mxu0 %vm721_vm8, %v5746_v23  ;;  %5750 = vmatprep.subr.msk.bf16.mxu1 %vm725_vm4, %v1709_v19 }
 0x353   : > { %1720 = vmatpush1.bf16.msra.mxu1 %v1714_v32  ;;  %1829 = vmatprep.mubr.bf16.mxu0 %v8262_v3  ;;  %v5755_v32 = vld [vmem:[%s8065_s3 + $0x3c] sm:$0xf] }
 0x354   : > { %v1782_v10 = vpop.permute.xlu1 %1781  ;;  %v1784_v54 = vpop.permute.xlu0 %1783 }
 0x355   : > { %v1786_v17 = vsel %vm8211_vm6, %v1780_v2, %v1782_v10  ;;  %v1787_v13 = vsel %vm8211_vm6, %v1782_v10, %v1784_v54  ;;  %vm8213_vm6 = vcmask 637952  }
 0x356   : > { %5751 = vmatmul.mubr.msk.bf16.vlgmr.msra.gmra.mrb[24].mxu1 %vm721_vm8, %v5749_v30  ;;  %5753 = vmatprep.subr.msk.bf16.mxu0 %vm725_vm4, %v1787_v13  ;;  %v1792_v28 = vsel %vm725_vm4, %v1786_v17, 0  ;;  %v2005_v2 = vsel %vm8213_vm6, %v6779_v39, %v6799_v26  ;;  %v2006_v19 = vsel %vm8213_vm6, %v6799_v26, %v6797_v37  ;;  %v5758_v37 = vld [vmem:[%s8065_s3 + $0x40] sm:$0xf]  ;;  %vm8216_vm6 = vcmask 629760  }
 0x357   : > { %1798 = vmatpush1.bf16.msra.mxu0 %v1792_v28  ;;  %1907 = vmatprep.mubr.bf16.mxu1 %v8262_v3  ;;  %v2011_v26 = vsel %vm725_vm4, %v2005_v2, 0 }
 0x358   : > { %v1858_v18 = vpop.permute.xlu1 %1857  ;;  %v1860_v33 = vpop.permute.xlu0 %1859 }
 0x359   : > { %v1864_v21 = vsel %vm1863_vm10, %v1858_v18, %v1860_v33  ;;  %v5761_v18 = vld [vmem:[%s8065_s3 + $0x44] sm:$0xf] }
 0x35a   : > { %5754 = vmatmul.mubr.msk.bf16.vlgmr.msra.gmra.mrb[28].mxu0 %vm721_vm8, %v5752_v15  ;;  %v1870_v41 = vsel %vm725_vm4, %v1864_v21, 0 }
 0x35b   : > { %1985 = vmatprep.mubr.bf16.mxu0 %v8262_v3 }
 0x35c   : > { %v1862_v27 = vpop.permute.xlu1 %1861  ;;  %v1936_v6 = vpop.permute.xlu0 %1935 }
 0x35d   : > { %v1865_v23 = vsel %vm1863_vm10, %v1860_v33, %v1862_v27 }
 0x35e   : > { %5756 = vmatprep.subr.msk.bf16.mxu1 %vm725_vm4, %v1865_v23  ;;  %v5764_v23 = vld [vmem:[%s8065_s3 + $0x48] sm:$0xf] }
 0x35f   : > { %1876 = vmatpush1.bf16.msra.mxu1 %v1870_v41 }
 0x360   : > { %v1938_v30 = vpop.permute.xlu1 %1937  ;;  %5762 = vmatprep.subr.msk.bf16.mxu1 %vm725_vm4, %v2006_v19  ;;  %v1940_v10 = vpop.permute.xlu0 %1939 }
 0x361   : > { %v1942_v54 = vsel %vm8214_vm13, %v1936_v6, %v1938_v30  ;;  %v1943_v17 = vsel %vm8214_vm13, %v1938_v30, %v1940_v10  ;;  %vm8215_vm13 = vcmask 621568   ;;  %v5767_v10 = vld [vmem:[%s8065_s3 + $0x4c] sm:$0xf] }
 0x362   : > { %5757 = vmatmul.mubr.msk.bf16.vlgmr.msra.gmra.mrb[28].mxu1 %vm721_vm8, %v5755_v32  ;;  %5759 = vmatprep.subr.msk.bf16.mxu0 %vm725_vm4, %v1943_v17  ;;  %v1948_v39 = vsel %vm725_vm4, %v1942_v54, 0 }
 0x363   : > { %1954 = vmatpush1.bf16.msra.mxu0 %v1948_v39  ;;  %2017 = vmatpush1.bf16.msra.mxu1 %v2011_v26 }
 0x364   : > { %v2079_v13 = vpop.permute.xlu1 %2078  ;;  %v2077_v28 = vpop.permute.xlu0 %2076  ;;  %2048 = vmatprep.mubr.bf16.mxu1 %v8262_v3 }
 0x365   : > { %v2083_v15 = vsel %vm8216_vm6, %v2077_v28, %v2079_v13 }
 0x366   : > { %5760 = vmatmul.mubr.msk.bf16.vlgmr.msra.gmra.mrb[32].mxu0 %vm721_vm8, %v5758_v37  ;;  %v2089_v6 = vsel %vm725_vm4, %v2083_v15, 0  ;;  %v816_v15 = vpop.f32.mrb[0].mxu1 }
 0x367   : > { %2126 = vmatprep.mubr.bf16.mxu0 %v8262_v3 }
 0x368   : > { %v2155_v33 = vpop.permute.xlu1 %2154  ;;  %v2081_v21 = vpop.permute.xlu0 %2080 }
 0x369   : > { %v2084_v27 = vsel %vm8216_vm6, %v2079_v13, %v2081_v21  ;;  %vm8218_vm6 = vcmask 515072   ;;  %v5770_v21 = vld [vmem:[%s8065_s3 + $0x50] sm:$0xf] }
 0x36a   : > { %5763 = vmatmul.mubr.msk.bf16.vlgmr.msra.gmra.mrb[32].mxu1 %vm721_vm8, %v5761_v18  ;;  %5765 = vmatprep.subr.msk.bf16.mxu0 %vm725_vm4, %v2084_v27  ;;  %v818_v27 = vpop.f32.mrb[1].mxu1 }
 0x36b   : > { %2095 = vmatpush1.bf16.msra.mxu0 %v2089_v6  ;;  %2204 = vmatprep.mubr.bf16.mxu1 %v8262_v3 }
 0x36c   : > { %v2159_v41 = vpop.permute.xlu1 %2158  ;;  %v2157_v2 = vpop.permute.xlu0 %2156 }
 0x36d   : > { %v2161_v19 = vsel %vm8215_vm13, %v2155_v33, %v2157_v2  ;;  %v2162_v32 = vsel %vm8215_vm13, %v2157_v2, %v2159_v41  ;;  %vm8217_vm13 = vcmask 506880  }
 0x36e   : > { %5766 = vmatmul.mubr.msk.bf16.vlgmr.msra.gmra.mrb[36].mxu0 %vm721_vm8, %v5764_v23  ;;  %5768 = vmatprep.subr.msk.bf16.mxu1 %vm725_vm4, %v2162_v32  ;;  %v2167_v30 = vsel %vm725_vm4, %v2161_v19, 0  ;;  %v2379_v18 = vsel %vm8217_vm13, %v6813_v57, %v6811_v45  ;;  %v2380_v33 = vsel %vm8217_vm13, %v6811_v45, %v6826_v1  ;;  %v820_v19 = vpop.f32.mrb[2].mxu1  ;;  %v5773_v32 = vld [vmem:[%s8065_s3 + $0x54] sm:$0xf]  ;;  %vm2456_vm13 = vcmask 498688  }
 0x36f   : > { %2173 = vmatpush1.bf16.msra.mxu1 %v2167_v30  ;;  %2281 = vmatprep.mubr.bf16.mxu0 %v8262_v3  ;;  %v2385_v57 = vsel %vm725_vm4, %v2379_v18, 0  ;;  %v821_v45 = vpop.f32.mrb[3].mxu1 }
 0x370   : > { %v2235_v54 = vpop.permute.xlu1 %2234  ;;  %v2233_v17 = vpop.permute.xlu0 %2232 }
 0x371   : > { %v2238_v39 = vsel %vm2219_vm14, %v2233_v17, %v2235_v54  ;;  %v5776_v17 = vld [vmem:[%s8065_s3 + $0x58] sm:$0xf] }
 0x372   : > { %5769 = vmatmul.mubr.msk.bf16.vlgmr.msra.gmra.mrb[36].mxu1 %vm721_vm8, %v5767_v10  ;;  %v2244_v28 = vsel %vm725_vm4, %v2238_v39, 0 }
 0x373   : > { %2359 = vmatprep.mubr.bf16.mxu1 %v8262_v3 }
 0x374   : > { %v2310_v26 = vpop.permute.xlu1 %2309  ;;  %v2237_v37 = vpop.permute.xlu0 %2236 }
 0x375   : > { %v2239_v13 = vsel %vm2219_vm14, %v2235_v54, %v2237_v37 }
 0x376   : > { %5771 = vmatprep.subr.msk.bf16.mxu0 %vm725_vm4, %v2239_v13 }
 0x377   : > { %2250 = vmatpush1.bf16.msra.mxu0 %v2244_v28  ;;  %v5779_v28 = vld [vmem:[%s8065_s3 + $0x5c] sm:$0xf] }
 0x378   : > { %v2314_v6 = vpop.permute.xlu1 %2313  ;;  %5777 = vmatprep.subr.msk.bf16.mxu0 %vm725_vm4, %v2380_v33  ;;  %v2312_v23 = vpop.permute.xlu0 %2311 }
 0x379   : > { %v2316_v41 = vsel %vm8218_vm6, %v2310_v26, %v2312_v23  ;;  %v2317_v2 = vsel %vm8218_vm6, %v2312_v23, %v2314_v6  ;;  %vm2534_vm6 = vcmask 490496  }
 0x37a   : > { %5772 = vmatmul.mubr.msk.bf16.vlgmr.msra.gmra.mrb[40].mxu0 %vm721_vm8, %v5770_v21  ;;  %5774 = vmatprep.subr.msk.bf16.mxu1 %vm725_vm4, %v2317_v2  ;;  %v2322_v1 = vsel %vm725_vm4, %v2316_v41, 0  ;;  %v5782_v41 = vld [vmem:[%s8065_s3 + $0x60] sm:$0xf] }
 0x37b   : > { %2328 = vmatpush1.bf16.msra.mxu1 %v2322_v1  ;;  %2391 = vmatpush1.bf16.msra.mxu0 %v2385_v57 }
 0x37c   : > { %v2451_v30 = vpop.permute.xlu1 %2450  ;;  %v2453_v10 = vpop.permute.xlu0 %2452  ;;  %2422 = vmatprep.mubr.bf16.mxu0 %v8262_v3 }
 0x37d   : > { %v2457_v54 = vsel %vm2456_vm13, %v2451_v30, %v2453_v10 }
 0x37e   : > { %5775 = vmatmul.mubr.msk.bf16.vlgmr.msra.gmra.mrb[40].mxu1 %vm721_vm8, %v5773_v32  ;;  %v2463_v13 = vsel %vm725_vm4, %v2457_v54, 0 }
 0x37f   : > { %2500 = vmatprep.mubr.bf16.mxu1 %v8262_v3 }
 0x380   : > { %v2455_v39 = vpop.permute.xlu1 %2454  ;;  %v2529_v26 = vpop.permute.xlu0 %2528 }
 0x381   : > { %v2458_v37 = vsel %vm2456_vm13, %v2453_v10, %v2455_v39 }
 0x382   : > { %5778 = vmatmul.mubr.msk.bf16.vlgmr.msra.gmra.mrb[44].mxu0 %vm721_vm8, %v5776_v17  ;;  %5780 = vmatprep.subr.msk.bf16.mxu1 %vm725_vm4, %v2458_v37 }
 0x383   : > { %2469 = vmatpush1.bf16.msra.mxu1 %v2463_v13  ;;  %2578 = vmatprep.mubr.bf16.mxu0 %v8262_v3 }
 0x384   : > { %v2531_v18 = vpop.permute.xlu1 %2530  ;;  %v2533_v33 = vpop.permute.xlu0 %2532 }
 0x385   : > { %v2535_v21 = vsel %vm2534_vm6, %v2529_v26, %v2531_v18  ;;  %v2536_v6 = vsel %vm2534_vm6, %v2531_v18, %v2533_v33 }
 0x386   : > { %5781 = vmatmul.mubr.msk.bf16.vlgmr.msra.gmra.mrb[44].mxu1 %vm721_vm8, %v5779_v28  ;;  %5783 = vmatprep.subr.msk.bf16.mxu0 %vm725_vm4, %v2536_v6  ;;  %v2541_v23 = vsel %vm725_vm4, %v2535_v21, 0  ;;  %vm2636_vm4 = vcmask 1043456  }
 0x387   : > { %2547 = vmatpush1.bf16.msra.mxu0 %v2541_v23  ;;  %2675 = vmatprep.mubr.bf16.mxu1 %v8262_v3 }
 0x38a   : > { %5784 = vmatmul.mubr.msk.bf16.vlgmr.msra.gmra.mrb[48].mxu0 %vm721_vm8, %v5782_v41  ;;  %vm8266_vm8 = vcmp.ne.s16.totalorder %v6320_v56, 0 }
 0x38b   : > { %2725 = vmatprep.mubr.bf16.mxu0 %v8262_v3 }
 0x3f1   : > { %v766_v2 = vpop.f32.mrb[0].mxu0 }
 0x3f2   : > { %v768_v19 = vpop.f32.mrb[1].mxu0  ;;  %v817_v57 = vadd.f32 %v816_v15, %v766_v2 }
 0x3f3   : > { %v770_v1 = vpop.f32.mrb[2].mxu0  ;;  %v819_v45 = vadd.f32 %v818_v27, %v768_v19 }
 0x3f4   : > { %v771_v32 = vpop.f32.mrb[3].mxu0 }
 0x3f9   : > { %v879_v30 = vpop.f32.mrb[4].mxu0 }
 0x3fa   : > { %v886_v10 = vadd.f32 %v879_v30, %v817_v57  ;;  %v881_v54 = vpop.f32.mrb[5].mxu0  ;;  %v978_v17 = vpop.f32.mrb[4].mxu1 }
 0x3fb   : > { %v887_v39 = vadd.f32 %v881_v54, %v819_v45  ;;  %v883_v26 = vpop.f32.mrb[6].mxu0  ;;  %v980_v37 = vpop.f32.mrb[5].mxu1 }
 0x3fc   : > { %v985_v13 = vadd.f32 %v978_v17, %v886_v10  ;;  %v884_v28 = vpop.f32.mrb[7].mxu0  ;;  %v982_v18 = vpop.f32.mrb[6].mxu1 }
 0x3fd   : > { %v986_v33 = vadd.f32 %v980_v37, %v887_v39  ;;  %v983_v21 = vpop.f32.mrb[7].mxu1 }
 0x401   : > { %v1081_v6 = vpop.f32.mrb[8].mxu0 }
 0x402   : > { %v1088_v23 = vadd.f32 %v1081_v6, %v985_v13  ;;  %v1083_v41 = vpop.f32.mrb[9].mxu0 }
 0x403   : > { %v1089_v29 = vadd.f32 %v1083_v41, %v986_v33  ;;  %v1085_v15 = vpop.f32.mrb[10].mxu0 }
 0x404   : > { %v1086_v2 = vpop.f32.mrb[11].mxu0 }
 0x405   : > { %v1159_v27 = vpop.f32.mrb[8].mxu1 }
 0x406   : > { %v1166_v19 = vadd.f32 %v1159_v27, %v1088_v23  ;;  %v1161_v1 = vpop.f32.mrb[9].mxu1 }
 0x407   : > { %v1167_v57 = vadd.f32 %v1161_v1, %v1089_v29  ;;  %v1163_v32 = vpop.f32.mrb[10].mxu1 }
 0x408   : > { %v1164_v30 = vpop.f32.mrb[11].mxu1 }
 0x409   : > { %v1237_v45 = vpop.f32.mrb[12].mxu0 }
 0x40a   : > { %v1244_v54 = vadd.f32 %v1237_v45, %v1166_v19  ;;  %v1239_v26 = vpop.f32.mrb[13].mxu0 }
 0x40b   : > { %v1245_v10 = vadd.f32 %v1239_v26, %v1167_v57  ;;  %v1241_v17 = vpop.f32.mrb[14].mxu0 }
 0x40c   : > { %v1242_v28 = vpop.f32.mrb[15].mxu0 }
 0x40d   : > { %v1300_v39 = vpop.f32.mrb[12].mxu1 }
 0x40e   : > { %v1307_v37 = vadd.f32 %v1300_v39, %v1244_v54  ;;  %v1302_v18 = vpop.f32.mrb[13].mxu1 }
 0x40f   : > { %v1308_v13 = vadd.f32 %v1302_v18, %v1245_v10  ;;  %v1304_v21 = vpop.f32.mrb[14].mxu1 }
 0x410   : > { %v1305_v33 = vpop.f32.mrb[15].mxu1 }
 0x411   : > { %v1378_v6 = vpop.f32.mrb[16].mxu0 }
 0x412   : > { %v1385_v41 = vadd.f32 %v1378_v6, %v1307_v37  ;;  %v1380_v15 = vpop.f32.mrb[17].mxu0 }
 0x413   : > { %v1386_v23 = vadd.f32 %v1380_v15, %v1308_v13  ;;  %v1382_v2 = vpop.f32.mrb[18].mxu0 }
 0x414   : > { %v1383_v29 = vpop.f32.mrb[19].mxu0 }
 0x415   : > { %v1456_v27 = vpop.f32.mrb[16].mxu1 }
 0x416   : > { %v1463_v1 = vadd.f32 %v1456_v27, %v1385_v41  ;;  %v1458_v32 = vpop.f32.mrb[17].mxu1 }
 0x417   : > { %v1464_v19 = vadd.f32 %v1458_v32, %v1386_v23  ;;  %v1460_v30 = vpop.f32.mrb[18].mxu1 }
 0x418   : > { %v1461_v57 = vpop.f32.mrb[19].mxu1 }
 0x41d   : > { %v1534_v45 = vpop.f32.mrb[20].mxu0 }
 0x41e   : > { %v1541_v26 = vadd.f32 %v1534_v45, %v1463_v1  ;;  %v1536_v17 = vpop.f32.mrb[21].mxu0 }
 0x41f   : > { %v1542_v54 = vadd.f32 %v1536_v17, %v1464_v19  ;;  %v1538_v28 = vpop.f32.mrb[22].mxu0 }
 0x420   : > { %v1539_v10 = vpop.f32.mrb[23].mxu0 }
 0x421   : > { %v1612_v39 = vpop.f32.mrb[20].mxu1 }
 0x422   : > { %v1619_v18 = vadd.f32 %v1612_v39, %v1541_v26  ;;  %v1614_v21 = vpop.f32.mrb[21].mxu1 }
 0x423   : > { %v1620_v37 = vadd.f32 %v1614_v21, %v1542_v54  ;;  %v1616_v33 = vpop.f32.mrb[22].mxu1 }
 0x424   : > { %v1617_v13 = vpop.f32.mrb[23].mxu1 }
 0x425   : > { %v1675_v6 = vpop.f32.mrb[24].mxu0 }
 0x426   : > { %v1682_v15 = vadd.f32 %v1675_v6, %v1619_v18  ;;  %v1677_v2 = vpop.f32.mrb[25].mxu0 }
 0x427   : > { %v1683_v41 = vadd.f32 %v1677_v2, %v1620_v37  ;;  %v1679_v29 = vpop.f32.mrb[26].mxu0 }
 0x428   : > { %v1680_v23 = vpop.f32.mrb[27].mxu0 }
 0x429   : > { %v1753_v27 = vpop.f32.mrb[24].mxu1 }
 0x42a   : > { %v1760_v32 = vadd.f32 %v1753_v27, %v1682_v15  ;;  %v1755_v30 = vpop.f32.mrb[25].mxu1 }
 0x42b   : > { %v1761_v1 = vadd.f32 %v1755_v30, %v1683_v41  ;;  %v1757_v57 = vpop.f32.mrb[26].mxu1 }
 0x42c   : > { %v1758_v19 = vpop.f32.mrb[27].mxu1 }
 0x42d   : > { %v1831_v45 = vpop.f32.mrb[28].mxu0 }
 0x42e   : > { %v1838_v17 = vadd.f32 %v1831_v45, %v1760_v32  ;;  %v1833_v28 = vpop.f32.mrb[29].mxu0 }
 0x42f   : > { %v1839_v26 = vadd.f32 %v1833_v28, %v1761_v1  ;;  %v1835_v10 = vpop.f32.mrb[30].mxu0 }
 0x430   : > { %v1836_v54 = vpop.f32.mrb[31].mxu0 }
 0x435   : > { %v1909_v39 = vpop.f32.mrb[28].mxu1 }
 0x436   : > { %v1916_v21 = vadd.f32 %v1909_v39, %v1838_v17  ;;  %v1911_v33 = vpop.f32.mrb[29].mxu1 }
 0x437   : > { %v1917_v18 = vadd.f32 %v1911_v33, %v1839_v26  ;;  %v1913_v13 = vpop.f32.mrb[30].mxu1 }
 0x438   : > { %v1914_v37 = vpop.f32.mrb[31].mxu1 }
 0x439   : > { %v1987_v6 = vpop.f32.mrb[32].mxu0 }
 0x43a   : > { %v1994_v2 = vadd.f32 %v1987_v6, %v1916_v21  ;;  %v1989_v29 = vpop.f32.mrb[33].mxu0 }
 0x43b   : > { %v1995_v15 = vadd.f32 %v1989_v29, %v1917_v18  ;;  %v1991_v23 = vpop.f32.mrb[34].mxu0 }
 0x43c   : > { %v1992_v41 = vpop.f32.mrb[35].mxu0 }
 0x43d   : > { %v2050_v27 = vpop.f32.mrb[32].mxu1 }
 0x43e   : > { %v2057_v30 = vadd.f32 %v2050_v27, %v1994_v2  ;;  %v2052_v57 = vpop.f32.mrb[33].mxu1 }
 0x43f   : > { %v2058_v32 = vadd.f32 %v2052_v57, %v1995_v15  ;;  %v2054_v19 = vpop.f32.mrb[34].mxu1 }
 0x440   : > { %v2055_v1 = vpop.f32.mrb[35].mxu1 }
 0x441   : > { %v2128_v45 = vpop.f32.mrb[36].mxu0 }
 0x442   : > { %v2135_v28 = vadd.f32 %v2128_v45, %v2057_v30  ;;  %v2130_v10 = vpop.f32.mrb[37].mxu0 }
 0x443   : > { %v2136_v17 = vadd.f32 %v2130_v10, %v2058_v32  ;;  %v2132_v54 = vpop.f32.mrb[38].mxu0 }
 0x444   : > { %v2133_v26 = vpop.f32.mrb[39].mxu0 }
 0x445   : > { %v2206_v39 = vpop.f32.mrb[36].mxu1 }
 0x446   : > { %v2213_v33 = vadd.f32 %v2206_v39, %v2135_v28  ;;  %v2208_v13 = vpop.f32.mrb[37].mxu1 }
 0x447   : > { %v2214_v21 = vadd.f32 %v2208_v13, %v2136_v17  ;;  %v2210_v37 = vpop.f32.mrb[38].mxu1 }
 0x448   : > { %v2211_v18 = vpop.f32.mrb[39].mxu1 }
 0x44d   : > { %v2283_v6 = vpop.f32.mrb[40].mxu0 }
 0x44e   : > { %v2290_v29 = vadd.f32 %v2283_v6, %v2213_v33  ;;  %v2285_v23 = vpop.f32.mrb[41].mxu0 }
 0x44f   : > { %v2291_v2 = vadd.f32 %v2285_v23, %v2214_v21  ;;  %v2287_v41 = vpop.f32.mrb[42].mxu0  ;;  %v2593_v23 = vpop.permute.xlu1 %2592 }
 0x450   : > { %v2288_v15 = vpop.f32.mrb[43].mxu0 }
 0x451   : > { %v2361_v27 = vpop.f32.mrb[40].mxu1 }
 0x452   : > { %v2368_v57 = vadd.f32 %v2361_v27, %v2290_v29  ;;  %v2363_v19 = vpop.f32.mrb[41].mxu1 }
 0x453   : > { %v2369_v30 = vadd.f32 %v2363_v19, %v2291_v2  ;;  %v2365_v1 = vpop.f32.mrb[42].mxu1 }
 0x454   : > { %v2366_v32 = vpop.f32.mrb[43].mxu1 }
 0x455   : > { %v2424_v45 = vpop.f32.mrb[44].mxu0 }
 0x456   : > { %v2431_v10 = vadd.f32 %v2424_v45, %v2368_v57  ;;  %v2426_v54 = vpop.f32.mrb[45].mxu0 }
 0x457   : > { %v2432_v28 = vadd.f32 %v2426_v54, %v2369_v30  ;;  %v2428_v26 = vpop.f32.mrb[46].mxu0 }
 0x458   : > { %v2429_v17 = vpop.f32.mrb[47].mxu0 }
 0x459   : > { %v2502_v39 = vpop.f32.mrb[44].mxu1 }
 0x45a   : > { %v2509_v13 = vadd.f32 %v2502_v39, %v2431_v10  ;;  %v2504_v37 = vpop.f32.mrb[45].mxu1 }
 0x45b   : > { %v2510_v33 = vadd.f32 %v2504_v37, %v2432_v28  ;;  %v2506_v18 = vpop.f32.mrb[46].mxu1 }
 0x45c   : > { %v2507_v21 = vpop.f32.mrb[47].mxu1  ;;  %v8310_v18 = vld [vmem:[#allocation9_spill] sm:$0xff] }
 0x45d   : > { %v2580_v6 = vpop.f32.mrb[48].mxu0 }
 0x45e   : > { %v2587_v41 = vadd.f32 %v2580_v6, %v2509_v13  ;;  %v2582_v29 = vpop.f32.mrb[49].mxu0  ;;  %v8314_v6 = vld [vmem:[#allocation16_spill] sm:$0xff] }
 0x45f   : > { %v2588_v15 = vadd.f32 %v2582_v29, %v2510_v33  ;;  %v2584_v2 = vpop.f32.mrb[50].mxu0 }
 0x460   : > { %v2595_v27 = vadd.f32 %v2593_v23, %v2587_v41  ;;  %v2585_v19 = vpop.f32.mrb[51].mxu0  ;;  %v8316_v41 = vld [vmem:[#allocation18_spill] sm:$0xff] }
 0x461   : > { %v2596_v1 = vadd.f32 %v2593_v23, %v2588_v15  ;;  %v8318_v15 = vld [vmem:[#allocation11_spill] sm:$0xff] }
 0x462   : > { %v2597_v57 = vpack.c.bf16 %v2595_v27, %v2595_v27 }
 0x463   : > { %v2598_v32 = vpack.c.bf16 %v2596_v1, %v2596_v1  ;;  %v8320_v1 = vld [vmem:[#allocation19_spill] sm:$0xff] }
 0x464   : > { %2601 = vrot.lane.b32.xlu0 %v2597_v57, %s8224_s12 }
 0x465   : > { %2603 = vrot.lane.b32.xlu1 %v2598_v32, %s8224_s12  ;;  %s8278_s12 = smov 80   ;;  %v8322_v32 = vld [vmem:[#allocation12_spill] sm:$0xff] }
 0x4d6   : > { %v2602_v30 = vpop.permute.xlu0 %2601 }
 0x4d7   : > { %v7067_v45 = vsel %vm633_vm1, 0, %v2602_v30  ;;  %v2604_v10 = vpop.permute.xlu1 %2603 }
 0x4d8   : > { %v7070_v54 = vsel %vm633_vm1, %v2602_v30, %v2604_v10  ;;  %3072 = vrot.lane.b32.xlu0 %v7067_v45, %s8220_s17  ;;  %2738 = vrot.lane.b32.xlu1 %v7067_v45, %s8247_s14  ;;  %v2613_v28 = vsel %vm669_vm3, %v7067_v45, 0  ;;  %v2616_v39 = vsel %vm701_vm5, %v7067_v45, 0  ;;  %v7091_v9 = vsel %vm633_vm1, %v2604_v10, 0 }
 0x4d9   : > { %v2614_v26 = vsel %vm670_vm2, %v7070_v54, 0  ;;  %v2688_v17 = vsel %vm2636_vm4, %v2613_v28, 0  ;;  %v2866_v12 = vsel %vm1018_vm7, %v7067_v45, 0  ;;  %vm8263_vm2 = vcmp.ne.s16.totalorder %v6304_v47, 0 }
 0x4da   : > { %5788 = vmatprep.subr.msk.bf16.mxu0 %vm2636_vm4, %v2614_v26  ;;  %v2798_v7 = vsel %vm8263_vm2, %v7067_v45, 0  ;;  %vm8264_vm3 = vcmp.ne.s16.totalorder %v6316_v53, 0  ;;  %vm8265_vm5 = vcmp.ne.s16.totalorder %v6312_v51, 0  ;;  %v3132_v47 = vsel %vm8266_vm8, %v7067_v45, 0  ;;  %v8324_v26 = vld [vmem:[#allocation13_spill] sm:$0xff] }
 0x4db   : > { %2694 = vmatpush1.bf16.msra.mxu0 %v2688_v17  ;;  %v3002_v13 = vsel %vm8264_vm3, %v7067_v45, 0  ;;  %v2934_v37 = vsel %vm8265_vm5, %v7067_v45, 0  ;;  %vm8267_vm7 = vcmp.ne.s16.totalorder %v6324_v59, 0  ;;  %vm8268_vm2 = vcmp.ne.s16.totalorder %v6328_v61, 0  ;;  %v2615_v61 = vld [vmem:[%s8067_s5] sm:$0xf] }
 0x4dc   : > { %2624 = vrot.lane.b32.xlu0 %v2616_v39, %s6026_s26  ;;  %3406 = vrot.lane.b32.xlu1 %v7067_v45, %s8222_s15  ;;  %v3200_v49 = vsel %vm8267_vm7, %v7067_v45, 0  ;;  %v3268_v51 = vsel %vm8268_vm2, %v7067_v45, 0  ;;  %vm8269_vm3 = vcmp.ne.s16.totalorder %v6332_v63, 0  ;;  %vm8271_vm5 = vcmp.ne.s16.totalorder %v6340_v11, 0  ;;  %v8326_v39 = vld [vmem:[#allocation24_spill] sm:$0xff] }
 0x4dd   : > { %v3336_v53 = vsel %vm8269_vm3, %v7067_v45, 0  ;;  %v3534_v56 = vsel %vm8271_vm5, %v7067_v45, 0  ;;  %vm8272_vm8 = vcmp.ne.s16.totalorder %v6336_v5, 0  ;;  %vm2632_vm7 = vcmask 64512  }
 0x4de   : > { %v3466_v59 = vsel %vm8272_vm8, %v7067_v45, 0  ;;  %5789 = vmatmul.mubr.msk.bf16.vlgmr.msra.gmra.mrb[52].mxu0 %vm2632_vm7, %v2615_v61  ;;  %vm8275_vm2 = vcmp.ne.s16.totalorder %v6346_v16, 0  ;;  %vm8276_vm3 = vcmp.ne.s16.totalorder %v6342_v14, 0  ;;  %vm8279_vm5 = vcmp.ne.s16.totalorder %v6298_v4, 0 }
 0x4df   : > { %2855 = vmatprep.mubr.bf16.mxu0 %v8262_v3  ;;  %v3670_v63 = vsel %vm8275_vm2, %v7067_v45, 0  ;;  %v3602_v5 = vsel %vm8276_vm3, %v7067_v45, 0  ;;  %v2618_v11 = vsel %vm8279_vm5, %v7091_v9, 0  ;;  %vm8280_vm8 = vcmp.ne.s16.totalorder %v6416_v34, 0 }
 0x4e0   : > { %2742 = vrot.lane.b32.xlu1 %v7091_v9, %s8247_s14  ;;  %2740 = vrot.lane.b32.xlu0 %v7070_v54, %s8247_s14  ;;  %v2617_v33 = vsel %vm8280_vm8, %v7070_v54, 0  ;;  %vm8282_vm2 = vcmp.ne.s16.totalorder %v6352_v20, 0  ;;  %vm8284_vm3 = vcmp.ne.s16.totalorder %v6302_v8, 0  ;;  %vm8285_vm5 = vcmp.ne.s16.totalorder %v6436_v38, 0 }
 0x4e1   : > { %v3800_v14 = vsel %vm8282_vm2, %v7067_v45, 0  ;;  %v2800_v4 = vsel %vm8284_vm3, %v7091_v9, 0  ;;  %v2799_v16 = vsel %vm8285_vm5, %v7070_v54, 0  ;;  %vm8286_vm8 = vcmp.ne.s16.totalorder %v6461_v43, 0 }
 0x4e2   : > { %v2867_v20 = vsel %vm8286_vm8, %v7070_v54, 0  ;;  %vm8287_vm2 = vcmp.ne.s16.totalorder %v6306_v48, 0  ;;  %vm8288_vm3 = vcmp.ne.s16.totalorder %v6310_v50, 0  ;;  %vm8289_vm5 = vcmp.ne.s16.totalorder %v6476_v46, 0 }
 0x4e3   : > { %v2868_v34 = vsel %vm8287_vm2, %v7091_v9, 0  ;;  %v2936_v8 = vsel %vm8288_vm3, %v7091_v9, 0  ;;  %v2935_v38 = vsel %vm8289_vm5, %v7070_v54, 0  ;;  %vm8290_vm8 = vcmp.ne.s16.totalorder %v6501_v31, 0 }
 0x4e4   : > { %2874 = vrot.lane.b32.xlu1 %v2866_v12, %s6028_s30  ;;  %2806 = vrot.lane.b32.xlu0 %v2798_v7, %s6027_s29  ;;  %v3003_v48 = vsel %vm8290_vm8, %v7070_v54, 0  ;;  %vm8291_vm2 = vcmp.ne.s16.totalorder %v6314_v52, 0  ;;  %vm8292_vm3 = vcmp.ne.s16.totalorder %v6356_v22, 0  ;;  %v3936_v46 = vsel %vm2221_vm15, %v7067_v45, 0 }
 0x4e5   : > { %v3004_v43 = vsel %vm8291_vm2, %v7091_v9, 0  ;;  %v3868_v50 = vsel %vm8292_vm3, %v7067_v45, 0  ;;  %vm8295_vm5 = vcmp.ne.s16.totalorder %v6515_v36, 0  ;;  %vm8296_vm8 = vcmp.ne.s16.totalorder %v6318_v55, 0 }
 0x4e6   : > { %v3133_v52 = vsel %vm8295_vm5, %v7070_v54, 0  ;;  %v3134_v31 = vsel %vm8296_vm8, %v7091_v9, 0  ;;  %vm8297_vm2 = vcmp.ne.s16.totalorder %v6322_v58, 0  ;;  %vm8298_vm15 = vcmp.ne.s16.totalorder %v6539_v42, 0 }
 0x4e7   : > { %v3202_v22 = vsel %vm8297_vm2, %v7091_v9, 0  ;;  %v3201_v24 = vsel %vm8298_vm15, %v7070_v54, 0  ;;  %vm8299_vm3 = vcmp.ne.s16.totalorder %v6554_v25, 0  ;;  %vm8300_vm5 = vcmp.ne.s16.totalorder %v6326_v60, 0 }
 0x4e8   : > { %3010 = vrot.lane.b32.xlu1 %v3002_v13, %s6030_s24  ;;  %2942 = vrot.lane.b32.xlu0 %v2934_v37, %s6029_s23  ;;  %v3269_v55 = vsel %vm8299_vm3, %v7070_v54, 0  ;;  %v3270_v36 = vsel %vm8300_vm5, %v7091_v9, 0  ;;  %vm8301_vm8 = vcmp.ne.s16.totalorder %v6330_v62, 0  ;;  %vm8302_vm2 = vcmp.ne.s16.totalorder %v6578_v35, 0  ;;  %v8308_v35 = vld [vmem:[#allocation15_spill] sm:$0xff]  ;;  %v8328_v37 = vld [vmem:[#allocation25_spill] sm:$0xff] }
 0x4e9   : > { %v3338_v58 = vsel %vm8301_vm8, %v7091_v9, 0  ;;  %v3337_v42 = vsel %vm8302_vm2, %v7070_v54, 0  ;;  %vm8303_vm15 = vcmp.ne.s16.totalorder %v6644_v44, 0  ;;  %vm8306_vm3 = vcmp.ne.s16.totalorder %v6334_v0, 0  ;;  %v8312_v0 = vld [vmem:[#allocation10_spill] sm:$0xff] }
 0x4ea   : > { %v4004_v60 = vsel %vm8303_vm15, %v7067_v45, 0  ;;  %v3468_v62 = vsel %vm8306_vm3, %v7091_v9, 0  ;;  %vm8307_vm5 = vcmp.ne.s16.totalorder %v6592_v40, 0  ;;  %vm8309_vm8 = vcmp.ne.s16.totalorder %v8308_v35, 0 }
 0x4eb   : > { %v3467_v25 = vsel %vm8307_vm5, %v7070_v54, 0  ;;  %v3535_v44 = vsel %vm8309_vm8, %v7070_v54, 0  ;;  %vm8311_vm2 = vcmp.ne.s16.totalorder %v8310_v18, 0  ;;  %vm8313_vm15 = vcmp.ne.s16.totalorder %v8312_v0, 0 }
 0x4ec   : > { %3074 = vrot.lane.b32.xlu1 %v7070_v54, %s8220_s17  ;;  %3076 = vrot.lane.b32.xlu0 %v7091_v9, %s8220_s17  ;;  %s8281_s17 = smov 78   ;;  %v3536_v21 = vsel %vm8311_vm2, %v7091_v9, 0  ;;  %v3604_v40 = vsel %vm8313_vm15, %v7091_v9, 0  ;;  %vm8315_vm3 = vcmp.ne.s16.totalorder %v8314_v6, 0  ;;  %vm8317_vm5 = vcmp.ne.s16.totalorder %v8316_v41, 0 }
 0x4ed   : > { %v3603_v23 = vsel %vm8315_vm3, %v7070_v54, 0  ;;  %v3671_v29 = vsel %vm8317_vm5, %v7070_v54, 0  ;;  %vm8319_vm8 = vcmp.ne.s16.totalorder %v8318_v15, 0  ;;  %vm8321_vm2 = vcmp.ne.s16.totalorder %v8320_v1, 0  ;;  %v5790_v1 = vld [vmem:[%s8067_s5 + $0x8] sm:$0xf] }
 0x4ee   : > { %v3672_v2 = vsel %vm8319_vm8, %v7091_v9, 0  ;;  %v3801_v57 = vsel %vm8321_vm2, %v7070_v54, 0  ;;  %vm8323_vm15 = vcmp.ne.s16.totalorder %v8322_v32, 0  ;;  %vm8325_vm3 = vcmp.ne.s16.totalorder %v8324_v26, 0 }
 0x4ef   : > { %v3802_v30 = vsel %vm8323_vm15, %v7091_v9, 0  ;;  %v3870_v17 = vsel %vm8325_vm3, %v7091_v9, 0  ;;  %vm8327_vm5 = vcmp.ne.s16.totalorder %v8326_v39, 0  ;;  %vm8329_vm8 = vcmp.ne.s16.totalorder %v8328_v37, 0 }
 0x4f0   : > { %3140 = vrot.lane.b32.xlu1 %v3132_v47, %s6031_s22  ;;  %3208 = vrot.lane.b32.xlu0 %v3200_v49, %s6032_s25  ;;  %v3869_v12 = vsel %vm8327_vm5, %v7070_v54, 0  ;;  %v3937_v47 = vsel %vm8329_vm8, %v7070_v54, 0  ;;  %v8330_v49 = vld [vmem:[#allocation14_spill] sm:$0xff] }
 0x4f1   : > { %vm8331_vm2 = vcmp.ne.s16.totalorder %v8330_v49, 0 }
 0x4f4   : > { %3276 = vrot.lane.b32.xlu1 %v3268_v51, %s6017_s18  ;;  %3344 = vrot.lane.b32.xlu0 %v3336_v53, %s8270_s16  ;;  %v3938_v51 = vsel %vm8331_vm2, %v7091_v9, 0  ;;  %vm8349_vm2 = vcmask 1031168  }
 0x4f8   : > { %3410 = vrot.lane.b32.xlu1 %v7091_v9, %s8222_s15  ;;  %3408 = vrot.lane.b32.xlu0 %v7070_v54, %s8222_s15  ;;  %s8277_s15 = smov 79  }
 0x4fc   : > { %3542 = vrot.lane.b32.xlu1 %v3534_v56, %s8273_s21  ;;  %3474 = vrot.lane.b32.xlu0 %v3466_v59, %s8274_s19  ;;  %v8332_v59 = vld [vmem:[#allocation17_spill] sm:$0xff] }
 0x4fd   : > { %vm8333_vm15 = vcmp.ne.s16.totalorder %v8332_v59, 0 }
 0x4fe   : > { %v4006_v61 = vsel %vm8333_vm15, %v7091_v9, 0  ;;  %vm8350_vm15 = vmmov %vm8349_vm2 }
 0x500   : > { %3678 = vrot.lane.b32.xlu1 %v3670_v63, %s8277_s15  ;;  %3610 = vrot.lane.b32.xlu0 %v3602_v5, %s8278_s12  ;;  %v8334_v63 = vld [vmem:[#allocation26_spill] sm:$0xff] }
 0x501   : > { %vm8335_vm3 = vcmp.ne.s16.totalorder %v8334_v63, 0 }
 0x502   : > { %v4005_v5 = vsel %vm8335_vm3, %v7070_v54, 0  ;;  %vm8351_vm3 = vcmask 1022976  }
 0x504   : > { %2628 = vrot.lane.b32.xlu0 %v2618_v11, %s6026_s26  ;;  %2626 = vrot.lane.b32.xlu1 %v2617_v33, %s6026_s26 }
 0x508   : > { %3740 = vrot.lane.b32.xlu0 %v7067_v45, %s8281_s17  ;;  %3742 = vrot.lane.b32.xlu1 %v7070_v54, %s8281_s17 }
 0x50c   : > { %3744 = vrot.lane.b32.xlu0 %v7091_v9, %s8281_s17  ;;  %3808 = vrot.lane.b32.xlu1 %v3800_v14, %s8283_s20  ;;  %v8336_v14 = vld [vmem:[#allocation20_spill] sm:$0xff]  ;;  %s6044_s17 = smov 18  }
 0x50d   : > { %vm8337_vm5 = vcmp.ne.s16.totalorder %v8336_v14, 0 }
 0x510   : > { %2810 = vrot.lane.b32.xlu0 %v2800_v4, %s6027_s29  ;;  %2808 = vrot.lane.b32.xlu1 %v2799_v16, %s6027_s29  ;;  %s8293_s29 = smov 76   ;;  %v4134_v4 = vsel %vm8337_vm5, %v7067_v45, 0  ;;  %vm8352_vm5 = vmmov %vm8351_vm3 }
 0x514   : > { %2876 = vrot.lane.b32.xlu0 %v2867_v20, %s6028_s30  ;;  %2878 = vrot.lane.b32.xlu1 %v2868_v34, %s6028_s30  ;;  %s8294_s30 = smov 64   ;;  %v4202_v20 = vsel %vm2517_vm11, %v7067_v45, 0 }
 0x518   : > { %2946 = vrot.lane.b32.xlu0 %v2936_v8, %s6029_s23  ;;  %2944 = vrot.lane.b32.xlu1 %v2935_v38, %s6029_s23 }
 0x51c   : > { %3012 = vrot.lane.b32.xlu0 %v3003_v48, %s6030_s24  ;;  %3014 = vrot.lane.b32.xlu1 %v3004_v43, %s6030_s24  ;;  %v4136_v48 = vsel %vm2441_vm9, %v7091_v9, 0  ;;  %v8342_v43 = vld [vmem:[#allocation27_spill] sm:$0xff]  ;;  %vm8347_vm9 = vcmask 1039360  }
 0x51d   : > { %vm8343_vm8 = vcmp.ne.s16.totalorder %v8342_v43, 0 }
 0x520   : > { %3876 = vrot.lane.b32.xlu0 %v3868_v50, %s8293_s29  ;;  %3944 = vrot.lane.b32.xlu1 %v3936_v46, %s8294_s30  ;;  %v4135_v50 = vsel %vm8343_vm8, %v7070_v54, 0  ;;  %vm8353_vm8 = vcmask 1014784  }
 0x524   : > { %3142 = vrot.lane.b32.xlu0 %v3133_v52, %s6031_s22  ;;  %3144 = vrot.lane.b32.xlu1 %v3134_v31, %s6031_s22  ;;  %s8304_s22 = smov 63   ;;  %v4203_v31 = vsel %vm2518_vm12, %v7070_v54, 0  ;;  %vm8348_vm12 = vmmov %vm8347_vm9 }
 0x528   : > { %3212 = vrot.lane.b32.xlu0 %v3202_v22, %s6032_s25  ;;  %3210 = vrot.lane.b32.xlu1 %v3201_v24, %s6032_s25  ;;  %s8305_s25 = smov 62   ;;  %v8345_v22 = vld [vmem:[#allocation23_spill] sm:$0xff] }
 0x529   : > { %vm8346_vm11 = vcmp.ne.s16.totalorder %v8345_v22, 0  ;;  %v5808_v22 = vld [vmem:[%s8067_s5 + $0x20] sm:$0xf] }
 0x52a   : > { %v4204_v24 = vsel %vm8346_vm11, %v7091_v9, 0  ;;  %vm8354_vm11 = vmmov %vm8353_vm8 }
 0x52c   : > { %3278 = vrot.lane.b32.xlu0 %v3269_v55, %s6017_s18  ;;  %3280 = vrot.lane.b32.xlu1 %v3270_v36, %s6017_s18  ;;  %v4270_v55 = vld [vmem:[%s8068_s6] sm:$0xff] }
 0x530   : > { %3348 = vrot.lane.b32.xlu0 %v3338_v58, %s8270_s16  ;;  %3346 = vrot.lane.b32.xlu1 %v3337_v42, %s8270_s16 }
 0x534   : > { %4012 = vrot.lane.b32.xlu0 %v4004_v60, %s8304_s22  ;;  %4074 = vrot.lane.b32.xlu1 %v7067_v45, %s8305_s25 }
 0x538   : > { %3478 = vrot.lane.b32.xlu0 %v3468_v62, %s8274_s19  ;;  %3476 = vrot.lane.b32.xlu1 %v3467_v25, %s8274_s19  ;;  %s8386_s19 = smov 16  }
 0x53c   : > { %3544 = vrot.lane.b32.xlu0 %v3535_v44, %s8273_s21  ;;  %3546 = vrot.lane.b32.xlu1 %v3536_v21, %s8273_s21  ;;  %s6043_s21 = smov 2  }
 0x540   : > { %3614 = vrot.lane.b32.xlu0 %v3604_v40, %s8278_s12  ;;  %3612 = vrot.lane.b32.xlu1 %v3603_v23, %s8278_s12  ;;  %s8339_s12 = smov 61   ;;  %v5785_v23 = vld [vmem:[%s8067_s5 + $0x4] sm:$0xf] }
 0x544   : > { %3680 = vrot.lane.b32.xlu0 %v3671_v29, %s8277_s15  ;;  %3682 = vrot.lane.b32.xlu1 %v3672_v2, %s8277_s15  ;;  %s8340_s15 = smov 60  }
 0x548   : > { %4076 = vrot.lane.b32.xlu0 %v7070_v54, %s8305_s25  ;;  %4078 = vrot.lane.b32.xlu1 %v7091_v9, %s8305_s25 }
 0x54a   : > { %v7290_v27 = vpop.permute.xlu0 %3072  ;;  %v2739_v19 = vpop.permute.xlu1 %2738 }
 0x54c   : > { %3810 = vrot.lane.b32.xlu0 %v3801_v57, %s8283_s20  ;;  %3812 = vrot.lane.b32.xlu1 %v3802_v30, %s8283_s20  ;;  %s8388_s20 = smov 32  }
 0x54e   : > { %v2625_v10 = vpop.permute.xlu0 %2624  ;;  %v7300_v28 = vpop.permute.xlu1 %3406 }
 0x550   : > { %3880 = vrot.lane.b32.xlu0 %v3870_v17, %s8293_s29  ;;  %3878 = vrot.lane.b32.xlu1 %v3869_v12, %s8293_s29  ;;  %v5793_v17 = vld [vmem:[%s8067_s5 + $0xc] sm:$0xf]  ;;  %s8389_s29 = smov 34  }
 0x552   : > { %v2741_v7 = vpop.permute.xlu0 %2740  ;;  %v2743_v13 = vpop.permute.xlu1 %2742 }
 0x553   : > { %v2744_v40 = vsel %vm8349_vm2, %v2739_v19, %v2741_v7  ;;  %v2745_v6 = vsel %vm8350_vm15, %v2741_v7, %v2743_v13  ;;  %vm8357_vm2 = vcmask 908288  }
 0x554   : > { %3946 = vrot.lane.b32.xlu0 %v3937_v47, %s8294_s30  ;;  %3948 = vrot.lane.b32.xlu1 %v3938_v51, %s8294_s30  ;;  %v2750_v15 = vsel %vm2636_vm4, %v2744_v40, 0  ;;  %v5796_v47 = vld [vmem:[%s8067_s5 + $0x10] sm:$0xf]  ;;  %vm8358_vm15 = vmmov %vm8357_vm2  ;;  %s8390_s30 = smov 17  }
 0x556   : > { %v2807_v53 = vpop.permute.xlu0 %2806  ;;  %v7318_v56 = vpop.permute.xlu1 %2874 }
 0x558   : > { %4016 = vrot.lane.b32.xlu0 %v4006_v61, %s8304_s22  ;;  %4014 = vrot.lane.b32.xlu1 %v4005_v5, %s8304_s22  ;;  %v5799_v5 = vld [vmem:[%s8067_s5 + $0x14] sm:$0xf] }
 0x55a   : > { %v7328_v11 = vpop.permute.xlu0 %2942  ;;  %v7330_v33 = vpop.permute.xlu1 %3010 }
 0x55c   : > { %4142 = vrot.lane.b32.xlu0 %v4134_v4, %s8339_s12  ;;  %4210 = vrot.lane.b32.xlu1 %v4202_v20, %s8340_s15 }
 0x55e   : > { %v7340_v34 = vpop.permute.xlu0 %3076  ;;  %v7342_v8 = vpop.permute.xlu1 %3074 }
 0x560   : > { %4146 = vrot.lane.b32.xlu0 %v4136_v48, %s8339_s12  ;;  %4144 = vrot.lane.b32.xlu1 %v4135_v50, %s8339_s12  ;;  %s8396_s12 = smov 110  }
 0x562   : > { %v7352_v45 = vpop.permute.xlu0 %3208  ;;  %v7354_v46 = vpop.permute.xlu1 %3140 }
 0x564   : > { %4212 = vrot.lane.b32.xlu0 %v4203_v31, %s8340_s15  ;;  %4214 = vrot.lane.b32.xlu1 %v4204_v24, %s8340_s15  ;;  %s8399_s15 = smov 94  }
 0x566   : > { %v7367_v36 = vpop.permute.xlu0 %3344  ;;  %v7369_v58 = vpop.permute.xlu1 %3276 }
 0x568   : > { %4273 = vperm.xlu0 %5979, %v4270_v55  }
 0x56a   : > { %v7371_v42 = vpop.permute.xlu0 %3408  ;;  %v7373_v54 = vpop.permute.xlu1 %3410 }
 0x56e   : > { %v7375_v60 = vpop.permute.xlu0 %3474  ;;  %v7377_v9 = vpop.permute.xlu1 %3542 }
 0x572   : > { %v7379_v62 = vpop.permute.xlu0 %3610  ;;  %v7381_v25 = vpop.permute.xlu1 %3678 }
 0x576   : > { %v2629_v35 = vpop.permute.xlu0 %2628  ;;  %v2627_v44 = vpop.permute.xlu1 %2626 }
 0x577   : > { %v2630_v18 = vsel %vm8347_vm9, %v2625_v10, %v2627_v44  ;;  %v2631_v21 = vsel %vm8348_vm12, %v2627_v44, %v2629_v35  ;;  %vm8355_vm9 = vcmask 900096  }
 0x578   : > { %5786 = vmatprep.subr.msk.bf16.mxu1 %vm2636_vm4, %v2631_v21  ;;  %v2638_v0 = vsel %vm2636_vm4, %v2630_v18, 0  ;;  %v3078_v61 = vsel %vm8355_vm9, %v7290_v27, %v7342_v8  ;;  %vm8356_vm12 = vmmov %vm8355_vm9  ;;  %v5811_v18 = vld [vmem:[%s8067_s5 + $0x24] sm:$0xf]  ;;  %vm8363_vm9 = vcmask 785408  }
 0x579   : > { %2644 = vmatpush1.bf16.msra.mxu1 %v2638_v0  ;;  %v3079_v63 = vsel %vm8356_vm12, %v7342_v8, %v7340_v34  ;;  %v3084_v20 = vsel %vm2636_vm4, %v3078_v61, 0  ;;  %v5802_v34 = vld [vmem:[%s8067_s5 + $0x18] sm:$0xf]  ;;  %vm8364_vm12 = vmmov %vm8363_vm9 }
 0x57a   : > { %v7392_v41 = vpop.permute.xlu0 %3740  ;;  %5791 = vmatprep.subr.msk.bf16.mxu1 %vm2636_vm4, %v2745_v6  ;;  %v7395_v29 = vpop.permute.xlu1 %3742 }
 0x57c   : > { %5787 = vmatmul.mubr.msk.bf16.vlgmr.msra.gmra.mrb[48].mxu1 %vm2632_vm7, %v5785_v23 }
 0x57d   : > { %2756 = vmatpush1.bf16.msra.mxu1 %v2750_v15  ;;  %2787 = vmatprep.mubr.bf16.mxu1 %v8262_v3 }
 0x57e   : > { %v7400_v2 = vpop.permute.xlu0 %3744  ;;  %v7402_v19 = vpop.permute.xlu1 %3808 }
 0x582   : > { %v2811_v57 = vpop.permute.xlu0 %2810  ;;  %v2809_v32 = vpop.permute.xlu1 %2808 }
 0x583   : > { %v2812_v30 = vsel %vm8351_vm3, %v2807_v53, %v2809_v32  ;;  %v2813_v10 = vsel %vm8352_vm5, %v2809_v32, %v2811_v57  ;;  %vm8359_vm3 = vcmask 891904  }
 0x584   : > { %5792 = vmatmul.mubr.msk.bf16.vlgmr.msra.gmra.mrb[52].mxu1 %vm2632_vm7, %v5790_v1  ;;  %5794 = vmatprep.subr.msk.bf16.mxu0 %vm2636_vm4, %v2813_v10  ;;  %v2818_v26 = vsel %vm2636_vm4, %v2812_v30, 0  ;;  %vm8360_vm5 = vmmov %vm8359_vm3 }
 0x585   : > { %2824 = vmatpush1.bf16.msra.mxu0 %v2818_v26  ;;  %2923 = vmatprep.mubr.bf16.mxu1 %v8262_v3 }
 0x586   : > { %v2877_v39 = vpop.permute.xlu0 %2876  ;;  %v2879_v12 = vpop.permute.xlu1 %2878 }
 0x587   : > { %v2880_v7 = vsel %vm8353_vm8, %v7318_v56, %v2877_v39  ;;  %v2881_v13 = vsel %vm8354_vm11, %v2877_v39, %v2879_v12  ;;  %vm8361_vm8 = vcmask 883712  }
 0x588   : > { %5795 = vmatmul.mubr.msk.bf16.vlgmr.msra.gmra.mrb[56].mxu0 %vm2632_vm7, %v5793_v17  ;;  %5797 = vmatprep.subr.msk.bf16.mxu1 %vm2636_vm4, %v2881_v13  ;;  %v2886_v37 = vsel %vm2636_vm4, %v2880_v7, 0  ;;  %vm8362_vm11 = vmmov %vm8361_vm8 }
 0x589   : > { %2892 = vmatpush1.bf16.msra.mxu1 %v2886_v37  ;;  %2991 = vmatprep.mubr.bf16.mxu0 %v8262_v3  ;;  %v5823_v37 = vld [vmem:[%s8067_s5 + $0x34] sm:$0xf] }
 0x58a   : > { %v2947_v49 = vpop.permute.xlu0 %2946  ;;  %v2945_v51 = vpop.permute.xlu1 %2944 }
 0x58b   : > { %v2948_v53 = vsel %vm1113_vm0, %v7328_v11, %v2945_v51  ;;  %v2949_v56 = vsel %vm1113_vm0, %v2945_v51, %v2947_v49 }
 0x58c   : > { %5798 = vmatmul.mubr.msk.bf16.vlgmr.msra.gmra.mrb[56].mxu1 %vm2632_vm7, %v5796_v47  ;;  %5800 = vmatprep.subr.msk.bf16.mxu0 %vm2636_vm4, %v2949_v56  ;;  %v2954_v59 = vsel %vm2636_vm4, %v2948_v53, 0  ;;  %v5826_v56 = vld [vmem:[%s8067_s5 + $0x38] sm:$0xf] }
 0x58d   : > { %2960 = vmatpush1.bf16.msra.mxu0 %v2954_v59  ;;  %3059 = vmatprep.mubr.bf16.mxu1 %v8262_v3 }
 0x58e   : > { %v3013_v11 = vpop.permute.xlu0 %3012  ;;  %5806 = vmatprep.subr.msk.bf16.mxu0 %vm2636_vm4, %v3079_v63  ;;  %v3015_v14 = vpop.permute.xlu1 %3014 }
 0x58f   : > { %v3016_v4 = vsel %vm8357_vm2, %v7330_v33, %v3013_v11  ;;  %v3017_v27 = vsel %vm8358_vm15, %v3013_v11, %v3015_v14  ;;  %v5805_v33 = vld [vmem:[%s8067_s5 + $0x1c] sm:$0xf]  ;;  %vm8365_vm2 = vcmask 769024  }
 0x590   : > { %5801 = vmatmul.mubr.msk.bf16.vlgmr.msra.gmra.mrb[60].mxu0 %vm2632_vm7, %v5799_v5  ;;  %5803 = vmatprep.subr.msk.bf16.mxu1 %vm2636_vm4, %v3017_v27  ;;  %v3022_v16 = vsel %vm2636_vm4, %v3016_v4, 0  ;;  %v3412_v23 = vsel %vm8365_vm2, %v7300_v28, %v7371_v42  ;;  %vm8366_vm15 = vmmov %vm8365_vm2  ;;  %vm8373_vm2 = vcmask 637952  }
 0x591   : > { %3028 = vmatpush1.bf16.msra.mxu1 %v3022_v16  ;;  %3090 = vmatpush1.bf16.msra.mxu0 %v3084_v20  ;;  %v3413_v15 = vsel %vm8366_vm15, %v7371_v42, %v7373_v54  ;;  %v3418_v42 = vsel %vm2636_vm4, %v3412_v23, 0  ;;  %v5817_v54 = vld [vmem:[%s8067_s5 + $0x2c] sm:$0xf]  ;;  %v3746_v11 = vsel %vm8373_vm2, %v7392_v41, %v7395_v29  ;;  %vm8374_vm15 = vmmov %vm8373_vm2  ;;  %v5844_v23 = vld [vmem:[%s8067_s5 + $0x50] sm:$0xf] }
 0x592   : > { %v7453_v8 = vpop.permute.xlu0 %3876  ;;  %v7455_v38 = vpop.permute.xlu1 %3944  ;;  %3121 = vmatprep.mubr.bf16.mxu0 %v8262_v3  ;;  %v3747_v14 = vsel %vm8374_vm15, %v7395_v29, %v7400_v2  ;;  %v3752_v29 = vsel %vm2636_vm4, %v3746_v11, 0  ;;  %v5832_v2 = vld [vmem:[%s8067_s5 + $0x40] sm:$0xf] }
 0x594   : > { %5804 = vmatmul.mubr.msk.bf16.vlgmr.msra.gmra.mrb[60].mxu1 %vm2632_vm7, %v5802_v34 }
 0x595   : > { %3189 = vmatprep.mubr.bf16.mxu1 %v8262_v3 }
 0x596   : > { %v3143_v48 = vpop.permute.xlu0 %3142  ;;  %v3145_v43 = vpop.permute.xlu1 %3144 }
 0x597   : > { %v3146_v50 = vsel %vm8359_vm3, %v7354_v46, %v3143_v48  ;;  %v3147_v52 = vsel %vm8360_vm5, %v3143_v48, %v3145_v43  ;;  %vm8367_vm3 = vcmask 777216  }
 0x598   : > { %5807 = vmatmul.mubr.msk.bf16.vlgmr.msra.gmra.mrb[64].mxu0 %vm2632_vm7, %v5805_v33  ;;  %5809 = vmatprep.subr.msk.bf16.mxu1 %vm2636_vm4, %v3147_v52  ;;  %v3152_v31 = vsel %vm2636_vm4, %v3146_v50, 0  ;;  %vm8368_vm5 = vmmov %vm8367_vm3 }
 0x599   : > { %3158 = vmatpush1.bf16.msra.mxu1 %v3152_v31  ;;  %3257 = vmatprep.mubr.bf16.mxu0 %v8262_v3 }
 0x59a   : > { %v3213_v24 = vpop.permute.xlu0 %3212  ;;  %v3211_v55 = vpop.permute.xlu1 %3210 }
 0x59b   : > { %v3214_v46 = vsel %vm8361_vm8, %v7352_v45, %v3211_v55  ;;  %v3215_v35 = vsel %vm8362_vm11, %v3211_v55, %v3213_v24  ;;  %vm8369_vm8 = vcmask 760832  }
 0x59c   : > { %v3220_v44 = vsel %vm2636_vm4, %v3214_v46, 0  ;;  %5810 = vmatmul.mubr.msk.bf16.vlgmr.msra.gmra.mrb[64].mxu1 %vm2632_vm7, %v5808_v22  ;;  %5812 = vmatprep.subr.msk.bf16.mxu0 %vm2636_vm4, %v3215_v35  ;;  %vm8370_vm11 = vmmov %vm8369_vm8  ;;  %v5838_v22 = vld [vmem:[%s8067_s5 + $0x48] sm:$0xf] }
 0x59d   : > { %3226 = vmatpush1.bf16.msra.mxu0 %v3220_v44  ;;  %3325 = vmatprep.mubr.bf16.mxu1 %v8262_v3  ;;  %v5841_v44 = vld [vmem:[%s8067_s5 + $0x4c] sm:$0xf] }
 0x59e   : > { %v3279_v21 = vpop.permute.xlu0 %3278  ;;  %v3281_v0 = vpop.permute.xlu1 %3280 }
 0x59f   : > { %v3282_v45 = vsel %vm8363_vm9, %v7369_v58, %v3279_v21  ;;  %v3283_v40 = vsel %vm8364_vm12, %v3279_v21, %v3281_v0  ;;  %v5814_v58 = vld [vmem:[%s8067_s5 + $0x28] sm:$0xf]  ;;  %vm8371_vm9 = vcmask 752640  }
 0x5a0   : > { %v3288_v6 = vsel %vm2636_vm4, %v3282_v45, 0  ;;  %5813 = vmatmul.mubr.msk.bf16.vlgmr.msra.gmra.mrb[68].mxu0 %vm2632_vm7, %v5811_v18  ;;  %5815 = vmatprep.subr.msk.bf16.mxu1 %vm2636_vm4, %v3283_v40  ;;  %vm8372_vm12 = vmmov %vm8371_vm9 }
 0x5a1   : > { %3294 = vmatpush1.bf16.msra.mxu1 %v3288_v6  ;;  %3393 = vmatprep.mubr.bf16.mxu0 %v8262_v3 }
 0x5a2   : > { %v3349_v1 = vpop.permute.xlu0 %3348  ;;  %5821 = vmatprep.subr.msk.bf16.mxu1 %vm2636_vm4, %v3413_v15  ;;  %v3347_v57 = vpop.permute.xlu1 %3346 }
 0x5a3   : > { %v3350_v32 = vsel %vm8367_vm3, %v7367_v36, %v3347_v57  ;;  %v3351_v28 = vsel %vm8368_vm5, %v3347_v57, %v3349_v1  ;;  %v5820_v36 = vld [vmem:[%s8067_s5 + $0x30] sm:$0xf]  ;;  %vm8377_vm5 = vcmask 629760  }
 0x5a4   : > { %v3356_v30 = vsel %vm2636_vm4, %v3350_v32, 0  ;;  %5816 = vmatmul.mubr.msk.bf16.vlgmr.msra.gmra.mrb[68].mxu1 %vm2632_vm7, %v5814_v58  ;;  %5818 = vmatprep.subr.msk.bf16.mxu0 %vm2636_vm4, %v3351_v28  ;;  %v5847_v28 = vld [vmem:[%s8067_s5 + $0x54] sm:$0xf] }
 0x5a5   : > { %3362 = vmatpush1.bf16.msra.mxu0 %v3356_v30  ;;  %3424 = vmatpush1.bf16.msra.mxu1 %v3418_v42 }
 0x5a6   : > { %v7510_v10 = vpop.permute.xlu0 %4012  ;;  %v7512_v26 = vpop.permute.xlu1 %4074  ;;  %3455 = vmatprep.mubr.bf16.mxu1 %v8262_v3 }
 0x5a8   : > { %5819 = vmatmul.mubr.msk.bf16.vlgmr.msra.gmra.mrb[72].mxu0 %vm2632_vm7, %v5817_v54 }
 0x5a9   : > { %3523 = vmatprep.mubr.bf16.mxu0 %v8262_v3 }
 0x5aa   : > { %v3479_v17 = vpop.permute.xlu0 %3478  ;;  %v3477_v39 = vpop.permute.xlu1 %3476 }
 0x5ab   : > { %v3480_v12 = vsel %vm8369_vm8, %v7375_v60, %v3477_v39  ;;  %v3481_v7 = vsel %vm8370_vm11, %v3477_v39, %v3479_v17  ;;  %vm8378_vm8 = vmmov %vm8377_vm5  ;;  %vm8379_vm11 = vcmask 621568  }
 0x5ac   : > { %v3486_v13 = vsel %vm2636_vm4, %v3480_v12, 0  ;;  %5822 = vmatmul.mubr.msk.bf16.vlgmr.msra.gmra.mrb[72].mxu1 %vm2632_vm7, %v5820_v36  ;;  %5824 = vmatprep.subr.msk.bf16.mxu0 %vm2636_vm4, %v3481_v7 }
 0x5ad   : > { %3492 = vmatpush1.bf16.msra.mxu0 %v3486_v13  ;;  %3591 = vmatprep.mubr.bf16.mxu1 %v8262_v3 }
 0x5ae   : > { %v3545_v47 = vpop.permute.xlu0 %3544  ;;  %v3547_v49 = vpop.permute.xlu1 %3546 }
 0x5af   : > { %v3548_v60 = vsel %vm8371_vm9, %v7377_v9, %v3545_v47  ;;  %v3549_v51 = vsel %vm8372_vm12, %v3545_v47, %v3547_v49  ;;  %vm8380_vm9 = vmmov %vm8379_vm11  ;;  %vm8381_vm12 = vcmask 506880   ;;  %v5853_v47 = vld [vmem:[%s8067_s5 + $0x5c] sm:$0xf] }
 0x5b0   : > { %v3554_v53 = vsel %vm2636_vm4, %v3548_v60, 0  ;;  %5825 = vmatmul.mubr.msk.bf16.vlgmr.msra.gmra.mrb[76].mxu0 %vm2632_vm7, %v5823_v37  ;;  %5827 = vmatprep.subr.msk.bf16.mxu1 %vm2636_vm4, %v3549_v51  ;;  %vm8382_vm2 = vmmov %vm8381_vm12 }
 0x5b1   : > { %3560 = vmatpush1.bf16.msra.mxu1 %v3554_v53  ;;  %3659 = vmatprep.mubr.bf16.mxu0 %v8262_v3  ;;  %v2727_v54 = vpop.f32.mrb[52].mxu0 }
 0x5b2   : > { %v3615_v59 = vpop.permute.xlu0 %3614  ;;  %v3613_v61 = vpop.permute.xlu1 %3612 }
 0x5b3   : > { %v3616_v9 = vsel %vm1863_vm10, %v7379_v62, %v3613_v61  ;;  %v3617_v63 = vsel %vm1863_vm10, %v3613_v61, %v3615_v59  ;;  %v5829_v62 = vld [vmem:[%s8067_s5 + $0x3c] sm:$0xf]  ;;  %vm8375_vm10 = vcmask 646144   ;;  %v5856_v59 = vld [vmem:[%s8067_s5 + $0x60] sm:$0xf] }
 0x5b4   : > { %v3622_v5 = vsel %vm2636_vm4, %v3616_v9, 0  ;;  %5828 = vmatmul.mubr.msk.bf16.vlgmr.msra.gmra.mrb[76].mxu1 %vm2632_vm7, %v5826_v56  ;;  %5830 = vmatprep.subr.msk.bf16.mxu0 %vm2636_vm4, %v3617_v63  ;;  %vm8376_vm3 = vmmov %vm8375_vm10  ;;  %v8385_v61 = vld [vmem:[#allocation6_spill] sm:$0xff]  ;;  %v8387_v9 = vld [vmem:[#allocation5_spill] sm:$0xff] }
 0x5b5   : > { %3628 = vmatpush1.bf16.msra.mxu0 %v3622_v5  ;;  %3727 = vmatprep.mubr.bf16.mxu1 %v8262_v3 }
 0x5b6   : > { %v3681_v4 = vpop.permute.xlu0 %3680  ;;  %5836 = vmatprep.subr.msk.bf16.mxu0 %vm2636_vm4, %v3747_v14  ;;  %v3683_v27 = vpop.permute.xlu1 %3682  ;;  %4412 = vrot.lane.b32.xlu0 %v8385_v61, %s6043_s21 }
 0x5b7   : > { %v3684_v16 = vsel %vm8375_vm10, %v7381_v25, %v3681_v4  ;;  %v3685_v41 = vsel %vm8376_vm3, %v3681_v4, %v3683_v27  ;;  %v5835_v25 = vld [vmem:[%s8067_s5 + $0x44] sm:$0xf] }
 0x5b8   : > { %v3690_v20 = vsel %vm2636_vm4, %v3684_v16, 0  ;;  %5831 = vmatmul.mubr.msk.bf16.vlgmr.msra.gmra.mrb[80].mxu0 %vm2632_vm7, %v5829_v62  ;;  %5833 = vmatprep.subr.msk.bf16.mxu1 %vm2636_vm4, %v3685_v41 }
 0x5b9   : > { %3696 = vmatpush1.bf16.msra.mxu1 %v3690_v20  ;;  %3758 = vmatpush1.bf16.msra.mxu0 %v3752_v29 }
 0x5ba   : > { %v4077_v34 = vpop.permute.xlu0 %4076  ;;  %v4079_v33 = vpop.permute.xlu1 %4078  ;;  %3789 = vmatprep.mubr.bf16.mxu0 %v8262_v3  ;;  %4489 = vrot.lane.b32.xlu0 %v8387_v9, %s8386_s19 }
 0x5bb   : > { %v4080_v40 = vsel %vm8381_vm12, %v7512_v26, %v4077_v34  ;;  %v4081_v6 = vsel %vm8382_vm2, %v4077_v34, %v4079_v33  ;;  %v2729_v26 = vpop.f32.mrb[53].mxu0 }
 0x5bc   : > { %5834 = vmatmul.mubr.msk.bf16.vlgmr.msra.gmra.mrb[80].mxu1 %vm2632_vm7, %v5832_v2  ;;  %v4086_v57 = vsel %vm2636_vm4, %v4080_v40, 0  ;;  %v2731_v7 = vpop.f32.mrb[54].mxu0 }
 0x5bd   : > { %3857 = vmatprep.mubr.bf16.mxu1 %v8262_v3  ;;  %v2732_v37 = vpop.f32.mrb[55].mxu0 }
 0x5be   : > { %v3811_v48 = vpop.permute.xlu0 %3810  ;;  %v3813_v43 = vpop.permute.xlu1 %3812  ;;  %4627 = vrot.lane.b32.xlu0 %v8385_v61, %s6044_s17 }
 0x5bf   : > { %v3814_v50 = vsel %vm8377_vm5, %v7402_v19, %v3811_v48  ;;  %v3815_v52 = vsel %vm8378_vm8, %v3811_v48, %v3813_v43 }
 0x5c0   : > { %v3820_v31 = vsel %vm2636_vm4, %v3814_v50, 0  ;;  %5837 = vmatmul.mubr.msk.bf16.vlgmr.msra.gmra.mrb[84].mxu0 %vm2632_vm7, %v5835_v25  ;;  %5839 = vmatprep.subr.msk.bf16.mxu1 %vm2636_vm4, %v3815_v52 }
 0x5c1   : > { %3826 = vmatpush1.bf16.msra.mxu1 %v3820_v31  ;;  %3925 = vmatprep.mubr.bf16.mxu0 %v8262_v3 }
 0x5c2   : > { %v3881_v24 = vpop.permute.xlu0 %3880  ;;  %v3879_v55 = vpop.permute.xlu1 %3878  ;;  %4704 = vrot.lane.b32.xlu0 %v8387_v9, %s8388_s20 }
 0x5c3   : > { %v3882_v19 = vsel %vm8379_vm11, %v7453_v8, %v3879_v55  ;;  %v3883_v46 = vsel %vm8380_vm9, %v3879_v55, %v3881_v24  ;;  %vm4416_vm9 = vcmask 15360  }
 0x5c4   : > { %v3888_v35 = vsel %vm2636_vm4, %v3882_v19, 0  ;;  %5840 = vmatmul.mubr.msk.bf16.vlgmr.msra.gmra.mrb[84].mxu1 %vm2632_vm7, %v5838_v22  ;;  %5842 = vmatprep.subr.msk.bf16.mxu0 %vm2636_vm4, %v3883_v46 }
 0x5c5   : > { %3894 = vmatpush1.bf16.msra.mxu0 %v3888_v35  ;;  %3993 = vmatprep.mubr.bf16.mxu1 %v8262_v3 }
 0x5c6   : > { %v3947_v18 = vpop.permute.xlu0 %3946  ;;  %v3949_v21 = vpop.permute.xlu1 %3948  ;;  %4842 = vrot.lane.b32.xlu0 %v8385_v61, %s8389_s29 }
 0x5c7   : > { %v3950_v8 = vsel %vm2219_vm14, %v7455_v38, %v3947_v18  ;;  %v3951_v0 = vsel %vm2219_vm14, %v3947_v18, %v3949_v21  ;;  %vm8383_vm14 = vcmask 515072  }
 0x5c8   : > { %v3956_v45 = vsel %vm2636_vm4, %v3950_v8, 0  ;;  %5843 = vmatmul.mubr.msk.bf16.vlgmr.msra.gmra.mrb[88].mxu0 %vm2632_vm7, %v5841_v44  ;;  %5845 = vmatprep.subr.msk.bf16.mxu1 %vm2636_vm4, %v3951_v0  ;;  %vm8384_vm15 = vmmov %vm8383_vm14 }
 0x5c9   : > { %3962 = vmatpush1.bf16.msra.mxu1 %v3956_v45  ;;  %4061 = vmatprep.mubr.bf16.mxu0 %v8262_v3 }
 0x5ca   : > { %v4017_v38 = vpop.permute.xlu0 %4016  ;;  %5851 = vmatprep.subr.msk.bf16.mxu1 %vm2636_vm4, %v4081_v6  ;;  %v4015_v15 = vpop.permute.xlu1 %4014 }
 0x5cb   : > { %v4018_v58 = vsel %vm8383_vm14, %v7510_v10, %v4015_v15  ;;  %v4019_v1 = vsel %vm8384_vm15, %v4015_v15, %v4017_v38  ;;  %v5850_v10 = vld [vmem:[%s8067_s5 + $0x58] sm:$0xf] }
 0x5cc   : > { %v4024_v32 = vsel %vm2636_vm4, %v4018_v58, 0  ;;  %5846 = vmatmul.mubr.msk.bf16.vlgmr.msra.gmra.mrb[88].mxu1 %vm2632_vm7, %v5844_v23  ;;  %5848 = vmatprep.subr.msk.bf16.mxu0 %vm2636_vm4, %v4019_v1 }
 0x5cd   : > { %4030 = vmatpush1.bf16.msra.mxu0 %v4024_v32  ;;  %4092 = vmatpush1.bf16.msra.mxu1 %v4086_v57 }
 0x5ce   : > { %v4143_v30 = vpop.permute.xlu0 %4142  ;;  %v4211_v42 = vpop.permute.xlu1 %4210  ;;  %4123 = vmatprep.mubr.bf16.mxu1 %v8262_v3 }
 0x5d0   : > { %5849 = vmatmul.mubr.msk.bf16.vlgmr.msra.gmra.mrb[92].mxu0 %vm2632_vm7, %v5847_v28 }
 0x5d1   : > { %4191 = vmatprep.mubr.bf16.mxu0 %v8262_v3 }
 0x5d2   : > { %v4147_v36 = vpop.permute.xlu0 %4146  ;;  %v4145_v17 = vpop.permute.xlu1 %4144 }
 0x5d3   : > { %v4148_v39 = vsel %vm2456_vm13, %v4143_v30, %v4145_v17  ;;  %v4149_v12 = vsel %vm2456_vm13, %v4145_v17, %v4147_v36  ;;  %vm4295_vm13 = vcmp.ne.s16.totalorder %v8387_v9, 0 }
 0x5d4   : > { %v4154_v13 = vsel %vm2636_vm4, %v4148_v39, 0  ;;  %5852 = vmatmul.mubr.msk.bf16.vlgmr.msra.gmra.mrb[92].mxu1 %vm2632_vm7, %v5850_v10  ;;  %5854 = vmatprep.subr.msk.bf16.mxu0 %vm2636_vm4, %v4149_v12 }
 0x5d5   : > { %4160 = vmatpush1.bf16.msra.mxu0 %v4154_v13  ;;  %4259 = vmatprep.mubr.bf16.mxu1 %v8262_v3 }
 0x5d6   : > { %v4213_v49 = vpop.permute.xlu0 %4212  ;;  %v4215_v60 = vpop.permute.xlu1 %4214 }
 0x5d7   : > { %v4216_v51 = vsel %vm2534_vm6, %v4211_v42, %v4213_v49  ;;  %v4217_v53 = vsel %vm2534_vm6, %v4213_v49, %v4215_v60  ;;  %vm8393_vm6 = vcmask 138240  }
 0x5d8   : > { %v4222_v56 = vsel %vm2636_vm4, %v4216_v51, 0  ;;  %5855 = vmatmul.mubr.msk.bf16.vlgmr.msra.gmra.mrb[96].mxu0 %vm2632_vm7, %v5853_v47  ;;  %5857 = vmatprep.subr.msk.bf16.mxu1 %vm2636_vm4, %v4217_v53  ;;  %vm8394_vm3 = vmmov %vm8393_vm6 }
 0x5d9   : > { %4228 = vmatpush1.bf16.msra.mxu1 %v4222_v56  ;;  %4353 = vmatprep.mubr.bf16.mxu0 %v8262_v3  ;;  %vm8395_vm5 = vmmov %vm8394_vm3 }
 0x5dc   : > { %5858 = vmatmul.mubr.msk.bf16.vlgmr.msra.gmra.mrb[96].mxu1 %vm2632_vm7, %v5856_v59 }
 0x5dd   : > { %4403 = vmatprep.mubr.bf16.mxu1 %v8262_v3 }
 0x64f   : > { %v2677_v63 = vpop.f32.mrb[48].mxu1 }
 0x650   : > { %v2728_v5 = vadd.f32 %v2727_v54, %v2677_v63  ;;  %v2679_v11 = vpop.f32.mrb[49].mxu1 }
 0x651   : > { %v2730_v14 = vadd.f32 %v2729_v26, %v2679_v11  ;;  %v2681_v62 = vpop.f32.mrb[50].mxu1 }
 0x652   : > { %v2682_v4 = vpop.f32.mrb[51].mxu1 }
 0x657   : > { %v2789_v27 = vpop.f32.mrb[52].mxu1 }
 0x658   : > { %v2796_v16 = vadd.f32 %v2789_v27, %v2728_v5  ;;  %v2791_v41 = vpop.f32.mrb[53].mxu1 }
 0x659   : > { %v2797_v20 = vadd.f32 %v2791_v41, %v2730_v14  ;;  %v2793_v29 = vpop.f32.mrb[54].mxu1 }
 0x65a   : > { %v2794_v2 = vpop.f32.mrb[55].mxu1 }
 0x65b   : > { %v2857_v34 = vpop.f32.mrb[56].mxu0 }
 0x65c   : > { %v2864_v33 = vadd.f32 %v2857_v34, %v2796_v16  ;;  %v2859_v25 = vpop.f32.mrb[57].mxu0 }
 0x65d   : > { %v2865_v48 = vadd.f32 %v2859_v25, %v2797_v20  ;;  %v2861_v43 = vpop.f32.mrb[58].mxu0 }
 0x65e   : > { %v2862_v50 = vpop.f32.mrb[59].mxu0 }
 0x65f   : > { %v2925_v52 = vpop.f32.mrb[56].mxu1 }
 0x660   : > { %v2932_v31 = vadd.f32 %v2925_v52, %v2864_v33  ;;  %v2927_v22 = vpop.f32.mrb[57].mxu1 }
 0x661   : > { %v2933_v24 = vadd.f32 %v2927_v22, %v2865_v48  ;;  %v2929_v55 = vpop.f32.mrb[58].mxu1 }
 0x662   : > { %v2930_v19 = vpop.f32.mrb[59].mxu1 }
 0x663   : > { %v2993_v46 = vpop.f32.mrb[60].mxu0 }
 0x664   : > { %v3000_v35 = vadd.f32 %v2993_v46, %v2932_v31  ;;  %v2995_v44 = vpop.f32.mrb[61].mxu0 }
 0x665   : > { %v3001_v18 = vadd.f32 %v2995_v44, %v2933_v24  ;;  %v2997_v21 = vpop.f32.mrb[62].mxu0 }
 0x666   : > { %v2998_v8 = vpop.f32.mrb[63].mxu0 }
 0x667   : > { %v3061_v0 = vpop.f32.mrb[60].mxu1 }
 0x668   : > { %v3068_v45 = vadd.f32 %v3061_v0, %v3000_v35  ;;  %v3063_v40 = vpop.f32.mrb[61].mxu1 }
 0x669   : > { %v3069_v6 = vadd.f32 %v3063_v40, %v3001_v18  ;;  %v3065_v23 = vpop.f32.mrb[62].mxu1 }
 0x66a   : > { %v3066_v38 = vpop.f32.mrb[63].mxu1 }
 0x66b   : > { %v3123_v15 = vpop.f32.mrb[64].mxu0 }
 0x66c   : > { %v3130_v58 = vadd.f32 %v3123_v15, %v3068_v45  ;;  %v3125_v1 = vpop.f32.mrb[65].mxu0 }
 0x66d   : > { %v3131_v57 = vadd.f32 %v3125_v1, %v3069_v6  ;;  %v3127_v32 = vpop.f32.mrb[66].mxu0 }
 0x66e   : > { %v3128_v28 = vpop.f32.mrb[67].mxu0 }
 0x66f   : > { %v3191_v30 = vpop.f32.mrb[64].mxu1 }
 0x670   : > { %v3198_v42 = vadd.f32 %v3191_v30, %v3130_v58  ;;  %v3193_v54 = vpop.f32.mrb[65].mxu1 }
 0x671   : > { %v3199_v10 = vadd.f32 %v3193_v54, %v3131_v57  ;;  %v3195_v26 = vpop.f32.mrb[66].mxu1 }
 0x672   : > { %v3196_v36 = vpop.f32.mrb[67].mxu1 }
 0x673   : > { %v3259_v17 = vpop.f32.mrb[68].mxu0 }
 0x674   : > { %v3266_v39 = vadd.f32 %v3259_v17, %v3198_v42  ;;  %v3261_v12 = vpop.f32.mrb[69].mxu0 }
 0x675   : > { %v3267_v7 = vadd.f32 %v3261_v12, %v3199_v10  ;;  %v3263_v13 = vpop.f32.mrb[70].mxu0 }
 0x676   : > { %v3264_v37 = vpop.f32.mrb[71].mxu0 }
 0x677   : > { %v3327_v47 = vpop.f32.mrb[68].mxu1 }
 0x678   : > { %v3334_v49 = vadd.f32 %v3327_v47, %v3266_v39  ;;  %v3329_v60 = vpop.f32.mrb[69].mxu1 }
 0x679   : > { %v3335_v51 = vadd.f32 %v3329_v60, %v3267_v7  ;;  %v3331_v53 = vpop.f32.mrb[70].mxu1 }
 0x67a   : > { %v3332_v56 = vpop.f32.mrb[71].mxu1 }
 0x67b   : > { %v3395_v59 = vpop.f32.mrb[72].mxu0 }
 0x67c   : > { %v3402_v61 = vadd.f32 %v3395_v59, %v3334_v49  ;;  %v3397_v63 = vpop.f32.mrb[73].mxu0 }
 0x67d   : > { %v3403_v5 = vadd.f32 %v3397_v63, %v3335_v51  ;;  %v3399_v11 = vpop.f32.mrb[74].mxu0 }
 0x67e   : > { %v3400_v14 = vpop.f32.mrb[75].mxu0 }
 0x67f   : > { %v3457_v62 = vpop.f32.mrb[72].mxu1 }
 0x680   : > { %v3464_v4 = vadd.f32 %v3457_v62, %v3402_v61  ;;  %v3459_v27 = vpop.f32.mrb[73].mxu1 }
 0x681   : > { %v3465_v16 = vadd.f32 %v3459_v27, %v3403_v5  ;;  %v3461_v41 = vpop.f32.mrb[74].mxu1 }
 0x682   : > { %v3462_v20 = vpop.f32.mrb[75].mxu1 }
 0x683   : > { %v3525_v29 = vpop.f32.mrb[76].mxu0 }
 0x684   : > { %v3532_v2 = vadd.f32 %v3525_v29, %v3464_v4  ;;  %v3527_v34 = vpop.f32.mrb[77].mxu0 }
 0x685   : > { %v3533_v33 = vadd.f32 %v3527_v34, %v3465_v16  ;;  %v3529_v25 = vpop.f32.mrb[78].mxu0 }
 0x686   : > { %v3530_v48 = vpop.f32.mrb[79].mxu0 }
 0x687   : > { %v3593_v43 = vpop.f32.mrb[76].mxu1  ;;  %v4274_v48 = vpop.permute.xlu0 %4273 }
 0x688   : > { %v3600_v50 = vadd.f32 %v3593_v43, %v3532_v2  ;;  %v3595_v52 = vpop.f32.mrb[77].mxu1 }
 0x689   : > { %v3601_v31 = vadd.f32 %v3595_v52, %v3533_v33  ;;  %v3597_v22 = vpop.f32.mrb[78].mxu1 }
 0x68a   : > { %v3598_v24 = vpop.f32.mrb[79].mxu1 }
 0x68b   : > { %v3661_v55 = vpop.f32.mrb[80].mxu0 }
 0x68c   : > { %v3668_v19 = vadd.f32 %v3661_v55, %v3600_v50  ;;  %v3663_v46 = vpop.f32.mrb[81].mxu0 }
 0x68d   : > { %v3669_v35 = vadd.f32 %v3663_v46, %v3601_v31  ;;  %v3665_v44 = vpop.f32.mrb[82].mxu0 }
 0x68e   : > { %v3666_v18 = vpop.f32.mrb[83].mxu0  ;;  %v8392_v44 = vld [vmem:[#allocation7_spill] sm:$0xff] }
 0x68f   : > { %v3729_v21 = vpop.f32.mrb[80].mxu1  ;;  %v7665_v18 = vpop.permute.xlu0 %4412  ;;  %vm4296_vm10 = vcmp.ne.s16.totalorder %v8392_v44, 0 }
 0x690   : > { %v3736_v8 = vadd.f32 %v3729_v21, %v3668_v19  ;;  %v3731_v0 = vpop.f32.mrb[81].mxu1  ;;  %vm4418_vm8 = vcmp.ne.s16.totalorder %v7665_v18, 0 }
 0x691   : > { %v3737_v45 = vadd.f32 %v3731_v0, %v3669_v35  ;;  %v3733_v40 = vpop.f32.mrb[82].mxu1  ;;  %v8391_v35 = vld [vmem:[#allocation8_spill] sm:$0xff] }
 0x692   : > { %v3734_v6 = vpop.f32.mrb[83].mxu1 }
 0x693   : > { %v3791_v23 = vpop.f32.mrb[84].mxu0 }
 0x694   : > { %v3798_v38 = vadd.f32 %v3791_v23, %v3736_v8  ;;  %v3793_v15 = vpop.f32.mrb[85].mxu0  ;;  %v7667_v8 = vpop.permute.xlu0 %4489 }
 0x695   : > { %v3799_v58 = vadd.f32 %v3793_v15, %v3737_v45  ;;  %v3795_v1 = vpop.f32.mrb[86].mxu0  ;;  %vm4494_vm11 = vcmp.ne.s16.totalorder %v7667_v8, 0 }
 0x696   : > { %v3796_v57 = vpop.f32.mrb[87].mxu0  ;;  %v4299_v1 = vld [vmem:[%s8069_s7] sm:$0x3] }
 0x697   : > { %v3859_v32 = vpop.f32.mrb[84].mxu1 }
 0x698   : > { %v3866_v28 = vadd.f32 %v3859_v32, %v3798_v38  ;;  %v3861_v30 = vpop.f32.mrb[85].mxu1  ;;  %v7696_v15 = vpop.permute.xlu0 %4627 }
 0x699   : > { %v3867_v42 = vadd.f32 %v3861_v30, %v3799_v58  ;;  %v3863_v54 = vpop.f32.mrb[86].mxu1  ;;  %vm4633_vm12 = vcmp.ne.s16.totalorder %v7696_v15, 0 }
 0x69a   : > { %v3864_v10 = vpop.f32.mrb[87].mxu1 }
 0x69b   : > { %v3927_v26 = vpop.f32.mrb[88].mxu0 }
 0x69c   : > { %v3934_v36 = vadd.f32 %v3927_v26, %v3866_v28  ;;  %v3929_v17 = vpop.f32.mrb[89].mxu0  ;;  %v7715_v30 = vpop.permute.xlu0 %4704 }
 0x69d   : > { %v3935_v39 = vadd.f32 %v3929_v17, %v3867_v42  ;;  %v3931_v12 = vpop.f32.mrb[90].mxu0  ;;  %vm4709_vm2 = vcmp.ne.s16.totalorder %v7715_v30, 0 }
 0x69e   : > { %v3932_v7 = vpop.f32.mrb[91].mxu0 }
 0x69f   : > { %v3995_v13 = vpop.f32.mrb[88].mxu1 }
 0x6a0   : > { %v4002_v37 = vadd.f32 %v3995_v13, %v3934_v36  ;;  %v3997_v47 = vpop.f32.mrb[89].mxu1 }
 0x6a1   : > { %v4003_v49 = vadd.f32 %v3997_v47, %v3935_v39  ;;  %v3999_v60 = vpop.f32.mrb[90].mxu1 }
 0x6a2   : > { %v4000_v51 = vpop.f32.mrb[91].mxu1 }
 0x6a3   : > { %v4063_v53 = vpop.f32.mrb[92].mxu0 }
 0x6a4   : > { %v4070_v56 = vadd.f32 %v4063_v53, %v4002_v37  ;;  %v4065_v59 = vpop.f32.mrb[93].mxu0  ;;  %v7791_v53 = vpop.permute.xlu0 %4842 }
 0x6a5   : > { %v4071_v61 = vadd.f32 %v4065_v59, %v4003_v49  ;;  %v4067_v63 = vpop.f32.mrb[94].mxu0 }
 0x6a6   : > { %v4068_v5 = vpop.f32.mrb[95].mxu0 }
 0x6a7   : > { %v4125_v11 = vpop.f32.mrb[92].mxu1 }
 0x6a8   : > { %v4132_v14 = vadd.f32 %v4125_v11, %v4070_v56  ;;  %v4127_v62 = vpop.f32.mrb[93].mxu1 }
 0x6a9   : > { %v4133_v4 = vadd.f32 %v4127_v62, %v4071_v61  ;;  %v4129_v27 = vpop.f32.mrb[94].mxu1  ;;  %v4918_v62 = vld [vmem:[%s8070_s8] sm:$0xf] }
 0x6aa   : > { %v4130_v16 = vpop.f32.mrb[95].mxu1 }
 0x6ab   : > { %v4193_v41 = vpop.f32.mrb[96].mxu0 }
 0x6ac   : > { %v4200_v20 = vadd.f32 %v4193_v41, %v4132_v14  ;;  %v4195_v29 = vpop.f32.mrb[97].mxu0 }
 0x6ad   : > { %v4201_v2 = vadd.f32 %v4195_v29, %v4133_v4  ;;  %v4197_v34 = vpop.f32.mrb[98].mxu0 }
 0x6ae   : > { %v4198_v33 = vpop.f32.mrb[99].mxu0  ;;  %v5859_v34 = vld [vmem:[%s8069_s7 + $0x2] sm:$0x3] }
 0x6af   : > { %v4261_v25 = vpop.f32.mrb[96].mxu1 }
 0x6b0   : > { %v4268_v43 = vadd.f32 %v4261_v25, %v4200_v20  ;;  %v4263_v50 = vpop.f32.mrb[97].mxu1 }
 0x6b1   : > { %v4269_v52 = vadd.f32 %v4263_v50, %v4201_v2  ;;  %v4265_v31 = vpop.f32.mrb[98].mxu1 }
 0x6b2   : > { %v4276_v22 = vadd.f32 %v4274_v48, %v4268_v43  ;;  %v4266_v24 = vpop.f32.mrb[99].mxu1 }
 0x6b3   : > { %v4277_v55 = vadd.f32 %v4274_v48, %v4269_v52 }
 0x6b4   : > { %v4278_v19 = vpack.c.bf16 %v4276_v22, %v4276_v22 }
 0x6b5   : > { %v4279_v46 = vpack.c.bf16 %v4277_v55, %v4277_v55 }
 0x6b6   : > { %4282 = vrot.lane.b32.xlu1 %v4278_v19, %s8390_s30 }
 0x6ba   : > { %4284 = vrot.lane.b32.xlu1 %v4279_v46, %s8390_s30 }
 0x6be   : > { %4414 = vrot.lane.b32.xlu1 %v8391_v35, %s6043_s21 }
 0x6c2   : > { %4491 = vrot.lane.b32.xlu1 %v8392_v44, %s8386_s19 }
 0x6c6   : > { %4629 = vrot.lane.b32.xlu1 %v8391_v35, %s6044_s17 }
 0x6ca   : > { %4706 = vrot.lane.b32.xlu1 %v8392_v44, %s8388_s20 }
 0x6ce   : > { %4844 = vrot.lane.b32.xlu1 %v8391_v35, %s8389_s29 }
 0x728   : > { %v4283_v21 = vpop.permute.xlu1 %4282 }
 0x729   : > { %v7670_v0 = vsel %vm8393_vm6, 0, %v4283_v21  ;;  %vm8397_vm6 = vcmask 130048  }
 0x72a   : > { %4567 = vrot.lane.b32.xlu1 %v7670_v0, %s6030_s24  ;;  %4304 = vrot.lane.b32.xlu0 %v7670_v0, %s6026_s26  ;;  %v4297_v40 = vsel %vm4295_vm13, %v7670_v0, 0  ;;  %v4497_v57 = vsel %vm4494_vm11, %v7670_v0, 0  ;;  %v4421_v32 = vsel %vm4418_vm8, %v7670_v0, 0  ;;  %v4636_v10 = vsel %vm4633_vm12, %v7670_v0, 0 }
 0x72b   : > { %v4366_v58 = vsel %vm2636_vm4, %v4297_v40, 0  ;;  %v4712_v26 = vsel %vm4709_vm2, %v7670_v0, 0 }
 0x72c   : > { %v4285_v45 = vpop.permute.xlu1 %4284 }
 0x72d   : > { %v7682_v6 = vsel %vm8394_vm3, %v4283_v21, %v4285_v45  ;;  %v7685_v23 = vsel %vm8395_vm5, %v4285_v45, 0  ;;  %v5864_v21 = vld [vmem:[%s8069_s7 + $0x4] sm:$0x3] }
 0x72e   : > { %4308 = vrot.lane.b32.xlu0 %v7685_v23, %s6026_s26  ;;  %4306 = vrot.lane.b32.xlu1 %v7682_v6, %s6026_s26  ;;  %v4298_v38 = vsel %vm4296_vm10, %v7682_v6, 0 }
 0x72f   : > { %5862 = vmatprep.subr.msk.bf16.mxu1 %vm2636_vm4, %v4298_v38 }
 0x730   : > { %4372 = vmatpush1.bf16.msra.mxu1 %v4366_v58  ;;  %v7709_v28 = vpop.permute.xlu1 %4414  ;;  %v5867_v58 = vld [vmem:[%s8069_s7 + $0x6] sm:$0x3] }
 0x731   : > { %v7725_v42 = vsel %vm4416_vm9, %v7665_v18, %v7709_v28  ;;  %vm4420_vm15 = vcmp.ne.s16.totalorder %v7709_v28, 0  ;;  %vm4631_vm9 = vcmask 146432  }
 0x732   : > { %4505 = vrot.lane.b32.xlu0 %v4497_v57, %s6029_s23  ;;  %4429 = vrot.lane.b32.xlu1 %v4421_v32, %s8247_s14  ;;  %vm8226_vm14 = vcmp.ne.s16.totalorder %v7725_v42, 0  ;;  %v4423_v39 = vsel %vm4420_vm15, %v7685_v23, 0  ;;  %v5870_v32 = vld [vmem:[%s8069_s7 + $0x8] sm:$0x3] }
 0x733   : > { %5863 = vmatmul.mubr.msk.bf16.vlgmr.msra.gmra.mrb[100].mxu1 %vm2632_vm7, %v4299_v1  ;;  %v4422_v17 = vsel %vm8226_vm14, %v7682_v6, 0 }
 0x734   : > { %4554 = vmatprep.mubr.bf16.mxu1 %v8262_v3  ;;  %v7727_v54 = vpop.permute.xlu1 %4491 }
 0x735   : > { %v7742_v36 = vsel %vm8397_vm6, %v7667_v8, %v7727_v54  ;;  %vm8227_vm5 = vcmp.ne.s16.totalorder %v7727_v54, 0 }
 0x736   : > { %4569 = vrot.lane.b32.xlu0 %v7682_v6, %s6030_s24  ;;  %4571 = vrot.lane.b32.xlu1 %v7685_v23, %s6030_s24  ;;  %vm8228_vm3 = vcmp.ne.s16.totalorder %v7742_v36, 0  ;;  %v4499_v13 = vsel %vm8227_vm5, %v7685_v23, 0  ;;  %vm8398_vm5 = vcmask 261120  }
 0x737   : > { %v4498_v7 = vsel %vm8228_vm3, %v7682_v6, 0 }
 0x738   : > { %v7752_v12 = vpop.permute.xlu1 %4629 }
 0x739   : > { %v7766_v37 = vsel %vm4631_vm9, %v7696_v15, %v7752_v12  ;;  %vm8230_vm14 = vcmp.ne.s16.totalorder %v7752_v12, 0 }
 0x73a   : > { %4644 = vrot.lane.b32.xlu0 %v4636_v10, %s8396_s12  ;;  %4720 = vrot.lane.b32.xlu1 %v4712_v26, %s6017_s18  ;;  %vm4634_vm6 = vcmp.ne.s16.totalorder %v7766_v37, 0  ;;  %v4638_v51 = vsel %vm8230_vm14, %v7685_v23, 0 }
 0x73b   : > { %v4637_v60 = vsel %vm4634_vm6, %v7682_v6, 0 }
 0x73c   : > { %v7768_v47 = vpop.permute.xlu1 %4706 }
 0x73d   : > { %v7779_v49 = vsel %vm8398_vm5, %v7715_v30, %v7768_v47  ;;  %vm4711_vm3 = vcmp.ne.s16.totalorder %v7768_v47, 0  ;;  %vm8233_vm5 = vcmp.ne.s16.totalorder %v7791_v53, 0 }
 0x73e   : > { %4433 = vrot.lane.b32.xlu1 %v4423_v39, %s8247_s14  ;;  %4431 = vrot.lane.b32.xlu0 %v4422_v17, %s8247_s14  ;;  %vm8229_vm9 = vcmp.ne.s16.totalorder %v7779_v49, 0  ;;  %v4714_v61 = vsel %vm4711_vm3, %v7685_v23, 0  ;;  %v4850_v5 = vsel %vm8233_vm5, %v7670_v0, 0 }
 0x73f   : > { %v4713_v59 = vsel %vm8229_vm9, %v7682_v6, 0 }
 0x740   : > { %v7793_v56 = vpop.permute.xlu1 %4844 }
 0x741   : > { %v7807_v63 = vsel %vm633_vm1, %v7791_v53, %v7793_v56  ;;  %vm8232_vm14 = vcmp.ne.s16.totalorder %v7793_v56, 0  ;;  %vm8400_vm1 = vcmask 1039360  }
 0x742   : > { %4509 = vrot.lane.b32.xlu0 %v4499_v13, %s6029_s23  ;;  %4507 = vrot.lane.b32.xlu1 %v4498_v7, %s6029_s23  ;;  %vm8231_vm9 = vcmp.ne.s16.totalorder %v7807_v63, 0  ;;  %v4852_v14 = vsel %vm8232_vm14, %v7685_v23, 0  ;;  %vm8404_vm14 = vcmask 908288   ;;  %v5873_v13 = vld [vmem:[%s8069_s7 + $0xa] sm:$0x3] }
 0x743   : > { %v4851_v11 = vsel %vm8231_vm9, %v7682_v6, 0  ;;  %vm8401_vm9 = vmmov %vm8400_vm1 }
 0x744   : > { %vm8405_vm5 = vmmov %vm8404_vm14 }
 0x746   : > { %4782 = vrot.lane.b32.xlu0 %v7670_v0, %s8270_s16  ;;  %4784 = vrot.lane.b32.xlu1 %v7682_v6, %s8270_s16 }
 0x74a   : > { %4648 = vrot.lane.b32.xlu0 %v4638_v51, %s8396_s12  ;;  %4646 = vrot.lane.b32.xlu1 %v4637_v60, %s8396_s12 }
 0x74e   : > { %4724 = vrot.lane.b32.xlu1 %v4714_v61, %s6017_s18  ;;  %4722 = vrot.lane.b32.xlu0 %v4713_v59, %s6017_s18 }
 0x752   : > { %4858 = vrot.lane.b32.xlu1 %v4850_v5, %s8399_s15  ;;  %4786 = vrot.lane.b32.xlu0 %v7685_v23, %s8270_s16 }
 0x756   : > { %4862 = vrot.lane.b32.xlu1 %v4852_v14, %s8399_s15  ;;  %4860 = vrot.lane.b32.xlu0 %v4851_v11, %s8399_s15  ;;  %v5876_v14 = vld [vmem:[%s8069_s7 + $0xc] sm:$0x3] }
 0x75a   : > { %4921 = vperm.xlu0 %5979, %v4918_v62  }
 0x79c   : > { %v4305_v4 = vpop.permute.xlu0 %4304  ;;  %v4568_v27 = vpop.permute.xlu1 %4567 }
 0x7a0   : > { %v4309_v16 = vpop.permute.xlu0 %4308  ;;  %v4307_v41 = vpop.permute.xlu1 %4306 }
 0x7a1   : > { %v4310_v20 = vsel %vm8400_vm1, %v4305_v4, %v4307_v41  ;;  %v4311_v29 = vsel %vm8401_vm9, %v4307_v41, %v4309_v16  ;;  %vm8402_vm9 = vcmask 1031168   ;;  %v5879_v41 = vld [vmem:[%s8069_s7 + $0xe] sm:$0x3] }
 0x7a2   : > { %v4316_v2 = vsel %vm2636_vm4, %v4310_v20, 0  ;;  %5860 = vmatprep.subr.msk.bf16.mxu0 %vm2636_vm4, %v4311_v29  ;;  %vm8403_vm1 = vmmov %vm8402_vm9 }
 0x7a3   : > { %4322 = vmatpush1.bf16.msra.mxu0 %v4316_v2 }
 0x7a4   : > { %v4506_v33 = vpop.permute.xlu0 %4505  ;;  %v4430_v25 = vpop.permute.xlu1 %4429 }
 0x7a6   : > { %5861 = vmatmul.mubr.msk.bf16.vlgmr.msra.gmra.mrb[100].mxu0 %vm2632_vm7, %v5859_v34 }
 0x7a7   : > { %4478 = vmatprep.mubr.bf16.mxu0 %v8262_v3 }
 0x7a8   : > { %v4570_v48 = vpop.permute.xlu0 %4569  ;;  %v4572_v43 = vpop.permute.xlu1 %4571 }
 0x7a9   : > { %v4573_v46 = vsel %vm8404_vm14, %v4568_v27, %v4570_v48  ;;  %v4574_v35 = vsel %vm8405_vm5, %v4570_v48, %v4572_v43  ;;  %vm8406_vm14 = vcmask 900096  }
 0x7aa   : > { %v4579_v23 = vsel %vm2636_vm4, %v4573_v46, 0  ;;  %vm8407_vm5 = vmmov %vm8406_vm14 }
 0x7ac   : > { %v4645_v50 = vpop.permute.xlu0 %4644  ;;  %v4721_v52 = vpop.permute.xlu1 %4720 }
 0x7b0   : > { %v4432_v31 = vpop.permute.xlu0 %4431  ;;  %v4434_v22 = vpop.permute.xlu1 %4433 }
 0x7b1   : > { %v4435_v24 = vsel %vm8402_vm9, %v4430_v25, %v4432_v31  ;;  %v4436_v55 = vsel %vm8403_vm1, %v4432_v31, %v4434_v22  ;;  %vm8408_vm9 = vcmask 785408   ;;  %v5882_v25 = vld [vmem:[%s8069_s7 + $0x10] sm:$0x3] }
 0x7b2   : > { %v4441_v19 = vsel %vm2636_vm4, %v4435_v24, 0  ;;  %5865 = vmatprep.subr.msk.bf16.mxu0 %vm2636_vm4, %v4436_v55  ;;  %vm8409_vm1 = vmmov %vm8408_vm9 }
 0x7b3   : > { %4447 = vmatpush1.bf16.msra.mxu0 %v4441_v19 }
 0x7b4   : > { %v4510_v0 = vpop.permute.xlu0 %4509  ;;  %5871 = vmatprep.subr.msk.bf16.mxu0 %vm2636_vm4, %v4574_v35  ;;  %v4508_v45 = vpop.permute.xlu1 %4507 }
 0x7b5   : > { %v4511_v40 = vsel %vm1113_vm0, %v4506_v33, %v4508_v45  ;;  %v4512_v6 = vsel %vm1113_vm0, %v4508_v45, %v4510_v0 }
 0x7b6   : > { %v4517_v38 = vsel %vm2636_vm4, %v4511_v40, 0  ;;  %5866 = vmatmul.mubr.msk.bf16.vlgmr.msra.gmra.mrb[104].mxu0 %vm2632_vm7, %v5864_v21  ;;  %5868 = vmatprep.subr.msk.bf16.mxu1 %vm2636_vm4, %v4512_v6 }
 0x7b7   : > { %4523 = vmatpush1.bf16.msra.mxu1 %v4517_v38  ;;  %4585 = vmatpush1.bf16.msra.mxu0 %v4579_v23 }
 0x7b8   : > { %v4783_v1 = vpop.permute.xlu0 %4782  ;;  %v4785_v57 = vpop.permute.xlu1 %4784  ;;  %4616 = vmatprep.mubr.bf16.mxu0 %v8262_v3 }
 0x7ba   : > { %5869 = vmatmul.mubr.msk.bf16.vlgmr.msra.gmra.mrb[104].mxu1 %vm2632_vm7, %v5867_v58 }
 0x7bb   : > { %4693 = vmatprep.mubr.bf16.mxu1 %v8262_v3 }
 0x7bc   : > { %v4649_v10 = vpop.permute.xlu0 %4648  ;;  %v4647_v26 = vpop.permute.xlu1 %4646 }
 0x7bd   : > { %v4650_v17 = vsel %vm8406_vm14, %v4645_v50, %v4647_v26  ;;  %v4651_v39 = vsel %vm8407_vm5, %v4647_v26, %v4649_v10  ;;  %vm8410_vm14 = vcmask 777216  }
 0x7be   : > { %v4656_v7 = vsel %vm2636_vm4, %v4650_v17, 0  ;;  %5872 = vmatmul.mubr.msk.bf16.vlgmr.msra.gmra.mrb[108].mxu0 %vm2632_vm7, %v5870_v32  ;;  %5874 = vmatprep.subr.msk.bf16.mxu1 %vm2636_vm4, %v4651_v39  ;;  %v4788_v11 = vsel %vm8410_vm14, %v4783_v1, %v4785_v57  ;;  %vm8411_vm5 = vmmov %vm8410_vm14  ;;  %vm4961_vm14 = vcmask 1041408  }
 0x7bf   : > { %4662 = vmatpush1.bf16.msra.mxu1 %v4656_v7  ;;  %4769 = vmatprep.mubr.bf16.mxu0 %v8262_v3  ;;  %v4794_v16 = vsel %vm2636_vm4, %v4788_v11, 0 }
 0x7c0   : > { %v4723_v60 = vpop.permute.xlu0 %4722  ;;  %v4725_v51 = vpop.permute.xlu1 %4724 }
 0x7c1   : > { %v4726_v59 = vsel %vm8408_vm9, %v4721_v52, %v4723_v60  ;;  %v4727_v61 = vsel %vm8409_vm1, %v4723_v60, %v4725_v51  ;;  %vm8412_vm9 = vcmask 769024  }
 0x7c2   : > { %v4732_v5 = vsel %vm2636_vm4, %v4726_v59, 0  ;;  %5875 = vmatmul.mubr.msk.bf16.vlgmr.msra.gmra.mrb[108].mxu1 %vm2632_vm7, %v5873_v13  ;;  %5877 = vmatprep.subr.msk.bf16.mxu0 %vm2636_vm4, %v4727_v61  ;;  %vm8413_vm1 = vmmov %vm8412_vm9 }
 0x7c3   : > { %4738 = vmatpush1.bf16.msra.mxu0 %v4732_v5  ;;  %4831 = vmatprep.mubr.bf16.mxu1 %v8262_v3 }
 0x7c4   : > { %v4787_v62 = vpop.permute.xlu0 %4786  ;;  %v4859_v4 = vpop.permute.xlu1 %4858 }
 0x7c5   : > { %v4789_v27 = vsel %vm8411_vm5, %v4785_v57, %v4787_v62  ;;  %vm8414_vm5 = vcmask 138240  }
 0x7c6   : > { %5878 = vmatmul.mubr.msk.bf16.vlgmr.msra.gmra.mrb[112].mxu0 %vm2632_vm7, %v5876_v14  ;;  %5880 = vmatprep.subr.msk.bf16.mxu1 %vm2636_vm4, %v4789_v27 }
 0x7c7   : > { %4800 = vmatpush1.bf16.msra.mxu1 %v4794_v16  ;;  %4907 = vmatprep.mubr.bf16.mxu0 %v8262_v3 }
 0x7c8   : > { %v4861_v20 = vpop.permute.xlu0 %4860  ;;  %v4863_v29 = vpop.permute.xlu1 %4862 }
 0x7c9   : > { %v4864_v2 = vsel %vm8412_vm9, %v4859_v4, %v4861_v20  ;;  %v4865_v34 = vsel %vm8413_vm1, %v4861_v20, %v4863_v29  ;;  %vm8415_vm9 = vmmov %vm8414_vm5 }
 0x7ca   : > { %v4870_v33 = vsel %vm2636_vm4, %v4864_v2, 0  ;;  %5881 = vmatmul.mubr.msk.bf16.vlgmr.msra.gmra.mrb[112].mxu1 %vm2632_vm7, %v5879_v41  ;;  %5883 = vmatprep.subr.msk.bf16.mxu0 %vm2636_vm4, %v4865_v34  ;;  %vm8416_vm1 = vmmov %vm8414_vm5 }
 0x7cb   : > { %4876 = vmatpush1.bf16.msra.mxu0 %v4870_v33  ;;  %5000 = vmatprep.mubr.bf16.mxu1 %v8262_v3 }
 0x7ce   : > { %5884 = vmatmul.mubr.msk.bf16.vlgmr.msra.gmra.mrb[116].mxu0 %vm2632_vm7, %v5882_v25 }
 0x7cf   : > { %5050 = vmatprep.mubr.bf16.mxu0 %v8262_v3 }
 0x806   : > { %v4405_v48 = vpop.f32.mrb[100].mxu1 }
 0x807   : > { %v4407_v43 = vpop.f32.mrb[101].mxu1 }
 0x808   : > { %v4409_v50 = vpop.f32.mrb[102].mxu1 }
 0x809   : > { %v4410_v52 = vpop.f32.mrb[103].mxu1 }
 0x80a   : > { %v4922_v52 = vpop.permute.xlu0 %4921 }
 0x879   : > { %v4355_v31 = vpop.f32.mrb[100].mxu0 }
 0x87a   : > { %v4357_v22 = vpop.f32.mrb[101].mxu0  ;;  %v4406_v24 = vadd.f32 %v4405_v48, %v4355_v31 }
 0x87b   : > { %v4359_v55 = vpop.f32.mrb[102].mxu0  ;;  %v4408_v19 = vadd.f32 %v4407_v43, %v4357_v22 }
 0x87c   : > { %v4360_v46 = vpop.f32.mrb[103].mxu0 }
 0x889   : > { %v4480_v35 = vpop.f32.mrb[104].mxu0 }
 0x88a   : > { %v4487_v21 = vadd.f32 %v4480_v35, %v4406_v24  ;;  %v4482_v0 = vpop.f32.mrb[105].mxu0 }
 0x88b   : > { %v4488_v45 = vadd.f32 %v4482_v0, %v4408_v19  ;;  %v4484_v40 = vpop.f32.mrb[106].mxu0 }
 0x88c   : > { %v4485_v6 = vpop.f32.mrb[107].mxu0 }
 0x88d   : > { %v4556_v23 = vpop.f32.mrb[104].mxu1 }
 0x88e   : > { %v4563_v38 = vadd.f32 %v4556_v23, %v4487_v21  ;;  %v4558_v58 = vpop.f32.mrb[105].mxu1 }
 0x88f   : > { %v4564_v1 = vadd.f32 %v4558_v58, %v4488_v45  ;;  %v4560_v57 = vpop.f32.mrb[106].mxu1 }
 0x890   : > { %v4561_v32 = vpop.f32.mrb[107].mxu1 }
 0x891   : > { %v4618_v10 = vpop.f32.mrb[108].mxu0 }
 0x892   : > { %v4625_v26 = vadd.f32 %v4618_v10, %v4563_v38  ;;  %v4620_v17 = vpop.f32.mrb[109].mxu0 }
 0x893   : > { %v4626_v39 = vadd.f32 %v4620_v17, %v4564_v1  ;;  %v4622_v7 = vpop.f32.mrb[110].mxu0  ;;  %v4944_v1 = vld [vmem:[%s8071_s9] sm:$0xf] }
 0x894   : > { %v4623_v13 = vpop.f32.mrb[111].mxu0 }
 0x895   : > { %v4695_v60 = vpop.f32.mrb[108].mxu1  ;;  %v5885_v13 = vld [vmem:[%s8071_s9 + $0x4] sm:$0xf] }
 0x896   : > { %v4702_v51 = vadd.f32 %v4695_v60, %v4625_v26  ;;  %v4697_v59 = vpop.f32.mrb[109].mxu1 }
 0x897   : > { %v4703_v61 = vadd.f32 %v4697_v59, %v4626_v39  ;;  %v4699_v5 = vpop.f32.mrb[110].mxu1 }
 0x898   : > { %v4700_v11 = vpop.f32.mrb[111].mxu1 }
 0x899   : > { %v4771_v14 = vpop.f32.mrb[112].mxu0 }
 0x89a   : > { %v4778_v62 = vadd.f32 %v4771_v14, %v4702_v51  ;;  %v4773_v4 = vpop.f32.mrb[113].mxu0 }
 0x89b   : > { %v4779_v27 = vadd.f32 %v4773_v4, %v4703_v61  ;;  %v4775_v16 = vpop.f32.mrb[114].mxu0 }
 0x89c   : > { %v4776_v41 = vpop.f32.mrb[115].mxu0 }
 0x89d   : > { %v4833_v20 = vpop.f32.mrb[112].mxu1 }
 0x89e   : > { %v4840_v29 = vadd.f32 %v4833_v20, %v4778_v62  ;;  %v4835_v2 = vpop.f32.mrb[113].mxu1 }
 0x89f   : > { %v4841_v34 = vadd.f32 %v4835_v2, %v4779_v27  ;;  %v4837_v33 = vpop.f32.mrb[114].mxu1 }
 0x8a0   : > { %v4838_v25 = vpop.f32.mrb[115].mxu1 }
 0x8a1   : > { %v4909_v48 = vpop.f32.mrb[116].mxu0 }
 0x8a2   : > { %v4916_v43 = vadd.f32 %v4909_v48, %v4840_v29  ;;  %v4911_v50 = vpop.f32.mrb[117].mxu0  ;;  %v5890_v29 = vld [vmem:[%s8071_s9 + $0x8] sm:$0xf] }
 0x8a3   : > { %v4917_v31 = vadd.f32 %v4911_v50, %v4841_v34  ;;  %v4913_v22 = vpop.f32.mrb[118].mxu0  ;;  %v5893_v50 = vld [vmem:[%s8071_s9 + $0xc] sm:$0xf] }
 0x8a4   : > { %v4924_v24 = vadd.f32 %v4922_v52, %v4916_v43  ;;  %v4914_v55 = vpop.f32.mrb[119].mxu0  ;;  %v5896_v22 = vld [vmem:[%s8071_s9 + $0x10] sm:$0xf] }
 0x8a5   : > { %v4925_v19 = vadd.f32 %v4922_v52, %v4917_v31 }
 0x8a6   : > { %v4926_v46 = vpack.c.bf16 %v4924_v24, %v4924_v24 }
 0x8a7   : > { %v4927_v35 = vpack.c.bf16 %v4925_v19, %v4925_v19 }
 0x8a8   : > { %4930 = vrot.lane.b32.xlu1 %v4926_v46, %s8390_s30 }
 0x8a9   : > { %4932 = vrot.lane.b32.xlu0 %v4927_v35, %s8390_s30 }
 0x91a   : > { %v4931_v21 = vpop.permute.xlu1 %4930 }
 0x91b   : > { %v4937_v0 = vsel %vm8414_vm5, 0, %v4931_v21  ;;  %v4933_v45 = vpop.permute.xlu0 %4932  ;;  %vm8417_vm5 = vcmask 31744  }
 0x91c   : > { %v4934_v40 = vsel %vm8415_vm9, %v4931_v21, %v4933_v45  ;;  %4949 = vrot.lane.b32.xlu1 %v4937_v0, %s6026_s26  ;;  %5197 = vrot.lane.b32.xlu0 %v4937_v0, %s6030_s24  ;;  %v4942_v6 = vsel %vm4295_vm13, %v4937_v0, 0  ;;  %v4940_v58 = vsel %vm8416_vm1, %v4933_v45, 0  ;;  %v5127_v9 = vsel %vm4494_vm11, %v4937_v0, 0  ;;  %vm8428_vm1 = vmmov %vm8417_vm5  ;;  %v5899_v21 = vld [vmem:[%s8071_s9 + $0x14] sm:$0xf] }
 0x91d   : > { %v4943_v23 = vsel %vm4296_vm10, %v4934_v40, 0  ;;  %v5013_v38 = vsel %vm4961_vm14, %v4942_v6, 0  ;;  %v5059_v44 = vsel %vm4418_vm8, %v4937_v0, 0  ;;  %v5257_v57 = vsel %vm4633_vm12, %v4937_v0, 0 }
 0x91e   : > { %5888 = vmatprep.subr.msk.bf16.mxu0 %vm4961_vm14, %v4943_v23  ;;  %v5325_v8 = vsel %vm4709_vm2, %v4937_v0, 0  ;;  %v5061_v18 = vsel %vm4420_vm15, %v4940_v58, 0  ;;  %vm8418_vm13 = vcmp.ne.s16.totalorder %v7725_v42, 0  ;;  %vm8419_vm10 = vcmp.ne.s16.totalorder %v7742_v36, 0 }
 0x91f   : > { %5019 = vmatpush1.bf16.msra.mxu0 %v5013_v38  ;;  %v5060_v32 = vsel %vm8418_vm13, %v4934_v40, 0  ;;  %v5128_v15 = vsel %vm8419_vm10, %v4934_v40, 0  ;;  %vm8420_vm8 = vcmp.ne.s16.totalorder %v7727_v54, 0  ;;  %v5258_v28 = vsel %vm4634_vm6, %v4934_v40, 0 }
 0x920   : > { %4953 = vrot.lane.b32.xlu1 %v4940_v58, %s6026_s26  ;;  %4951 = vrot.lane.b32.xlu0 %v4934_v40, %s6026_s26  ;;  %v5129_v30 = vsel %vm8420_vm8, %v4940_v58, 0  ;;  %vm8421_vm11 = vcmp.ne.s16.totalorder %v7752_v12, 0  ;;  %v5327_v54 = vsel %vm4711_vm3, %v4940_v58, 0  ;;  %vm8422_vm12 = vcmp.ne.s16.totalorder %v7779_v49, 0  ;;  %v5534_v49 = vld [vmem:[#allocation2] sm:$0x1] }
 0x921   : > { %v5259_v42 = vsel %vm8421_vm11, %v4940_v58, 0  ;;  %v5326_v36 = vsel %vm8422_vm12, %v4934_v40, 0  ;;  %vm8423_vm2 = vcmp.ne.s16.totalorder %v7791_v53, 0  ;;  %vm8424_vm15 = vcmp.ne.s16.totalorder %v7793_v56, 0  ;;  %v5523_v53 = vld [vmem:[%s8072_s10] sm:$0xff]  ;;  %vm8433_vm11 = vmmov %vm8428_vm1 }
 0x922   : > { %5889 = vmatmul.mubr.msk.bf16.vlgmr.msra.gmra.mrb[120].mxu0 %vm8417_vm5, %v4944_v1  ;;  %v5455_v37 = vsel %vm8423_vm2, %v4937_v0, 0  ;;  %v5457_v12 = vsel %vm8424_vm15, %v4940_v58, 0  ;;  %vm8425_vm6 = vcmp.ne.s16.totalorder %v7807_v63, 0  ;;  %vm8426_vm3 = vcmask 1039360   ;;  %vm8434_vm12 = vmmov %vm8428_vm1 }
 0x923   : > { %5184 = vmatprep.mubr.bf16.mxu0 %v8262_v3  ;;  %v5456_v47 = vsel %vm8425_vm6, %v4934_v40, 0  ;;  %vm8427_vm9 = vmmov %vm8426_vm3  ;;  %vm8429_vm5 = vcmask 1031168   ;;  %vm8431_vm10 = vcmask 908288   ;;  %vm8438_vm6 = vcmask 785408  }
 0x924   : > { %5135 = vrot.lane.b32.xlu1 %v5127_v9, %s6029_s23  ;;  %5067 = vrot.lane.b32.xlu0 %v5059_v44, %s8247_s14  ;;  %vm8430_vm13 = vmmov %vm8429_vm5 }
 0x925   : > { %vm8432_vm8 = vmmov %vm8431_vm10 }
 0x926   : > { %vm8437_vm15 = vmmov %vm8428_vm1 }
 0x928   : > { %5199 = vrot.lane.b32.xlu1 %v4934_v40, %s6030_s24  ;;  %5201 = vrot.lane.b32.xlu0 %v4940_v58, %s6030_s24  ;;  %s8450_s24 = sshll.u32 %s8453_s28, 1 }
 0x92c   : > { %5265 = vrot.lane.b32.xlu1 %v5257_v57, %s8396_s12  ;;  %5333 = vrot.lane.b32.xlu0 %v5325_v8, %s6017_s18  ;;  %v5905_v8 = vld [vmem:[%s8071_s9 + $0x1c] sm:$0xf] }
 0x930   : > { %5071 = vrot.lane.b32.xlu0 %v5061_v18, %s8247_s14  ;;  %5069 = vrot.lane.b32.xlu1 %v5060_v32, %s8247_s14 }
 0x934   : > { %5137 = vrot.lane.b32.xlu0 %v5128_v15, %s6029_s23  ;;  %5139 = vrot.lane.b32.xlu1 %v5129_v30, %s6029_s23 }
 0x938   : > { %5397 = vrot.lane.b32.xlu0 %v4934_v40, %s8270_s16  ;;  %5395 = vrot.lane.b32.xlu1 %v4937_v0, %s8270_s16 }
 0x93c   : > { %5267 = vrot.lane.b32.xlu0 %v5258_v28, %s8396_s12  ;;  %5269 = vrot.lane.b32.xlu1 %v5259_v42, %s8396_s12  ;;  %v5908_v42 = vld [vmem:[%s8071_s9 + $0x20] sm:$0xf] }
 0x940   : > { %5337 = vrot.lane.b32.xlu0 %v5327_v54, %s6017_s18  ;;  %5335 = vrot.lane.b32.xlu1 %v5326_v36, %s6017_s18 }
 0x944   : > { %5463 = vrot.lane.b32.xlu0 %v5455_v37, %s8399_s15  ;;  %5399 = vrot.lane.b32.xlu1 %v4940_v58, %s8270_s16  ;;  %v5902_v58 = vld [vmem:[%s8071_s9 + $0x18] sm:$0xf] }
 0x948   : > { %5467 = vrot.lane.b32.xlu0 %v5457_v12, %s8399_s15  ;;  %5465 = vrot.lane.b32.xlu1 %v5456_v47, %s8399_s15  ;;  %s457_s15 = scalar_lea.vmem %s8075_s13, %s8450_s24 }
 0x94c   : > { %5537 = vperm.xlu0 %5979, %v5534_v49   ;;  %5526 = vperm.xlu1 %5978, %v5523_v53  }
 0x98e   : > { %v4950_v10 = vpop.permute.xlu1 %4949  ;;  %v5198_v26 = vpop.permute.xlu0 %5197 }
 0x992   : > { %v4954_v17 = vpop.permute.xlu1 %4953  ;;  %v4952_v39 = vpop.permute.xlu0 %4951 }
 0x993   : > { %v4955_v56 = vsel %vm8426_vm3, %v4950_v10, %v4952_v39  ;;  %v4956_v63 = vsel %vm8427_vm9, %v4952_v39, %v4954_v17  ;;  %vm8439_vm3 = vmmov %vm8438_vm6 }
 0x994   : > { %v4963_v7 = vsel %vm4961_vm14, %v4955_v56, 0  ;;  %5886 = vmatprep.subr.msk.bf16.mxu1 %vm4961_vm14, %v4956_v63  ;;  %vm8440_vm9 = vmmov %vm8428_vm1 }
 0x995   : > { %4969 = vmatpush1.bf16.msra.mxu1 %v4963_v7 }
 0x996   : > { %v5136_v60 = vpop.permute.xlu1 %5135  ;;  %v5068_v51 = vpop.permute.xlu0 %5067 }
 0x998   : > { %5887 = vmatmul.mubr.msk.bf16.vlgmr.msra.gmra.mrb[116].mxu1 %vm8428_vm1, %v5885_v13  ;;  %vm8441_vm1 = vcmask 777216  }
 0x999   : > { %5116 = vmatprep.mubr.bf16.mxu1 %v8262_v3 }
 0x99a   : > { %v5200_v59 = vpop.permute.xlu1 %5199  ;;  %v5202_v61 = vpop.permute.xlu0 %5201 }
 0x99b   : > { %v5203_v41 = vsel %vm8431_vm10, %v5198_v26, %v5200_v59  ;;  %v5204_v20 = vsel %vm8432_vm8, %v5200_v59, %v5202_v61  ;;  %vm8444_vm10 = vcmask 769024  }
 0x99c   : > { %v5209_v48 = vsel %vm4961_vm14, %v5203_v41, 0  ;;  %vm8445_vm8 = vmmov %vm8444_vm10 }
 0x99e   : > { %v5266_v5 = vpop.permute.xlu1 %5265  ;;  %v5334_v11 = vpop.permute.xlu0 %5333 }
 0x9a2   : > { %v5070_v14 = vpop.permute.xlu1 %5069  ;;  %v5072_v62 = vpop.permute.xlu0 %5071 }
 0x9a3   : > { %v5073_v4 = vsel %vm8429_vm5, %v5068_v51, %v5070_v14  ;;  %v5074_v27 = vsel %vm8430_vm13, %v5070_v14, %v5072_v62  ;;  %vm8442_vm5 = vmmov %vm8441_vm1 }
 0x9a4   : > { %v5079_v16 = vsel %vm4961_vm14, %v5073_v4, 0  ;;  %5891 = vmatprep.subr.msk.bf16.mxu1 %vm4961_vm14, %v5074_v27  ;;  %vm8443_vm13 = vmmov %vm8440_vm9 }
 0x9a5   : > { %5085 = vmatpush1.bf16.msra.mxu1 %v5079_v16 }
 0x9a6   : > { %v5140_v2 = vpop.permute.xlu1 %5139  ;;  %5897 = vmatprep.subr.msk.bf16.mxu1 %vm4961_vm14, %v5204_v20  ;;  %v5138_v34 = vpop.permute.xlu0 %5137 }
 0x9a7   : > { %v5141_v33 = vsel %vm1113_vm0, %v5136_v60, %v5138_v34  ;;  %v5142_v25 = vsel %vm1113_vm0, %v5138_v34, %v5140_v2  ;;  %vm8435_vm0 = vcmask 900096  }
 0x9a8   : > { %v5147_v43 = vsel %vm4961_vm14, %v5141_v33, 0  ;;  %5892 = vmatmul.mubr.msk.bf16.vlgmr.msra.gmra.mrb[120].mxu1 %vm8433_vm11, %v5890_v29  ;;  %5894 = vmatprep.subr.msk.bf16.mxu0 %vm4961_vm14, %v5142_v25  ;;  %vm8436_vm2 = vmmov %vm8435_vm0 }
 0x9a9   : > { %5153 = vmatpush1.bf16.msra.mxu0 %v5147_v43  ;;  %5215 = vmatpush1.bf16.msra.mxu1 %v5209_v48  ;;  %vm8446_vm11 = vmmov %vm8440_vm9 }
 0x9aa   : > { %v5396_v52 = vpop.permute.xlu1 %5395  ;;  %v5398_v31 = vpop.permute.xlu0 %5397  ;;  %5246 = vmatprep.mubr.bf16.mxu1 %v8262_v3 }
 0x9ab   : > { %v5401_v38 = vsel %vm8441_vm1, %v5396_v52, %v5398_v31 }
 0x9ac   : > { %5895 = vmatmul.mubr.msk.bf16.vlgmr.msra.gmra.mrb[124].mxu0 %vm8434_vm12, %v5893_v50  ;;  %v5407_v57 = vsel %vm4961_vm14, %v5401_v38, 0  ;;  %vm8447_vm12 = vmmov %vm8440_vm9 }
 0x9ad   : > { %5314 = vmatprep.mubr.bf16.mxu0 %v8262_v3 }
 0x9ae   : > { %v5270_v24 = vpop.permute.xlu1 %5269  ;;  %v5268_v55 = vpop.permute.xlu0 %5267 }
 0x9af   : > { %v5271_v19 = vsel %vm8435_vm0, %v5266_v5, %v5268_v55  ;;  %v5272_v46 = vsel %vm8436_vm2, %v5268_v55, %v5270_v24 }
 0x9b0   : > { %v5277_v35 = vsel %vm4961_vm14, %v5271_v19, 0  ;;  %5898 = vmatmul.mubr.msk.bf16.vlgmr.msra.gmra.mrb[124].mxu1 %vm8437_vm15, %v5896_v22  ;;  %5900 = vmatprep.subr.msk.bf16.mxu0 %vm4961_vm14, %v5272_v46 }
 0x9b1   : > { %5283 = vmatpush1.bf16.msra.mxu0 %v5277_v35  ;;  %5382 = vmatprep.mubr.bf16.mxu1 %v8262_v3 }
 0x9b2   : > { %v5336_v0 = vpop.permute.xlu1 %5335  ;;  %v5338_v45 = vpop.permute.xlu0 %5337 }
 0x9b3   : > { %v5339_v40 = vsel %vm8438_vm6, %v5334_v11, %v5336_v0  ;;  %v5340_v6 = vsel %vm8439_vm3, %v5336_v0, %v5338_v45 }
 0x9b4   : > { %v5345_v23 = vsel %vm4961_vm14, %v5339_v40, 0  ;;  %5901 = vmatmul.mubr.msk.bf16.vlgmr.msra.gmra.mrb[128].mxu0 %vm8440_vm9, %v5899_v21  ;;  %5903 = vmatprep.subr.msk.bf16.mxu1 %vm4961_vm14, %v5340_v6 }
 0x9b5   : > { %5351 = vmatpush1.bf16.msra.mxu1 %v5345_v23  ;;  %5444 = vmatprep.mubr.bf16.mxu0 %v8262_v3 }
 0x9b6   : > { %v5400_v1 = vpop.permute.xlu1 %5399  ;;  %v5464_v9 = vpop.permute.xlu0 %5463 }
 0x9b7   : > { %v5402_v44 = vsel %vm8442_vm5, %v5398_v31, %v5400_v1 }
 0x9b8   : > { %5904 = vmatmul.mubr.msk.bf16.vlgmr.msra.gmra.mrb[128].mxu1 %vm8443_vm13, %v5902_v58  ;;  %5906 = vmatprep.subr.msk.bf16.mxu0 %vm4961_vm14, %v5402_v44 }
 0x9b9   : > { %5413 = vmatpush1.bf16.msra.mxu0 %v5407_v57  ;;  %5512 = vmatprep.mubr.bf16.mxu1 %v8262_v3 }
 0x9ba   : > { %v5466_v18 = vpop.permute.xlu1 %5465  ;;  %v5468_v32 = vpop.permute.xlu0 %5467 }
 0x9bb   : > { %v5469_v15 = vsel %vm8444_vm10, %v5464_v9, %v5466_v18  ;;  %v5470_v30 = vsel %vm8445_vm8, %v5466_v18, %v5468_v32  ;;  %v5533_v18 = vld [vmem:[%s8073_s11] sm:$0x1] }
 0x9bc   : > { %v5475_v28 = vsel %vm4961_vm14, %v5469_v15, 0  ;;  %5907 = vmatmul.mubr.msk.bf16.vlgmr.msra.gmra.mrb[132].mxu0 %vm8446_vm11, %v5905_v8  ;;  %5909 = vmatprep.subr.msk.bf16.mxu1 %vm4961_vm14, %v5470_v30  ;;  %v8448_v15 = vld [vmem:[#allocation3_spill] sm:$0xff] }
 0x9bd   : > { %5481 = vmatpush1.bf16.msra.mxu1 %v5475_v28  ;;  %5585 = vmatprep.mubr.bf16.mxu0 %v8262_v3 }
 0x9c0   : > { %5910 = vmatmul.mubr.msk.bf16.vlgmr.msra.gmra.mrb[132].mxu1 %vm8447_vm12, %v5908_v42 }
 0x9cb   : > { %v5527_v6 = vpop.permute.xlu1 %5526  ;;  %v5538_v32 = vpop.permute.xlu0 %5537 }
 0x9cc   : > { %v5543_v30 = vrot.slane %v5538_v32, %v8448_v15 }
 0x9f5   : > { %v5052_v54 = vpop.f32.mrb[120].mxu0 }
 0x9f6   : > { %v5054_v36 = vpop.f32.mrb[121].mxu0 }
 0x9f7   : > { %v5056_v37 = vpop.f32.mrb[122].mxu0 }
 0x9f8   : > { %v5057_v12 = vpop.f32.mrb[123].mxu0 }
 0xa6b   : > { %v5002_v47 = vpop.f32.mrb[116].mxu1 }
 0xa6c   : > { %v5004_v49 = vpop.f32.mrb[117].mxu1  ;;  %v5053_v53 = vadd.f32 %v5052_v54, %v5002_v47 }
 0xa6d   : > { %v5006_v10 = vpop.f32.mrb[118].mxu1  ;;  %v5055_v26 = vadd.f32 %v5054_v36, %v5004_v49 }
 0xa6e   : > { %v5007_v17 = vpop.f32.mrb[119].mxu1 }
 0xa7b   : > { %v5118_v39 = vpop.f32.mrb[120].mxu1 }
 0xa7c   : > { %v5125_v56 = vadd.f32 %v5118_v39, %v5053_v53  ;;  %v5120_v63 = vpop.f32.mrb[121].mxu1 }
 0xa7d   : > { %v5126_v7 = vadd.f32 %v5120_v63, %v5055_v26  ;;  %v5122_v13 = vpop.f32.mrb[122].mxu1 }
 0xa7e   : > { %v5123_v60 = vpop.f32.mrb[123].mxu1 }
 0xa7f   : > { %v5186_v51 = vpop.f32.mrb[124].mxu0 }
 0xa80   : > { %v5193_v3 = vadd.f32 %v5186_v51, %v5125_v56  ;;  %v5188_v59 = vpop.f32.mrb[125].mxu0 }
 0xa81   : > { %v5194_v61 = vadd.f32 %v5188_v59, %v5126_v7  ;;  %v5190_v5 = vpop.f32.mrb[126].mxu0 }
 0xa82   : > { %v5191_v11 = vpop.f32.mrb[127].mxu0 }
 0xa83   : > { %v5248_v14 = vpop.f32.mrb[124].mxu1  ;;  %v8449_v11 = vld [vmem:[#allocation4_spill] sm:$0xff] }
 0xa84   : > { %v5255_v62 = vadd.f32 %v5248_v14, %v5193_v3  ;;  %v5250_v4 = vpop.f32.mrb[125].mxu1 }
 0xa85   : > { %v5256_v27 = vadd.f32 %v5250_v4, %v5194_v61  ;;  %v5252_v16 = vpop.f32.mrb[126].mxu1 }
 0xa86   : > { %v5253_v41 = vpop.f32.mrb[127].mxu1 }
 0xa87   : > { %v5316_v20 = vpop.f32.mrb[128].mxu0 }
 0xa88   : > { %v5323_v29 = vadd.f32 %v5316_v20, %v5255_v62  ;;  %v5318_v2 = vpop.f32.mrb[129].mxu0  ;;  %v8451_v62 = vlaneseq }
 0xa89   : > { %v5324_v34 = vadd.f32 %v5318_v2, %v5256_v27  ;;  %v5320_v33 = vpop.f32.mrb[130].mxu0 }
 0xa8a   : > { %v5321_v25 = vpop.f32.mrb[131].mxu0  ;;  %vm5634_vm14 = vcmp.lt.s32.totalorder %v8451_v62, 256 }
 0xa8b   : > { %v5384_v48 = vpop.f32.mrb[128].mxu1 }
 0xa8c   : > { %v5391_v43 = vadd.f32 %v5384_v48, %v5323_v29  ;;  %v5386_v50 = vpop.f32.mrb[129].mxu1 }
 0xa8d   : > { %v5392_v52 = vadd.f32 %v5386_v50, %v5324_v34  ;;  %v5388_v31 = vpop.f32.mrb[130].mxu1 }
 0xa8e   : > { %v5389_v22 = vpop.f32.mrb[131].mxu1 }
 0xa8f   : > { %v5446_v24 = vpop.f32.mrb[132].mxu0 }
 0xa90   : > { %v5453_v55 = vadd.f32 %v5446_v24, %v5391_v43  ;;  %v5448_v19 = vpop.f32.mrb[133].mxu0 }
 0xa91   : > { %v5454_v46 = vadd.f32 %v5448_v19, %v5392_v52  ;;  %v5450_v35 = vpop.f32.mrb[134].mxu0 }
 0xa92   : > { %v5451_v21 = vpop.f32.mrb[135].mxu0 }
 0xa93   : > { %v5514_v0 = vpop.f32.mrb[132].mxu1 }
 0xa94   : > { %v5521_v45 = vadd.f32 %v5514_v0, %v5453_v55  ;;  %v5516_v40 = vpop.f32.mrb[133].mxu1 }
 0xa95   : > { %v5522_v23 = vadd.f32 %v5516_v40, %v5454_v46  ;;  %v5518_v38 = vpop.f32.mrb[134].mxu1 }
 0xa96   : > { %v5529_v58 = vadd.f32 %v5527_v6, %v5521_v45  ;;  %v5519_v1 = vpop.f32.mrb[135].mxu1 }
 0xa97   : > { %v5530_v9 = vadd.f32 %v5527_v6, %v5522_v23 }
 0xa98   : > { %v5531_v44 = vpack.c.bf16 %v5529_v58, %v5529_v58 }
 0xa99   : > { %v5532_v57 = vpack.c.bf16 %v5530_v9, %v5530_v9 }
 0xa9a   : > { %v5548_v8 = vsel %vm2636_vm4, %v5531_v44, 0 }
 0xa9b   : > { %5911 = vmatprep.subr.msk.bf16.mxu0 %vm2636_vm4, %v5532_v57 }
 0xa9c   : > { %5554 = vmatpush1.bf16.msra.mxu0 %v5548_v8 }
 0xa9f   : > { %5912 = vmatmul.mubr.msk.bf16.vlgmr.msra.gmra.mrb[136].mxu0 %vm2632_vm7, %v5533_v18 }
 0xb72   : > { %v5587_v28 = vpop.f32.mrb[136].mxu0 }
 0xb73   : > { %v5588_v42 = vadd.f32 %v5587_v28, %v5543_v30  ;;  %v5589_v54 = vpop.f32.mrb[137].mxu0 }
 0xb74   : > { %v5590_v36 = vadd.f32 %v5589_v54, %v5543_v30  ;;  %v5591_v37 = vpop.f32.mrb[138].mxu0 }
 0xb75   : > { %v5594_v12 = vand.u32 2147483647, %v5588_v42  ;;  %v5592_v47 = vpop.f32.mrb[139].mxu0  ;;  %vm5608_vm4 = vcmp.ge.f32.partialorder %v5588_v42, 0.0 }
 0xb76   : > { %v5595_v49 = vand.u32 2147483647, %v5590_v36  ;;  %vm5609_vm7 = vcmp.ge.f32.partialorder %v5590_v36, 0.0 }
 0xb77   : > { %v5596_v53 = vsub.f32 0.0, %v5594_v12 }
 0xb78   : > { %v5597_v10 = vsub.f32 0.0, %v5595_v49 }
 0xb79   : > { %v5598_v26 = vmul.f32 1.442695, %v5596_v53 }
 0xb7a   : > { %v5600_v17 = vmul.f32 1.442695, %v5597_v10 }
 0xb7b   : > { %5980 = vpow2.f32 %v5598_v26 }
 0xb7c   : > { %5982 = vpow2.f32 %v5600_v17 }
 0xb85   : > { %v5981_v39 = vpop.eup %5980 }
 0xb86   : > { %v5983_v56 = vpop.eup %5982  ;;  %v5602_v63 = vadd.f32 1.0, %v5981_v39 }
 0xb87   : > { %v5603_v7 = vadd.f32 1.0, %v5983_v56 }
 0xb88   : > { %5984 = vrcp.f32 %v5602_v63 }
 0xb89   : > { %5986 = vrcp.f32 %v5603_v7 }
 0xb92   : > { %v5985_v13 = vpop.eup %5984 }
 0xb93   : > { %v5987_v60 = vpop.eup %5986  ;;  %v5610_v51 = vsub.f32 1.0, %v5985_v13 }
 0xb94   : > { %v5611_v3 = vsub.f32 1.0, %v5987_v60 }
 0xb95   : > { %v5612_v59 = vsel %vm5608_vm4, %v5985_v13, %v5610_v51 }
 0xb96   : > { %v5613_v61 = vsel %vm5609_vm7, %v5987_v60, %v5611_v3 }
 0xb97   : > { %v5616_v5 = vcombine.low %v5612_v59, %v5613_v61 }
 0xb99   : > { %v5623_v14 = vrot.slane %v5616_v5, %v8449_v11 }
 0xb9b   : > { %v5630_v4 = vrot.slane %v5623_v14, %v8449_v11 }
 0xb9d   : > { %5636 = vst.msk [vmem:[%s457_s15] sm:$0x3] %vm5634_vm14, %v5630_v4 }
 0xb9e PF: > { %s25_s27 = sadd.s32 1, %s5994_s27  }
 0xb9f   : > { %p22_p4 = scmp.ge.s32.totalorder %s25_s27, 4  }
 0xba1   :  { %24 = sbr.rel (!%p22_p4) target bundleno = 3 (0x3), region = 169 }

</bundles_post_ra>
